<compile_context>
chip_gen: v5e
topology: v5e:2x2
jax: 0.10.0
libtpu: 0.0.40
codegen_flags: <defaults>
</compile_context>

<pallas_src>
import jax
import jax.numpy as jnp
from jax import lax
from jax.experimental import pallas as pl
from jax.experimental.pallas import tpu as pltpu

EPS = 1e-5                  # BatchNorm1d eps (PyTorch default)
CPAD = 128                  # lane-dense channel padding (full vreg lane width)
CIN_PAD = 8                 # narrow lane padding for the Cin=1 network input
PAD = 8                     # sublane-aligned zero halo rows per segment
N_TOWERS = 2                # Siamese: query + reference towers
MXU_DTYPE = jnp.bfloat16    # matmul operand dtype; accumulation is always f32


def _round_up(x, m):
    return ((x + m - 1) // m) * m


# ----------------------------------------------------------------------------
# Weight packing (wrapper side): everything lane-padded to 128
# ----------------------------------------------------------------------------
def _pack_conv(w):
    """PyTorch conv weight (Cout, Cin, K) -> (K, CPAD, CPAD) tap matrices."""
    cout, cin, k = w.shape
    assert cout <= CPAD and cin <= CPAD
    wt = jnp.transpose(w, (2, 1, 0)).astype(jnp.float32)   # [t, cin, cout]
    return jnp.pad(wt, ((0, 0), (0, CPAD - cin), (0, CPAD - cout)))


def _pack_bn(v):
    return jnp.pad(v.astype(jnp.float32), (0, CPAD - v.shape[0]))


def _build_plan(params, L0):
    """Pack all weights into lane-dense slabs + a static (Python int) layer plan."""
    taps, gammas, betas = [], [], []

    def add_conv(w):
        off = sum(int(t.shape[0]) for t in taps)
        taps.append(_pack_conv(w))
        return off

    def add_bn(g, b):
        gammas.append(_pack_bn(g))
        betas.append(_pack_bn(b))
        return len(gammas) - 1

    plan = {"stem_w": add_conv(params["conv1_w"]),
            "stem_bn": add_bn(params["bn1_g"], params["bn1_b"]),
            "blocks": []}
    l = (L0 + 2 * 2 - 5) // 1 + 1          # stem: k=5, s=1, p=2  (== L0)
    c = int(params["conv1_w"].shape[0])
    for blk in params["blocks"]:
        p, s = blk["p"], blk["stride"]
        d = {"stride": s,
             "w1": add_conv(p["conv1_w"]), "bn1": add_bn(p["bn1_g"], p["bn1_b"]),
             "w2": add_conv(p["conv2_w"]), "bn2": add_bn(p["bn2_g"], p["bn2_b"])}
        if "sc_w" in p:
            d["sc_w"] = add_conv(p["sc_w"])
            d["sc_bn"] = add_bn(p["sc_bn_g"], p["sc_bn_b"])
        plan["blocks"].append(d)
        l = (l + 2 * 2 - 5) // s + 1
        c = int(p["conv1_w"].shape[0])
    plan["l_fin"], plan["c_fin"] = l, c

    emb, dimb = params["lin_w"].shape
    assert dimb == c * l and emb <= CPAD
    # PyTorch flattens (B, C, L) channel-major: d = c*L + l.  Fold that order
    # into the weight so the kernel never has to transpose the activation.
    lw = params["lin_w"].reshape(emb, c, l)          # [e, c, l]
    lw = jnp.transpose(lw, (2, 1, 0))                # [l, c, e]
    lw = jnp.pad(lw, ((0, 0), (0, CPAD - c), (0, CPAD - emb)))
    lb = jnp.pad(params["lin_b"].astype(jnp.float32), (0, CPAD - emb)).reshape(1, CPAD)

    w_all = jnp.concatenate(taps, axis=0).astype(MXU_DTYPE)
    gam = jnp.stack(gammas)
    bet = jnp.stack(betas)
    return plan, w_all, gam, bet, lw.astype(MXU_DTYPE), lb, int(emb)


# ----------------------------------------------------------------------------
# The fused kernel: both towers + batch in one invocation
# ----------------------------------------------------------------------------
def _make_kernel(plan, B, L0, SEG):
    n_seg = N_TOWERS * B            # one zero-halo'd segment per (tower, sample)

    def kernel(x_ref, w_ref, gam_ref, bet_ref, lw_ref, lb_ref,
               out_ref, buf_a, buf_b):

        # hoisted constants (JAX does not CSE broadcasts inside unrolled loops)
        zero_clr = jnp.zeros((2, CPAD), jnp.float32)
        lane_pad = jnp.zeros((L0, CPAD - CIN_PAD), jnp.float32)

        # ------------------------------------------------------------------
        # Conv1d(bias=False): one (n_seg*l_out, CPAD)x(CPAD, CPAD) dot per tap.
        # Zero halos (>= conv padding rows) around every segment make the
        # shifted window reads exact; stride-2 uses strided pl.ds reads.
        # All slice starts are static Python ints.
        # ------------------------------------------------------------------
        def conv(src, l_in, ksize, pconv, stride, w_off):
            l_out = (l_in + 2 * pconv - ksize) // stride + 1
            acc = None
            for t in range(ksize):
                parts = []
                for s in range(n_seg):
                    start = s * SEG + PAD - pconv + t
                    if stride == 1:
                        parts.append(src[pl.ds(start, l_out), :])
                    else:
                        parts.append(src[pl.ds(start, l_out, stride=stride), :])
                xk = jnp.concatenate(parts, axis=0).astype(MXU_DTYPE)
                d = jnp.dot(xk, w_ref[w_off + t],
                            preferred_element_type=jnp.float32)
                acc = d if acc is None else acc + d
            return acc, l_out                       # (n_seg*l_out, CPAD) f32

        # ------------------------------------------------------------------
        # Train-mode BatchNorm1d with PER-TOWER batch statistics (== two
        # independent forward_once() calls), folded affine, optional residual
        # (added after BN, before ReLU, exactly like the PyTorch block).
        # ------------------------------------------------------------------
        def batchnorm(y, l_out, bn_idx, relu, residual=None):
            rows = B * l_out
            y3 = y.reshape(N_TOWERS, rows, CPAD)
            inv_n = 1.0 / float(rows)
            mean = jnp.sum(y3, axis=1, keepdims=True) * inv_n
            var = jnp.maximum(
                jnp.sum(y3 * y3, axis=1, keepdims=True) * inv_n - mean * mean,
                0.0)
            gamma = gam_ref[bn_idx:bn_idx + 1, :]
            beta = bet_ref[bn_idx:bn_idx + 1, :]
            scale = gamma * lax.rsqrt(var + EPS)            # folded affine
            shift = beta - mean * scale
            out = y3 * scale + shift
            if residual is not None:
                out = out + residual.reshape(N_TOWERS, rows, CPAD)
            if relu:
                out = jnp.maximum(out, 0.0)
            return out.reshape(n_seg * l_out, CPAD)

        def load_valid(src, l):
            return jnp.concatenate(
                [src[pl.ds(s * SEG + PAD, l), :] for s in range(n_seg)], axis=0)

        def store(dst, y, l_out, clear_tail):
            for s in range(n_seg):
                dst[pl.ds(s * SEG + PAD, l_out), :] = y[s * l_out:(s + 1) * l_out, :]
                if clear_tail:
                    # the next conv over-reads at most pconv(<=2) rows past the
                    # valid region; clear them when the activation shrank so no
                    # stale rows from a longer previous activation leak in.
                    dst[pl.ds(s * SEG + PAD + l_out, 2), :] = zero_clr

        # ---- zero both activation buffers ONCE (halo rows stay zero) ----
        buf_a[...] = jnp.zeros_like(buf_a)
        buf_b[...] = jnp.zeros_like(buf_b)

        # ---- stage the lane-narrow input, lane-padded to CPAD, into buf A ----
        for s in range(n_seg):
            xs = jnp.concatenate([x_ref[s], lane_pad], axis=1)
            buf_a[pl.ds(s * SEG + PAD, L0), :] = xs

        # ---- stem: conv1 + bn1 + relu  (buf_a -> buf_b) ----
        y, l = conv(buf_a, L0, 5, 2, 1, plan["stem_w"])
        y = batchnorm(y, l, plan["stem_bn"], relu=True)
        store(buf_b, y, l, clear_tail=False)
        len_a, len_b = L0, l            # statically tracked resident lengths

        # ---- residual blocks: block activation lives in buf_b, buf_a is temp ----
        for d in plan["blocks"]:
            stride = d["stride"]
            h, l_mid = conv(buf_b, l, 5, 2, stride, d["w1"])
            h = batchnorm(h, l_mid, d["bn1"], relu=True)
            # Shortcut reads the block input from buf_b BEFORE buf_b is
            # overwritten with the block output below (trace-order dependent;
            # do not move the store(buf_b, ...) above these reads).
            if "sc_w" in d:             # downsample shortcut: 1x1 conv + bn
                r, _ = conv(buf_b, l, 1, 0, stride, d["sc_w"])
                r = batchnorm(r, l_mid, d["sc_bn"], relu=False)
            else:                       # identity shortcut
                r = load_valid(buf_b, l_mid)
            store(buf_a, h, l_mid, clear_tail=len_a > l_mid)
            len_a = l_mid
            y, l = conv(buf_a, l_mid, 5, 2, 1, d["w2"])
            y = batchnorm(y, l, d["bn2"], relu=True, residual=r)
            store(buf_b, y, l, clear_tail=len_b > l)
            len_b = l

        # ---- Linear: channel-major flatten folded into lw; l_fin dots with
        #      M = n_seg (all tower/batch rows at once) ----
        acc = None
        for li in range(plan["l_fin"]):
            rows = jnp.concatenate(
                [buf_b[pl.ds(s * SEG + PAD + li, 1), :] for s in range(n_seg)],
                axis=0).astype(MXU_DTYPE)
            contrib = jnp.dot(rows, lw_ref[li], preferred_element_type=jnp.float32)
            acc = contrib if acc is None else acc + contrib
        out_ref[...] = acc + lb_ref[...]

    return kernel


# ----------------------------------------------------------------------------
# Wrapper: one pallas_call, one grid step, both towers fused
# ----------------------------------------------------------------------------
def siamese_forward(x_qry, x_ref, params):
    assert x_qry.shape == x_ref.shape
    B, cin, L0 = x_qry.shape
    assert cin == 1
    plan, w_all, gam, bet, lw, lb, emb = _build_plan(params, L0)
    n_seg = N_TOWERS * B
    SEG = _round_up(L0 + 2 * PAD, 8)          # per-(tower,sample) segment rows

    def prep(x):        # (B, 1, L) NCL -> channels-last, narrow lane padding
        x_cl = jnp.transpose(x, (0, 2, 1)).astype(jnp.float32)
        return jnp.pad(x_cl, ((0, 0), (0, 0), (0, CIN_PAD - cin)))

    x_all = jnp.concatenate([prep(x_qry), prep(x_ref)], axis=0)   # (2B, L0, 8)

    n_taps, n_bn, l_fin = int(w_all.shape[0]), int(gam.shape[0]), plan["l_fin"]
    kernel = _make_kernel(plan, B, L0, SEG)

    out = pl.pallas_call(
        kernel,
        out_shape=jax.ShapeDtypeStruct((n_seg, CPAD), jnp.float32),
        grid_spec=pltpu.PrefetchScalarGridSpec(
            num_scalar_prefetch=0,
            grid=(1,),                                   # one fused step
            in_specs=[
                pl.BlockSpec((n_seg, L0, CIN_PAD), lambda i: (0, 0, 0)),
                pl.BlockSpec((n_taps, CPAD, CPAD), lambda i: (0, 0, 0)),
                pl.BlockSpec((n_bn, CPAD), lambda i: (0, 0)),
                pl.BlockSpec((n_bn, CPAD), lambda i: (0, 0)),
                pl.BlockSpec((l_fin, CPAD, CPAD), lambda i: (0, 0, 0)),
                pl.BlockSpec((1, CPAD), lambda i: (0, 0)),
            ],
            out_specs=pl.BlockSpec((n_seg, CPAD), lambda i: (0, 0)),
            scratch_shapes=[
                pltpu.VMEM((n_seg * SEG, CPAD), jnp.float32),   # activation ping
                pltpu.VMEM((n_seg * SEG, CPAD), jnp.float32),   # activation pong
            ],
        ),
        compiler_params=pltpu.CompilerParams(
            dimension_semantics=("arbitrary",),
            vmem_limit_bytes=32 * 1024 * 1024,
        ),
    )(x_all, w_all, gam, bet, lw, lb)

    return out[:B, :emb], out[B:, :emb]


# ----------------------------------------------------------------------------
# Pure-JAX reference (same bf16 matmul operands / f32 accumulation) for checking
# ----------------------------------------------------------------------------
def _reference_forward(x_ncl, params):
    def cast(a):
        return a.astype(MXU_DTYPE)

    def conv(x_cl, w, stride, pad):
        return lax.conv_general_dilated(
            cast(x_cl), cast(jnp.transpose(w, (2, 1, 0))),
            window_strides=(stride,), padding=[(pad, pad)],
            dimension_numbers=("NHC", "HIO", "NHC"),
            preferred_element_type=jnp.float32)

    def bn(y, g, b):
        mean = jnp.mean(y, axis=(0, 1), keepdims=True)
        var = jnp.mean(jnp.square(y - mean), axis=(0, 1), keepdims=True)
        return (y - mean) * lax.rsqrt(var + EPS) * g + b

    x_cl = jnp.transpose(x_ncl, (0, 2, 1)).astype(jnp.float32)
    h = jax.nn.relu(bn(conv(x_cl, params["conv1_w"], 1, 2),
                       params["bn1_g"], params["bn1_b"]))
    for blk in params["blocks"]:
        p, s = blk["p"], blk["stride"]
        o1 = jax.nn.relu(bn(conv(h, p["conv1_w"], s, 2), p["bn1_g"], p["bn1_b"]))
        o2 = bn(conv(o1, p["conv2_w"], 1, 2), p["bn2_g"], p["bn2_b"])
        sc = (bn(conv(h, p["sc_w"], s, 0), p["sc_bn_g"], p["sc_bn_b"])
              if "sc_w" in p else h)
        h = jax.nn.relu(o2 + sc)
    B, L, C = h.shape
    flat = jnp.transpose(h, (0, 2, 1)).reshape(B, C * L)
    return (jnp.dot(cast(flat), cast(params["lin_w"].T),
                    preferred_element_type=jnp.float32) + params["lin_b"])


# ----------------------------------------------------------------------------
# Deterministic parameter init (shapes follow SiameseResNet.__init__)
# ----------------------------------------------------------------------------
def init_params(key, *, hidden_sizes=(8, 16), num_blocks=(1, 1),
                in_channels=8, embedding_size=16, length=16):
    ks = iter(jax.random.split(key, 64))

    def conv(cout, cin, k):
        fan_in = cin * k
        return jax.random.normal(next(ks), (cout, cin, k), jnp.float32) / jnp.sqrt(
            float(fan_in))

    def bn(c):
        g = 1.0 + 0.01 * jax.random.normal(next(ks), (c,), jnp.float32)
        b = 0.01 * jax.random.normal(next(ks), (c,), jnp.float32)
        return g, b

    params = {"conv1_w": conv(in_channels, 1, 5)}
    params["bn1_g"], params["bn1_b"] = bn(in_channels)

    blocks = []
    cur_c, cur_l = in_channels, length
    strides = [1] + [2] * (len(hidden_sizes) - 1)
    for hs, nb, st in zip(hidden_sizes, num_blocks, strides):
        for s in [st] + [1] * (nb - 1):
            p = {"conv1_w": conv(hs, cur_c, 5)}
            p["bn1_g"], p["bn1_b"] = bn(hs)
            p["conv2_w"] = conv(hs, hs, 5)
            p["bn2_g"], p["bn2_b"] = bn(hs)
            if s != 1 or cur_c != hs:
                p["sc_w"] = conv(hs, cur_c, 1)
                p["sc_bn_g"], p["sc_bn_b"] = bn(hs)
            blocks.append({"p": p, "stride": s})
            cur_c = hs
            cur_l = (cur_l + 2 * 2 - 5) // s + 1
    params["blocks"] = blocks

    dim_before = cur_c * cur_l
    params["lin_w"] = jax.random.normal(
        next(ks), (embedding_size, dim_before), jnp.float32) / jnp.sqrt(
        float(dim_before))
    params["lin_b"] = 0.01 * jax.random.normal(
        next(ks), (embedding_size,), jnp.float32)
    return params


# ----------------------------------------------------------------------------
if __name__ == "__main__":
    key = jax.random.PRNGKey(0)
    kp, kq, kr = jax.random.split(key, 3)

    B, L, EMB = 2, 16, 16
    params = init_params(kp, hidden_sizes=(8, 16), num_blocks=(1, 1),
                         in_channels=8, embedding_size=EMB, length=L)

    x_qry = jax.random.normal(kq, (B, 1, L), jnp.float32)   # PyTorch NCL layout
    x_ref = jax.random.normal(kr, (B, 1, L), jnp.float32)

    out_qry, out_ref = siamese_forward(x_qry, x_ref, params)
    jax.block_until_ready((out_qry, out_ref))

    assert out_qry.shape == (B, EMB) and out_ref.shape == (B, EMB)
    assert out_qry.dtype == jnp.float32 and out_ref.dtype == jnp.float32

    # numerical sanity check against a pure-JAX reference (same bf16 operands)
    ref_q = _reference_forward(x_qry, params)
    ref_r = _reference_forward(x_ref, params)
    err = max(float(jnp.max(jnp.abs(out_qry - ref_q))),
              float(jnp.max(jnp.abs(out_ref - ref_r))))
    assert err < 2e-2, f"kernel/reference mismatch: max abs err {err}"

    print("KERNEL_OK")
</pallas_src>

<mosaic_0001>
module attributes {stable_mosaic.version = 11 : i64} {
  func.func @kernel(%arg0: i32, %arg1: memref<4x16x8xf32, #tpu.memory_space<vmem>>, %arg2: memref<26x128x128xbf16, #tpu.memory_space<vmem>>, %arg3: memref<6x128xf32, #tpu.memory_space<vmem>>, %arg4: memref<6x128xf32, #tpu.memory_space<vmem>>, %arg5: memref<8x128x128xbf16, #tpu.memory_space<vmem>>, %arg6: memref<1x128xf32, #tpu.memory_space<vmem>>, %arg7: memref<4x128xf32, #tpu.memory_space<vmem>>, %arg8: memref<128x128xf32, #tpu.memory_space<vmem>>, %arg9: memref<128x128xf32, #tpu.memory_space<vmem>>) attributes {dimension_semantics = [#tpu.dimension_semantics<arbitrary>], iteration_bounds = array<i64: 1>, scalar_prefetch = 0 : i64, scratch_operands = 2 : i64, tpu.core_type = #tpu.core_type<tc>, window_params = [{pipeline_mode = #tpu.pipeline_mode<synchronous>, transform_indices = @transform_0, window_bounds = array<i64: 4, 16, 8>}, {pipeline_mode = #tpu.pipeline_mode<synchronous>, transform_indices = @transform_1, window_bounds = array<i64: 26, 128, 128>}, {pipeline_mode = #tpu.pipeline_mode<synchronous>, transform_indices = @transform_2, window_bounds = array<i64: 6, 128>}, {pipeline_mode = #tpu.pipeline_mode<synchronous>, transform_indices = @transform_3, window_bounds = array<i64: 6, 128>}, {pipeline_mode = #tpu.pipeline_mode<synchronous>, transform_indices = @transform_4, window_bounds = array<i64: 8, 128, 128>}, {pipeline_mode = #tpu.pipeline_mode<synchronous>, transform_indices = @transform_5, window_bounds = array<i64: 1, 128>}, {pipeline_mode = #tpu.pipeline_mode<synchronous>, transform_indices = @transform_6, window_bounds = array<i64: 4, 128>}]} {
    %cst = arith.constant 0.000000e+00 : f32
    %0 = vector.broadcast %cst : f32 to vector<2x128xf32>
    %cst_0 = arith.constant 0.000000e+00 : f32
    %1 = vector.broadcast %cst_0 : f32 to vector<16x120xf32>
    %cst_1 = arith.constant 0.000000e+00 : f32
    %2 = vector.broadcast %cst_1 : f32 to vector<128x128xf32>
    %c0 = arith.constant 0 : index
    %c0_2 = arith.constant 0 : index
    %3 = vector.load %arg8[%c0, %c0_2] : memref<128x128xf32, #tpu.memory_space<vmem>>, vector<128x128xf32>
    tpu.vector_store %arg8[%c0, %c0_2], %2 {strides = array<i32>} : memref<128x128xf32, #tpu.memory_space<vmem>>, vector<128x128xf32>,
    %cst_3 = arith.constant 0.000000e+00 : f32
    %4 = vector.broadcast %cst_3 : f32 to vector<128x128xf32>
    %c0_4 = arith.constant 0 : index
    %c0_5 = arith.constant 0 : index
    %5 = vector.load %arg9[%c0_4, %c0_5] : memref<128x128xf32, #tpu.memory_space<vmem>>, vector<128x128xf32>
    tpu.vector_store %arg9[%c0_4, %c0_5], %4 {strides = array<i32>} : memref<128x128xf32, #tpu.memory_space<vmem>>, vector<128x128xf32>,
    %c0_6 = arith.constant 0 : index
    %c0_7 = arith.constant 0 : index
    %c0_8 = arith.constant 0 : index
    %6 = vector.load %arg1[%c0_6, %c0_7, %c0_8] : memref<4x16x8xf32, #tpu.memory_space<vmem>>, vector<1x16x8xf32>
    %7 = vector.shape_cast %6 : vector<1x16x8xf32> to vector<16x8xf32>
    %8 = tpu.concatenate %7, %1 in 1 : vector<16x8xf32>, vector<16x120xf32> -> vector<16x128xf32>
    %c8 = arith.constant 8 : index
    %c0_9 = arith.constant 0 : index
    %9 = vector.load %arg8[%c8, %c0_9] : memref<128x128xf32, #tpu.memory_space<vmem>>, vector<16x128xf32>
    tpu.vector_store %arg8[%c8, %c0_9], %8 {strides = array<i32>} : memref<128x128xf32, #tpu.memory_space<vmem>>, vector<16x128xf32>,
    %c1 = arith.constant 1 : index
    %c0_10 = arith.constant 0 : index
    %c0_11 = arith.constant 0 : index
    %10 = vector.load %arg1[%c1, %c0_10, %c0_11] : memref<4x16x8xf32, #tpu.memory_space<vmem>>, vector<1x16x8xf32>
    %11 = vector.shape_cast %10 : vector<1x16x8xf32> to vector<16x8xf32>
    %12 = tpu.concatenate %11, %1 in 1 : vector<16x8xf32>, vector<16x120xf32> -> vector<16x128xf32>
    %c40 = arith.constant 40 : index
    %c0_12 = arith.constant 0 : index
    %13 = vector.load %arg8[%c40, %c0_12] : memref<128x128xf32, #tpu.memory_space<vmem>>, vector<16x128xf32>
    tpu.vector_store %arg8[%c40, %c0_12], %12 {strides = array<i32>} : memref<128x128xf32, #tpu.memory_space<vmem>>, vector<16x128xf32>,
    %c2 = arith.constant 2 : index
    %c0_13 = arith.constant 0 : index
    %c0_14 = arith.constant 0 : index
    %14 = vector.load %arg1[%c2, %c0_13, %c0_14] : memref<4x16x8xf32, #tpu.memory_space<vmem>>, vector<1x16x8xf32>
    %15 = vector.shape_cast %14 : vector<1x16x8xf32> to vector<16x8xf32>
    %16 = tpu.concatenate %15, %1 in 1 : vector<16x8xf32>, vector<16x120xf32> -> vector<16x128xf32>
    %c72 = arith.constant 72 : index
    %c0_15 = arith.constant 0 : index
    %17 = vector.load %arg8[%c72, %c0_15] : memref<128x128xf32, #tpu.memory_space<vmem>>, vector<16x128xf32>
    tpu.vector_store %arg8[%c72, %c0_15], %16 {strides = array<i32>} : memref<128x128xf32, #tpu.memory_space<vmem>>, vector<16x128xf32>,
    %c3 = arith.constant 3 : index
    %c0_16 = arith.constant 0 : index
    %c0_17 = arith.constant 0 : index
    %18 = vector.load %arg1[%c3, %c0_16, %c0_17] : memref<4x16x8xf32, #tpu.memory_space<vmem>>, vector<1x16x8xf32>
    %19 = vector.shape_cast %18 : vector<1x16x8xf32> to vector<16x8xf32>
    %20 = tpu.concatenate %19, %1 in 1 : vector<16x8xf32>, vector<16x120xf32> -> vector<16x128xf32>
    %c104 = arith.constant 104 : index
    %c0_18 = arith.constant 0 : index
    %21 = vector.load %arg8[%c104, %c0_18] : memref<128x128xf32, #tpu.memory_space<vmem>>, vector<16x128xf32>
    tpu.vector_store %arg8[%c104, %c0_18], %20 {strides = array<i32>} : memref<128x128xf32, #tpu.memory_space<vmem>>, vector<16x128xf32>,
    %c6 = arith.constant 6 : index
    %c0_19 = arith.constant 0 : index
    %22 = vector.load %arg8[%c6, %c0_19] : memref<128x128xf32, #tpu.memory_space<vmem>>, vector<16x128xf32>
    %c38 = arith.constant 38 : index
    %c0_20 = arith.constant 0 : index
    %23 = vector.load %arg8[%c38, %c0_20] : memref<128x128xf32, #tpu.memory_space<vmem>>, vector<16x128xf32>
    %c70 = arith.constant 70 : index
    %c0_21 = arith.constant 0 : index
    %24 = vector.load %arg8[%c70, %c0_21] : memref<128x128xf32, #tpu.memory_space<vmem>>, vector<16x128xf32>
    %c102 = arith.constant 102 : index
    %c0_22 = arith.constant 0 : index
    %25 = vector.load %arg8[%c102, %c0_22] : memref<128x128xf32, #tpu.memory_space<vmem>>, vector<16x128xf32>
    %26 = tpu.concatenate %22, %23, %24, %25 in 0 : vector<16x128xf32>, vector<16x128xf32>, vector<16x128xf32>, vector<16x128xf32> -> vector<64x128xf32>
    %27 = arith.truncf %26 : vector<64x128xf32> to vector<64x128xbf16>
    %c0_23 = arith.constant 0 : index
    %c0_24 = arith.constant 0 : index
    %c0_25 = arith.constant 0 : index
    %28 = vector.load %arg2[%c0_23, %c0_24, %c0_25] : memref<26x128x128xbf16, #tpu.memory_space<vmem>>, vector<1x128x128xbf16>
    %29 = vector.shape_cast %28 : vector<1x128x128xbf16> to vector<128x128xbf16>
    %cst_26 = arith.constant dense<0.000000e+00> : vector<64x128xf32>
    %30 = tpu.matmul %27, %29, %cst_26 {dimension_numbers = #tpu.dot_dimension_numbers<[1], [0], [0], [1], [0, 0, 1, 1], [], []>} : vector<64x128xbf16>, vector<128x128xbf16>, vector<64x128xf32> -> vector<64x128xf32>
    %c7 = arith.constant 7 : index
    %c0_27 = arith.constant 0 : index
    %31 = vector.load %arg8[%c7, %c0_27] : memref<128x128xf32, #tpu.memory_space<vmem>>, vector<16x128xf32>
    %c39 = arith.constant 39 : index
    %c0_28 = arith.constant 0 : index
    %32 = vector.load %arg8[%c39, %c0_28] : memref<128x128xf32, #tpu.memory_space<vmem>>, vector<16x128xf32>
    %c71 = arith.constant 71 : index
    %c0_29 = arith.constant 0 : index
    %33 = vector.load %arg8[%c71, %c0_29] : memref<128x128xf32, #tpu.memory_space<vmem>>, vector<16x128xf32>
    %c103 = arith.constant 103 : index
    %c0_30 = arith.constant 0 : index
    %34 = vector.load %arg8[%c103, %c0_30] : memref<128x128xf32, #tpu.memory_space<vmem>>, vector<16x128xf32>
    %35 = tpu.concatenate %31, %32, %33, %34 in 0 : vector<16x128xf32>, vector<16x128xf32>, vector<16x128xf32>, vector<16x128xf32> -> vector<64x128xf32>
    %36 = arith.truncf %35 : vector<64x128xf32> to vector<64x128xbf16>
    %c1_31 = arith.constant 1 : index
    %c0_32 = arith.constant 0 : index
    %c0_33 = arith.constant 0 : index
    %37 = vector.load %arg2[%c1_31, %c0_32, %c0_33] : memref<26x128x128xbf16, #tpu.memory_space<vmem>>, vector<1x128x128xbf16>
    %38 = vector.shape_cast %37 : vector<1x128x128xbf16> to vector<128x128xbf16>
    %cst_34 = arith.constant dense<0.000000e+00> : vector<64x128xf32>
    %39 = tpu.matmul %36, %38, %cst_34 {dimension_numbers = #tpu.dot_dimension_numbers<[1], [0], [0], [1], [0, 0, 1, 1], [], []>} : vector<64x128xbf16>, vector<128x128xbf16>, vector<64x128xf32> -> vector<64x128xf32>
    %40 = arith.addf %30, %39 : vector<64x128xf32>
    %c8_35 = arith.constant 8 : index
    %c0_36 = arith.constant 0 : index
    %41 = vector.load %arg8[%c8_35, %c0_36] : memref<128x128xf32, #tpu.memory_space<vmem>>, vector<16x128xf32>
    %c40_37 = arith.constant 40 : index
    %c0_38 = arith.constant 0 : index
    %42 = vector.load %arg8[%c40_37, %c0_38] : memref<128x128xf32, #tpu.memory_space<vmem>>, vector<16x128xf32>
    %c72_39 = arith.constant 72 : index
    %c0_40 = arith.constant 0 : index
    %43 = vector.load %arg8[%c72_39, %c0_40] : memref<128x128xf32, #tpu.memory_space<vmem>>, vector<16x128xf32>
    %c104_41 = arith.constant 104 : index
    %c0_42 = arith.constant 0 : index
    %44 = vector.load %arg8[%c104_41, %c0_42] : memref<128x128xf32, #tpu.memory_space<vmem>>, vector<16x128xf32>
    %45 = tpu.concatenate %41, %42, %43, %44 in 0 : vector<16x128xf32>, vector<16x128xf32>, vector<16x128xf32>, vector<16x128xf32> -> vector<64x128xf32>
    %46 = arith.truncf %45 : vector<64x128xf32> to vector<64x128xbf16>
    %c2_43 = arith.constant 2 : index
    %c0_44 = arith.constant 0 : index
    %c0_45 = arith.constant 0 : index
    %47 = vector.load %arg2[%c2_43, %c0_44, %c0_45] : memref<26x128x128xbf16, #tpu.memory_space<vmem>>, vector<1x128x128xbf16>
    %48 = vector.shape_cast %47 : vector<1x128x128xbf16> to vector<128x128xbf16>
    %cst_46 = arith.constant dense<0.000000e+00> : vector<64x128xf32>
    %49 = tpu.matmul %46, %48, %cst_46 {dimension_numbers = #tpu.dot_dimension_numbers<[1], [0], [0], [1], [0, 0, 1, 1], [], []>} : vector<64x128xbf16>, vector<128x128xbf16>, vector<64x128xf32> -> vector<64x128xf32>
    %50 = arith.addf %40, %49 : vector<64x128xf32>
    %c9 = arith.constant 9 : index
    %c0_47 = arith.constant 0 : index
    %51 = vector.load %arg8[%c9, %c0_47] : memref<128x128xf32, #tpu.memory_space<vmem>>, vector<16x128xf32>
    %c41 = arith.constant 41 : index
    %c0_48 = arith.constant 0 : index
    %52 = vector.load %arg8[%c41, %c0_48] : memref<128x128xf32, #tpu.memory_space<vmem>>, vector<16x128xf32>
    %c73 = arith.constant 73 : index
    %c0_49 = arith.constant 0 : index
    %53 = vector.load %arg8[%c73, %c0_49] : memref<128x128xf32, #tpu.memory_space<vmem>>, vector<16x128xf32>
    %c105 = arith.constant 105 : index
    %c0_50 = arith.constant 0 : index
    %54 = vector.load %arg8[%c105, %c0_50] : memref<128x128xf32, #tpu.memory_space<vmem>>, vector<16x128xf32>
    %55 = tpu.concatenate %51, %52, %53, %54 in 0 : vector<16x128xf32>, vector<16x128xf32>, vector<16x128xf32>, vector<16x128xf32> -> vector<64x128xf32>
    %56 = arith.truncf %55 : vector<64x128xf32> to vector<64x128xbf16>
    %c3_51 = arith.constant 3 : index
    %c0_52 = arith.constant 0 : index
    %c0_53 = arith.constant 0 : index
    %57 = vector.load %arg2[%c3_51, %c0_52, %c0_53] : memref<26x128x128xbf16, #tpu.memory_space<vmem>>, vector<1x128x128xbf16>
    %58 = vector.shape_cast %57 : vector<1x128x128xbf16> to vector<128x128xbf16>
    %cst_54 = arith.constant dense<0.000000e+00> : vector<64x128xf32>
    %59 = tpu.matmul %56, %58, %cst_54 {dimension_numbers = #tpu.dot_dimension_numbers<[1], [0], [0], [1], [0, 0, 1, 1], [], []>} : vector<64x128xbf16>, vector<128x128xbf16>, vector<64x128xf32> -> vector<64x128xf32>
    %60 = arith.addf %50, %59 : vector<64x128xf32>
    %c10 = arith.constant 10 : index
    %c0_55 = arith.constant 0 : index
    %61 = vector.load %arg8[%c10, %c0_55] : memref<128x128xf32, #tpu.memory_space<vmem>>, vector<16x128xf32>
    %c42 = arith.constant 42 : index
    %c0_56 = arith.constant 0 : index
    %62 = vector.load %arg8[%c42, %c0_56] : memref<128x128xf32, #tpu.memory_space<vmem>>, vector<16x128xf32>
    %c74 = arith.constant 74 : index
    %c0_57 = arith.constant 0 : index
    %63 = vector.load %arg8[%c74, %c0_57] : memref<128x128xf32, #tpu.memory_space<vmem>>, vector<16x128xf32>
    %c106 = arith.constant 106 : index
    %c0_58 = arith.constant 0 : index
    %64 = vector.load %arg8[%c106, %c0_58] : memref<128x128xf32, #tpu.memory_space<vmem>>, vector<16x128xf32>
    %65 = tpu.concatenate %61, %62, %63, %64 in 0 : vector<16x128xf32>, vector<16x128xf32>, vector<16x128xf32>, vector<16x128xf32> -> vector<64x128xf32>
    %66 = arith.truncf %65 : vector<64x128xf32> to vector<64x128xbf16>
    %c4 = arith.constant 4 : index
    %c0_59 = arith.constant 0 : index
    %c0_60 = arith.constant 0 : index
    %67 = vector.load %arg2[%c4, %c0_59, %c0_60] : memref<26x128x128xbf16, #tpu.memory_space<vmem>>, vector<1x128x128xbf16>
    %68 = vector.shape_cast %67 : vector<1x128x128xbf16> to vector<128x128xbf16>
    %cst_61 = arith.constant dense<0.000000e+00> : vector<64x128xf32>
    %69 = tpu.matmul %66, %68, %cst_61 {dimension_numbers = #tpu.dot_dimension_numbers<[1], [0], [0], [1], [0, 0, 1, 1], [], []>} : vector<64x128xbf16>, vector<128x128xbf16>, vector<64x128xf32> -> vector<64x128xf32>
    %70 = arith.addf %60, %69 : vector<64x128xf32>
    %71 = vector.shape_cast %70 : vector<64x128xf32> to vector<2x32x128xf32>
    %cst_62 = arith.constant dense<0.000000e+00> : vector<2x128xf32>
    %72 = vector.multi_reduction <add>, %71, %cst_62 [1] : vector<2x32x128xf32> to vector<2x128xf32>
    %73 = vector.shape_cast %72 : vector<2x128xf32> to vector<2x1x128xf32>
    %cst_63 = arith.constant 3.125000e-02 : f32
    %74 = vector.broadcast %cst_63 : f32 to vector<2x1x128xf32>
    %75 = arith.mulf %73, %74 : vector<2x1x128xf32>
    %76 = arith.mulf %71, %71 : vector<2x32x128xf32>
    %cst_64 = arith.constant dense<0.000000e+00> : vector<2x128xf32>
    %77 = vector.multi_reduction <add>, %76, %cst_64 [1] : vector<2x32x128xf32> to vector<2x128xf32>
    %78 = vector.shape_cast %77 : vector<2x128xf32> to vector<2x1x128xf32>
    %cst_65 = arith.constant 3.125000e-02 : f32
    %79 = vector.broadcast %cst_65 : f32 to vector<2x1x128xf32>
    %80 = arith.mulf %78, %79 : vector<2x1x128xf32>
    %81 = arith.mulf %75, %75 : vector<2x1x128xf32>
    %82 = arith.subf %80, %81 : vector<2x1x128xf32>
    %cst_66 = arith.constant 0.000000e+00 : f32
    %83 = vector.broadcast %cst_66 : f32 to vector<2x1x128xf32>
    %84 = arith.maximumf %82, %83 : vector<2x1x128xf32>
    %c0_67 = arith.constant 0 : index
    %c0_68 = arith.constant 0 : index
    %85 = vector.load %arg3[%c0_67, %c0_68] : memref<6x128xf32, #tpu.memory_space<vmem>>, vector<1x128xf32>
    %c0_69 = arith.constant 0 : index
    %c0_70 = arith.constant 0 : index
    %86 = vector.load %arg4[%c0_69, %c0_70] : memref<6x128xf32, #tpu.memory_space<vmem>>, vector<1x128xf32>
    %cst_71 = arith.constant 9.99999974E-6 : f32
    %87 = vector.broadcast %cst_71 : f32 to vector<2x1x128xf32>
    %88 = arith.addf %84, %87 : vector<2x1x128xf32>
    %89 = math.rsqrt %88 : vector<2x1x128xf32>
    %90 = vector.shape_cast %85 : vector<1x128xf32> to vector<1x1x128xf32>
    %91 = vector.broadcast %90 : vector<1x1x128xf32> to vector<2x1x128xf32>
    %92 = arith.mulf %91, %89 : vector<2x1x128xf32>
    %93 = arith.mulf %75, %92 : vector<2x1x128xf32>
    %94 = vector.shape_cast %86 : vector<1x128xf32> to vector<1x1x128xf32>
    %95 = vector.broadcast %94 : vector<1x1x128xf32> to vector<2x1x128xf32>
    %96 = arith.subf %95, %93 : vector<2x1x128xf32>
    %97 = vector.broadcast %92 : vector<2x1x128xf32> to vector<2x32x128xf32>
    %98 = arith.mulf %71, %97 : vector<2x32x128xf32>
    %99 = vector.broadcast %96 : vector<2x1x128xf32> to vector<2x32x128xf32>
    %100 = arith.addf %98, %99 : vector<2x32x128xf32>
    %cst_72 = arith.constant 0.000000e+00 : f32
    %101 = vector.broadcast %cst_72 : f32 to vector<2x32x128xf32>
    %102 = arith.maximumf %100, %101 : vector<2x32x128xf32>
    %103 = vector.shape_cast %102 : vector<2x32x128xf32> to vector<64x128xf32>
    %104 = vector.extract_strided_slice %103 {offsets = [0, 0], sizes = [16, 128], strides = [1, 1]} : vector<64x128xf32> to vector<16x128xf32>
    %c8_73 = arith.constant 8 : index
    %c0_74 = arith.constant 0 : index
    %105 = vector.load %arg9[%c8_73, %c0_74] : memref<128x128xf32, #tpu.memory_space<vmem>>, vector<16x128xf32>
    tpu.vector_store %arg9[%c8_73, %c0_74], %104 {strides = array<i32>} : memref<128x128xf32, #tpu.memory_space<vmem>>, vector<16x128xf32>,
    %106 = vector.extract_strided_slice %103 {offsets = [16, 0], sizes = [16, 128], strides = [1, 1]} : vector<64x128xf32> to vector<16x128xf32>
    %c40_75 = arith.constant 40 : index
    %c0_76 = arith.constant 0 : index
    %107 = vector.load %arg9[%c40_75, %c0_76] : memref<128x128xf32, #tpu.memory_space<vmem>>, vector<16x128xf32>
    tpu.vector_store %arg9[%c40_75, %c0_76], %106 {strides = array<i32>} : memref<128x128xf32, #tpu.memory_space<vmem>>, vector<16x128xf32>,
    %108 = vector.extract_strided_slice %103 {offsets = [32, 0], sizes = [16, 128], strides = [1, 1]} : vector<64x128xf32> to vector<16x128xf32>
    %c72_77 = arith.constant 72 : index
    %c0_78 = arith.constant 0 : index
    %109 = vector.load %arg9[%c72_77, %c0_78] : memref<128x128xf32, #tpu.memory_space<vmem>>, vector<16x128xf32>
    tpu.vector_store %arg9[%c72_77, %c0_78], %108 {strides = array<i32>} : memref<128x128xf32, #tpu.memory_space<vmem>>, vector<16x128xf32>,
    %110 = vector.extract_strided_slice %103 {offsets = [48, 0], sizes = [16, 128], strides = [1, 1]} : vector<64x128xf32> to vector<16x128xf32>
    %c104_79 = arith.constant 104 : index
    %c0_80 = arith.constant 0 : index
    %111 = vector.load %arg9[%c104_79, %c0_80] : memref<128x128xf32, #tpu.memory_space<vmem>>, vector<16x128xf32>
    tpu.vector_store %arg9[%c104_79, %c0_80], %110 {strides = array<i32>} : memref<128x128xf32, #tpu.memory_space<vmem>>, vector<16x128xf32>,
    %c6_81 = arith.constant 6 : index
    %c0_82 = arith.constant 0 : index
    %112 = vector.load %arg9[%c6_81, %c0_82] : memref<128x128xf32, #tpu.memory_space<vmem>>, vector<16x128xf32>
    %c38_83 = arith.constant 38 : index
    %c0_84 = arith.constant 0 : index
    %113 = vector.load %arg9[%c38_83, %c0_84] : memref<128x128xf32, #tpu.memory_space<vmem>>, vector<16x128xf32>
    %c70_85 = arith.constant 70 : index
    %c0_86 = arith.constant 0 : index
    %114 = vector.load %arg9[%c70_85, %c0_86] : memref<128x128xf32, #tpu.memory_space<vmem>>, vector<16x128xf32>
    %c102_87 = arith.constant 102 : index
    %c0_88 = arith.constant 0 : index
    %115 = vector.load %arg9[%c102_87, %c0_88] : memref<128x128xf32, #tpu.memory_space<vmem>>, vector<16x128xf32>
    %116 = tpu.concatenate %112, %113, %114, %115 in 0 : vector<16x128xf32>, vector<16x128xf32>, vector<16x128xf32>, vector<16x128xf32> -> vector<64x128xf32>
    %117 = arith.truncf %116 : vector<64x128xf32> to vector<64x128xbf16>
    %c5 = arith.constant 5 : index
    %c0_89 = arith.constant 0 : index
    %c0_90 = arith.constant 0 : index
    %118 = vector.load %arg2[%c5, %c0_89, %c0_90] : memref<26x128x128xbf16, #tpu.memory_space<vmem>>, vector<1x128x128xbf16>
    %119 = vector.shape_cast %118 : vector<1x128x128xbf16> to vector<128x128xbf16>
    %cst_91 = arith.constant dense<0.000000e+00> : vector<64x128xf32>
    %120 = tpu.matmul %117, %119, %cst_91 {dimension_numbers = #tpu.dot_dimension_numbers<[1], [0], [0], [1], [0, 0, 1, 1], [], []>} : vector<64x128xbf16>, vector<128x128xbf16>, vector<64x128xf32> -> vector<64x128xf32>
    %c7_92 = arith.constant 7 : index
    %c0_93 = arith.constant 0 : index
    %121 = vector.load %arg9[%c7_92, %c0_93] : memref<128x128xf32, #tpu.memory_space<vmem>>, vector<16x128xf32>
    %c39_94 = arith.constant 39 : index
    %c0_95 = arith.constant 0 : index
    %122 = vector.load %arg9[%c39_94, %c0_95] : memref<128x128xf32, #tpu.memory_space<vmem>>, vector<16x128xf32>
    %c71_96 = arith.constant 71 : index
    %c0_97 = arith.constant 0 : index
    %123 = vector.load %arg9[%c71_96, %c0_97] : memref<128x128xf32, #tpu.memory_space<vmem>>, vector<16x128xf32>
    %c103_98 = arith.constant 103 : index
    %c0_99 = arith.constant 0 : index
    %124 = vector.load %arg9[%c103_98, %c0_99] : memref<128x128xf32, #tpu.memory_space<vmem>>, vector<16x128xf32>
    %125 = tpu.concatenate %121, %122, %123, %124 in 0 : vector<16x128xf32>, vector<16x128xf32>, vector<16x128xf32>, vector<16x128xf32> -> vector<64x128xf32>
    %126 = arith.truncf %125 : vector<64x128xf32> to vector<64x128xbf16>
    %c6_100 = arith.constant 6 : index
    %c0_101 = arith.constant 0 : index
    %c0_102 = arith.constant 0 : index
    %127 = vector.load %arg2[%c6_100, %c0_101, %c0_102] : memref<26x128x128xbf16, #tpu.memory_space<vmem>>, vector<1x128x128xbf16>
    %128 = vector.shape_cast %127 : vector<1x128x128xbf16> to vector<128x128xbf16>
    %cst_103 = arith.constant dense<0.000000e+00> : vector<64x128xf32>
    %129 = tpu.matmul %126, %128, %cst_103 {dimension_numbers = #tpu.dot_dimension_numbers<[1], [0], [0], [1], [0, 0, 1, 1], [], []>} : vector<64x128xbf16>, vector<128x128xbf16>, vector<64x128xf32> -> vector<64x128xf32>
    %130 = arith.addf %120, %129 : vector<64x128xf32>
    %c8_104 = arith.constant 8 : index
    %c0_105 = arith.constant 0 : index
    %131 = vector.load %arg9[%c8_104, %c0_105] : memref<128x128xf32, #tpu.memory_space<vmem>>, vector<16x128xf32>
    %c40_106 = arith.constant 40 : index
    %c0_107 = arith.constant 0 : index
    %132 = vector.load %arg9[%c40_106, %c0_107] : memref<128x128xf32, #tpu.memory_space<vmem>>, vector<16x128xf32>
    %c72_108 = arith.constant 72 : index
    %c0_109 = arith.constant 0 : index
    %133 = vector.load %arg9[%c72_108, %c0_109] : memref<128x128xf32, #tpu.memory_space<vmem>>, vector<16x128xf32>
    %c104_110 = arith.constant 104 : index
    %c0_111 = arith.constant 0 : index
    %134 = vector.load %arg9[%c104_110, %c0_111] : memref<128x128xf32, #tpu.memory_space<vmem>>, vector<16x128xf32>
    %135 = tpu.concatenate %131, %132, %133, %134 in 0 : vector<16x128xf32>, vector<16x128xf32>, vector<16x128xf32>, vector<16x128xf32> -> vector<64x128xf32>
    %136 = arith.truncf %135 : vector<64x128xf32> to vector<64x128xbf16>
    %c7_112 = arith.constant 7 : index
    %c0_113 = arith.constant 0 : index
    %c0_114 = arith.constant 0 : index
    %137 = vector.load %arg2[%c7_112, %c0_113, %c0_114] : memref<26x128x128xbf16, #tpu.memory_space<vmem>>, vector<1x128x128xbf16>
    %138 = vector.shape_cast %137 : vector<1x128x128xbf16> to vector<128x128xbf16>
    %cst_115 = arith.constant dense<0.000000e+00> : vector<64x128xf32>
    %139 = tpu.matmul %136, %138, %cst_115 {dimension_numbers = #tpu.dot_dimension_numbers<[1], [0], [0], [1], [0, 0, 1, 1], [], []>} : vector<64x128xbf16>, vector<128x128xbf16>, vector<64x128xf32> -> vector<64x128xf32>
    %140 = arith.addf %130, %139 : vector<64x128xf32>
    %c9_116 = arith.constant 9 : index
    %c0_117 = arith.constant 0 : index
    %141 = vector.load %arg9[%c9_116, %c0_117] : memref<128x128xf32, #tpu.memory_space<vmem>>, vector<16x128xf32>
    %c41_118 = arith.constant 41 : index
    %c0_119 = arith.constant 0 : index
    %142 = vector.load %arg9[%c41_118, %c0_119] : memref<128x128xf32, #tpu.memory_space<vmem>>, vector<16x128xf32>
    %c73_120 = arith.constant 73 : index
    %c0_121 = arith.constant 0 : index
    %143 = vector.load %arg9[%c73_120, %c0_121] : memref<128x128xf32, #tpu.memory_space<vmem>>, vector<16x128xf32>
    %c105_122 = arith.constant 105 : index
    %c0_123 = arith.constant 0 : index
    %144 = vector.load %arg9[%c105_122, %c0_123] : memref<128x128xf32, #tpu.memory_space<vmem>>, vector<16x128xf32>
    %145 = tpu.concatenate %141, %142, %143, %144 in 0 : vector<16x128xf32>, vector<16x128xf32>, vector<16x128xf32>, vector<16x128xf32> -> vector<64x128xf32>
    %146 = arith.truncf %145 : vector<64x128xf32> to vector<64x128xbf16>
    %c8_124 = arith.constant 8 : index
    %c0_125 = arith.constant 0 : index
    %c0_126 = arith.constant 0 : index
    %147 = vector.load %arg2[%c8_124, %c0_125, %c0_126] : memref<26x128x128xbf16, #tpu.memory_space<vmem>>, vector<1x128x128xbf16>
    %148 = vector.shape_cast %147 : vector<1x128x128xbf16> to vector<128x128xbf16>
    %cst_127 = arith.constant dense<0.000000e+00> : vector<64x128xf32>
    %149 = tpu.matmul %146, %148, %cst_127 {dimension_numbers = #tpu.dot_dimension_numbers<[1], [0], [0], [1], [0, 0, 1, 1], [], []>} : vector<64x128xbf16>, vector<128x128xbf16>, vector<64x128xf32> -> vector<64x128xf32>
    %150 = arith.addf %140, %149 : vector<64x128xf32>
    %c10_128 = arith.constant 10 : index
    %c0_129 = arith.constant 0 : index
    %151 = vector.load %arg9[%c10_128, %c0_129] : memref<128x128xf32, #tpu.memory_space<vmem>>, vector<16x128xf32>
    %c42_130 = arith.constant 42 : index
    %c0_131 = arith.constant 0 : index
    %152 = vector.load %arg9[%c42_130, %c0_131] : memref<128x128xf32, #tpu.memory_space<vmem>>, vector<16x128xf32>
    %c74_132 = arith.constant 74 : index
    %c0_133 = arith.constant 0 : index
    %153 = vector.load %arg9[%c74_132, %c0_133] : memref<128x128xf32, #tpu.memory_space<vmem>>, vector<16x128xf32>
    %c106_134 = arith.constant 106 : index
    %c0_135 = arith.constant 0 : index
    %154 = vector.load %arg9[%c106_134, %c0_135] : memref<128x128xf32, #tpu.memory_space<vmem>>, vector<16x128xf32>
    %155 = tpu.concatenate %151, %152, %153, %154 in 0 : vector<16x128xf32>, vector<16x128xf32>, vector<16x128xf32>, vector<16x128xf32> -> vector<64x128xf32>
    %156 = arith.truncf %155 : vector<64x128xf32> to vector<64x128xbf16>
    %c9_136 = arith.constant 9 : index
    %c0_137 = arith.constant 0 : index
    %c0_138 = arith.constant 0 : index
    %157 = vector.load %arg2[%c9_136, %c0_137, %c0_138] : memref<26x128x128xbf16, #tpu.memory_space<vmem>>, vector<1x128x128xbf16>
    %158 = vector.shape_cast %157 : vector<1x128x128xbf16> to vector<128x128xbf16>
    %cst_139 = arith.constant dense<0.000000e+00> : vector<64x128xf32>
    %159 = tpu.matmul %156, %158, %cst_139 {dimension_numbers = #tpu.dot_dimension_numbers<[1], [0], [0], [1], [0, 0, 1, 1], [], []>} : vector<64x128xbf16>, vector<128x128xbf16>, vector<64x128xf32> -> vector<64x128xf32>
    %160 = arith.addf %150, %159 : vector<64x128xf32>
    %161 = vector.shape_cast %160 : vector<64x128xf32> to vector<2x32x128xf32>
    %cst_140 = arith.constant dense<0.000000e+00> : vector<2x128xf32>
    %162 = vector.multi_reduction <add>, %161, %cst_140 [1] : vector<2x32x128xf32> to vector<2x128xf32>
    %163 = vector.shape_cast %162 : vector<2x128xf32> to vector<2x1x128xf32>
    %cst_141 = arith.constant 3.125000e-02 : f32
    %164 = vector.broadcast %cst_141 : f32 to vector<2x1x128xf32>
    %165 = arith.mulf %163, %164 : vector<2x1x128xf32>
    %166 = arith.mulf %161, %161 : vector<2x32x128xf32>
    %cst_142 = arith.constant dense<0.000000e+00> : vector<2x128xf32>
    %167 = vector.multi_reduction <add>, %166, %cst_142 [1] : vector<2x32x128xf32> to vector<2x128xf32>
    %168 = vector.shape_cast %167 : vector<2x128xf32> to vector<2x1x128xf32>
    %cst_143 = arith.constant 3.125000e-02 : f32
    %169 = vector.broadcast %cst_143 : f32 to vector<2x1x128xf32>
    %170 = arith.mulf %168, %169 : vector<2x1x128xf32>
    %171 = arith.mulf %165, %165 : vector<2x1x128xf32>
    %172 = arith.subf %170, %171 : vector<2x1x128xf32>
    %cst_144 = arith.constant 0.000000e+00 : f32
    %173 = vector.broadcast %cst_144 : f32 to vector<2x1x128xf32>
    %174 = arith.maximumf %172, %173 : vector<2x1x128xf32>
    %c1_145 = arith.constant 1 : index
    %c0_146 = arith.constant 0 : index
    %175 = vector.load %arg3[%c1_145, %c0_146] : memref<6x128xf32, #tpu.memory_space<vmem>>, vector<1x128xf32>
    %c1_147 = arith.constant 1 : index
    %c0_148 = arith.constant 0 : index
    %176 = vector.load %arg4[%c1_147, %c0_148] : memref<6x128xf32, #tpu.memory_space<vmem>>, vector<1x128xf32>
    %cst_149 = arith.constant 9.99999974E-6 : f32
    %177 = vector.broadcast %cst_149 : f32 to vector<2x1x128xf32>
    %178 = arith.addf %174, %177 : vector<2x1x128xf32>
    %179 = math.rsqrt %178 : vector<2x1x128xf32>
    %180 = vector.shape_cast %175 : vector<1x128xf32> to vector<1x1x128xf32>
    %181 = vector.broadcast %180 : vector<1x1x128xf32> to vector<2x1x128xf32>
    %182 = arith.mulf %181, %179 : vector<2x1x128xf32>
    %183 = arith.mulf %165, %182 : vector<2x1x128xf32>
    %184 = vector.shape_cast %176 : vector<1x128xf32> to vector<1x1x128xf32>
    %185 = vector.broadcast %184 : vector<1x1x128xf32> to vector<2x1x128xf32>
    %186 = arith.subf %185, %183 : vector<2x1x128xf32>
    %187 = vector.broadcast %182 : vector<2x1x128xf32> to vector<2x32x128xf32>
    %188 = arith.mulf %161, %187 : vector<2x32x128xf32>
    %189 = vector.broadcast %186 : vector<2x1x128xf32> to vector<2x32x128xf32>
    %190 = arith.addf %188, %189 : vector<2x32x128xf32>
    %cst_150 = arith.constant 0.000000e+00 : f32
    %191 = vector.broadcast %cst_150 : f32 to vector<2x32x128xf32>
    %192 = arith.maximumf %190, %191 : vector<2x32x128xf32>
    %193 = vector.shape_cast %192 : vector<2x32x128xf32> to vector<64x128xf32>
    %c8_151 = arith.constant 8 : index
    %c0_152 = arith.constant 0 : index
    %194 = vector.load %arg9[%c8_151, %c0_152] : memref<128x128xf32, #tpu.memory_space<vmem>>, vector<16x128xf32>
    %c40_153 = arith.constant 40 : index
    %c0_154 = arith.constant 0 : index
    %195 = vector.load %arg9[%c40_153, %c0_154] : memref<128x128xf32, #tpu.memory_space<vmem>>, vector<16x128xf32>
    %c72_155 = arith.constant 72 : index
    %c0_156 = arith.constant 0 : index
    %196 = vector.load %arg9[%c72_155, %c0_156] : memref<128x128xf32, #tpu.memory_space<vmem>>, vector<16x128xf32>
    %c104_157 = arith.constant 104 : index
    %c0_158 = arith.constant 0 : index
    %197 = vector.load %arg9[%c104_157, %c0_158] : memref<128x128xf32, #tpu.memory_space<vmem>>, vector<16x128xf32>
    %198 = tpu.concatenate %194, %195, %196, %197 in 0 : vector<16x128xf32>, vector<16x128xf32>, vector<16x128xf32>, vector<16x128xf32> -> vector<64x128xf32>
    %199 = vector.extract_strided_slice %193 {offsets = [0, 0], sizes = [16, 128], strides = [1, 1]} : vector<64x128xf32> to vector<16x128xf32>
    %c8_159 = arith.constant 8 : index
    %c0_160 = arith.constant 0 : index
    %200 = vector.load %arg8[%c8_159, %c0_160] : memref<128x128xf32, #tpu.memory_space<vmem>>, vector<16x128xf32>
    tpu.vector_store %arg8[%c8_159, %c0_160], %199 {strides = array<i32>} : memref<128x128xf32, #tpu.memory_space<vmem>>, vector<16x128xf32>,
    %201 = vector.extract_strided_slice %193 {offsets = [16, 0], sizes = [16, 128], strides = [1, 1]} : vector<64x128xf32> to vector<16x128xf32>
    %c40_161 = arith.constant 40 : index
    %c0_162 = arith.constant 0 : index
    %202 = vector.load %arg8[%c40_161, %c0_162] : memref<128x128xf32, #tpu.memory_space<vmem>>, vector<16x128xf32>
    tpu.vector_store %arg8[%c40_161, %c0_162], %201 {strides = array<i32>} : memref<128x128xf32, #tpu.memory_space<vmem>>, vector<16x128xf32>,
    %203 = vector.extract_strided_slice %193 {offsets = [32, 0], sizes = [16, 128], strides = [1, 1]} : vector<64x128xf32> to vector<16x128xf32>
    %c72_163 = arith.constant 72 : index
    %c0_164 = arith.constant 0 : index
    %204 = vector.load %arg8[%c72_163, %c0_164] : memref<128x128xf32, #tpu.memory_space<vmem>>, vector<16x128xf32>
    tpu.vector_store %arg8[%c72_163, %c0_164], %203 {strides = array<i32>} : memref<128x128xf32, #tpu.memory_space<vmem>>, vector<16x128xf32>,
    %205 = vector.extract_strided_slice %193 {offsets = [48, 0], sizes = [16, 128], strides = [1, 1]} : vector<64x128xf32> to vector<16x128xf32>
    %c104_165 = arith.constant 104 : index
    %c0_166 = arith.constant 0 : index
    %206 = vector.load %arg8[%c104_165, %c0_166] : memref<128x128xf32, #tpu.memory_space<vmem>>, vector<16x128xf32>
    tpu.vector_store %arg8[%c104_165, %c0_166], %205 {strides = array<i32>} : memref<128x128xf32, #tpu.memory_space<vmem>>, vector<16x128xf32>,
    %c6_167 = arith.constant 6 : index
    %c0_168 = arith.constant 0 : index
    %207 = vector.load %arg8[%c6_167, %c0_168] : memref<128x128xf32, #tpu.memory_space<vmem>>, vector<16x128xf32>
    %c38_169 = arith.constant 38 : index
    %c0_170 = arith.constant 0 : index
    %208 = vector.load %arg8[%c38_169, %c0_170] : memref<128x128xf32, #tpu.memory_space<vmem>>, vector<16x128xf32>
    %c70_171 = arith.constant 70 : index
    %c0_172 = arith.constant 0 : index
    %209 = vector.load %arg8[%c70_171, %c0_172] : memref<128x128xf32, #tpu.memory_space<vmem>>, vector<16x128xf32>
    %c102_173 = arith.constant 102 : index
    %c0_174 = arith.constant 0 : index
    %210 = vector.load %arg8[%c102_173, %c0_174] : memref<128x128xf32, #tpu.memory_space<vmem>>, vector<16x128xf32>
    %211 = tpu.concatenate %207, %208, %209, %210 in 0 : vector<16x128xf32>, vector<16x128xf32>, vector<16x128xf32>, vector<16x128xf32> -> vector<64x128xf32>
    %212 = arith.truncf %211 : vector<64x128xf32> to vector<64x128xbf16>
    %c10_175 = arith.constant 10 : index
    %c0_176 = arith.constant 0 : index
    %c0_177 = arith.constant 0 : index
    %213 = vector.load %arg2[%c10_175, %c0_176, %c0_177] : memref<26x128x128xbf16, #tpu.memory_space<vmem>>, vector<1x128x128xbf16>
    %214 = vector.shape_cast %213 : vector<1x128x128xbf16> to vector<128x128xbf16>
    %cst_178 = arith.constant dense<0.000000e+00> : vector<64x128xf32>
    %215 = tpu.matmul %212, %214, %cst_178 {dimension_numbers = #tpu.dot_dimension_numbers<[1], [0], [0], [1], [0, 0, 1, 1], [], []>} : vector<64x128xbf16>, vector<128x128xbf16>, vector<64x128xf32> -> vector<64x128xf32>
    %c7_179 = arith.constant 7 : index
    %c0_180 = arith.constant 0 : index
    %216 = vector.load %arg8[%c7_179, %c0_180] : memref<128x128xf32, #tpu.memory_space<vmem>>, vector<16x128xf32>
    %c39_181 = arith.constant 39 : index
    %c0_182 = arith.constant 0 : index
    %217 = vector.load %arg8[%c39_181, %c0_182] : memref<128x128xf32, #tpu.memory_space<vmem>>, vector<16x128xf32>
    %c71_183 = arith.constant 71 : index
    %c0_184 = arith.constant 0 : index
    %218 = vector.load %arg8[%c71_183, %c0_184] : memref<128x128xf32, #tpu.memory_space<vmem>>, vector<16x128xf32>
    %c103_185 = arith.constant 103 : index
    %c0_186 = arith.constant 0 : index
    %219 = vector.load %arg8[%c103_185, %c0_186] : memref<128x128xf32, #tpu.memory_space<vmem>>, vector<16x128xf32>
    %220 = tpu.concatenate %216, %217, %218, %219 in 0 : vector<16x128xf32>, vector<16x128xf32>, vector<16x128xf32>, vector<16x128xf32> -> vector<64x128xf32>
    %221 = arith.truncf %220 : vector<64x128xf32> to vector<64x128xbf16>
    %c11 = arith.constant 11 : index
    %c0_187 = arith.constant 0 : index
    %c0_188 = arith.constant 0 : index
    %222 = vector.load %arg2[%c11, %c0_187, %c0_188] : memref<26x128x128xbf16, #tpu.memory_space<vmem>>, vector<1x128x128xbf16>
    %223 = vector.shape_cast %222 : vector<1x128x128xbf16> to vector<128x128xbf16>
    %cst_189 = arith.constant dense<0.000000e+00> : vector<64x128xf32>
    %224 = tpu.matmul %221, %223, %cst_189 {dimension_numbers = #tpu.dot_dimension_numbers<[1], [0], [0], [1], [0, 0, 1, 1], [], []>} : vector<64x128xbf16>, vector<128x128xbf16>, vector<64x128xf32> -> vector<64x128xf32>
    %225 = arith.addf %215, %224 : vector<64x128xf32>
    %c8_190 = arith.constant 8 : index
    %c0_191 = arith.constant 0 : index
    %226 = vector.load %arg8[%c8_190, %c0_191] : memref<128x128xf32, #tpu.memory_space<vmem>>, vector<16x128xf32>
    %c40_192 = arith.constant 40 : index
    %c0_193 = arith.constant 0 : index
    %227 = vector.load %arg8[%c40_192, %c0_193] : memref<128x128xf32, #tpu.memory_space<vmem>>, vector<16x128xf32>
    %c72_194 = arith.constant 72 : index
    %c0_195 = arith.constant 0 : index
    %228 = vector.load %arg8[%c72_194, %c0_195] : memref<128x128xf32, #tpu.memory_space<vmem>>, vector<16x128xf32>
    %c104_196 = arith.constant 104 : index
    %c0_197 = arith.constant 0 : index
    %229 = vector.load %arg8[%c104_196, %c0_197] : memref<128x128xf32, #tpu.memory_space<vmem>>, vector<16x128xf32>
    %230 = tpu.concatenate %226, %227, %228, %229 in 0 : vector<16x128xf32>, vector<16x128xf32>, vector<16x128xf32>, vector<16x128xf32> -> vector<64x128xf32>
    %231 = arith.truncf %230 : vector<64x128xf32> to vector<64x128xbf16>
    %c12 = arith.constant 12 : index
    %c0_198 = arith.constant 0 : index
    %c0_199 = arith.constant 0 : index
    %232 = vector.load %arg2[%c12, %c0_198, %c0_199] : memref<26x128x128xbf16, #tpu.memory_space<vmem>>, vector<1x128x128xbf16>
    %233 = vector.shape_cast %232 : vector<1x128x128xbf16> to vector<128x128xbf16>
    %cst_200 = arith.constant dense<0.000000e+00> : vector<64x128xf32>
    %234 = tpu.matmul %231, %233, %cst_200 {dimension_numbers = #tpu.dot_dimension_numbers<[1], [0], [0], [1], [0, 0, 1, 1], [], []>} : vector<64x128xbf16>, vector<128x128xbf16>, vector<64x128xf32> -> vector<64x128xf32>
    %235 = arith.addf %225, %234 : vector<64x128xf32>
    %c9_201 = arith.constant 9 : index
    %c0_202 = arith.constant 0 : index
    %236 = vector.load %arg8[%c9_201, %c0_202] : memref<128x128xf32, #tpu.memory_space<vmem>>, vector<16x128xf32>
    %c41_203 = arith.constant 41 : index
    %c0_204 = arith.constant 0 : index
    %237 = vector.load %arg8[%c41_203, %c0_204] : memref<128x128xf32, #tpu.memory_space<vmem>>, vector<16x128xf32>
    %c73_205 = arith.constant 73 : index
    %c0_206 = arith.constant 0 : index
    %238 = vector.load %arg8[%c73_205, %c0_206] : memref<128x128xf32, #tpu.memory_space<vmem>>, vector<16x128xf32>
    %c105_207 = arith.constant 105 : index
    %c0_208 = arith.constant 0 : index
    %239 = vector.load %arg8[%c105_207, %c0_208] : memref<128x128xf32, #tpu.memory_space<vmem>>, vector<16x128xf32>
    %240 = tpu.concatenate %236, %237, %238, %239 in 0 : vector<16x128xf32>, vector<16x128xf32>, vector<16x128xf32>, vector<16x128xf32> -> vector<64x128xf32>
    %241 = arith.truncf %240 : vector<64x128xf32> to vector<64x128xbf16>
    %c13 = arith.constant 13 : index
    %c0_209 = arith.constant 0 : index
    %c0_210 = arith.constant 0 : index
    %242 = vector.load %arg2[%c13, %c0_209, %c0_210] : memref<26x128x128xbf16, #tpu.memory_space<vmem>>, vector<1x128x128xbf16>
    %243 = vector.shape_cast %242 : vector<1x128x128xbf16> to vector<128x128xbf16>
    %cst_211 = arith.constant dense<0.000000e+00> : vector<64x128xf32>
    %244 = tpu.matmul %241, %243, %cst_211 {dimension_numbers = #tpu.dot_dimension_numbers<[1], [0], [0], [1], [0, 0, 1, 1], [], []>} : vector<64x128xbf16>, vector<128x128xbf16>, vector<64x128xf32> -> vector<64x128xf32>
    %245 = arith.addf %235, %244 : vector<64x128xf32>
    %c10_212 = arith.constant 10 : index
    %c0_213 = arith.constant 0 : index
    %246 = vector.load %arg8[%c10_212, %c0_213] : memref<128x128xf32, #tpu.memory_space<vmem>>, vector<16x128xf32>
    %c42_214 = arith.constant 42 : index
    %c0_215 = arith.constant 0 : index
    %247 = vector.load %arg8[%c42_214, %c0_215] : memref<128x128xf32, #tpu.memory_space<vmem>>, vector<16x128xf32>
    %c74_216 = arith.constant 74 : index
    %c0_217 = arith.constant 0 : index
    %248 = vector.load %arg8[%c74_216, %c0_217] : memref<128x128xf32, #tpu.memory_space<vmem>>, vector<16x128xf32>
    %c106_218 = arith.constant 106 : index
    %c0_219 = arith.constant 0 : index
    %249 = vector.load %arg8[%c106_218, %c0_219] : memref<128x128xf32, #tpu.memory_space<vmem>>, vector<16x128xf32>
    %250 = tpu.concatenate %246, %247, %248, %249 in 0 : vector<16x128xf32>, vector<16x128xf32>, vector<16x128xf32>, vector<16x128xf32> -> vector<64x128xf32>
    %251 = arith.truncf %250 : vector<64x128xf32> to vector<64x128xbf16>
    %c14 = arith.constant 14 : index
    %c0_220 = arith.constant 0 : index
    %c0_221 = arith.constant 0 : index
    %252 = vector.load %arg2[%c14, %c0_220, %c0_221] : memref<26x128x128xbf16, #tpu.memory_space<vmem>>, vector<1x128x128xbf16>
    %253 = vector.shape_cast %252 : vector<1x128x128xbf16> to vector<128x128xbf16>
    %cst_222 = arith.constant dense<0.000000e+00> : vector<64x128xf32>
    %254 = tpu.matmul %251, %253, %cst_222 {dimension_numbers = #tpu.dot_dimension_numbers<[1], [0], [0], [1], [0, 0, 1, 1], [], []>} : vector<64x128xbf16>, vector<128x128xbf16>, vector<64x128xf32> -> vector<64x128xf32>
    %255 = arith.addf %245, %254 : vector<64x128xf32>
    %256 = vector.shape_cast %255 : vector<64x128xf32> to vector<2x32x128xf32>
    %cst_223 = arith.constant dense<0.000000e+00> : vector<2x128xf32>
    %257 = vector.multi_reduction <add>, %256, %cst_223 [1] : vector<2x32x128xf32> to vector<2x128xf32>
    %258 = vector.shape_cast %257 : vector<2x128xf32> to vector<2x1x128xf32>
    %cst_224 = arith.constant 3.125000e-02 : f32
    %259 = vector.broadcast %cst_224 : f32 to vector<2x1x128xf32>
    %260 = arith.mulf %258, %259 : vector<2x1x128xf32>
    %261 = arith.mulf %256, %256 : vector<2x32x128xf32>
    %cst_225 = arith.constant dense<0.000000e+00> : vector<2x128xf32>
    %262 = vector.multi_reduction <add>, %261, %cst_225 [1] : vector<2x32x128xf32> to vector<2x128xf32>
    %263 = vector.shape_cast %262 : vector<2x128xf32> to vector<2x1x128xf32>
    %cst_226 = arith.constant 3.125000e-02 : f32
    %264 = vector.broadcast %cst_226 : f32 to vector<2x1x128xf32>
    %265 = arith.mulf %263, %264 : vector<2x1x128xf32>
    %266 = arith.mulf %260, %260 : vector<2x1x128xf32>
    %267 = arith.subf %265, %266 : vector<2x1x128xf32>
    %cst_227 = arith.constant 0.000000e+00 : f32
    %268 = vector.broadcast %cst_227 : f32 to vector<2x1x128xf32>
    %269 = arith.maximumf %267, %268 : vector<2x1x128xf32>
    %c2_228 = arith.constant 2 : index
    %c0_229 = arith.constant 0 : index
    %270 = vector.load %arg3[%c2_228, %c0_229] : memref<6x128xf32, #tpu.memory_space<vmem>>, vector<1x128xf32>
    %c2_230 = arith.constant 2 : index
    %c0_231 = arith.constant 0 : index
    %271 = vector.load %arg4[%c2_230, %c0_231] : memref<6x128xf32, #tpu.memory_space<vmem>>, vector<1x128xf32>
    %cst_232 = arith.constant 9.99999974E-6 : f32
    %272 = vector.broadcast %cst_232 : f32 to vector<2x1x128xf32>
    %273 = arith.addf %269, %272 : vector<2x1x128xf32>
    %274 = math.rsqrt %273 : vector<2x1x128xf32>
    %275 = vector.shape_cast %270 : vector<1x128xf32> to vector<1x1x128xf32>
    %276 = vector.broadcast %275 : vector<1x1x128xf32> to vector<2x1x128xf32>
    %277 = arith.mulf %276, %274 : vector<2x1x128xf32>
    %278 = arith.mulf %260, %277 : vector<2x1x128xf32>
    %279 = vector.shape_cast %271 : vector<1x128xf32> to vector<1x1x128xf32>
    %280 = vector.broadcast %279 : vector<1x1x128xf32> to vector<2x1x128xf32>
    %281 = arith.subf %280, %278 : vector<2x1x128xf32>
    %282 = vector.broadcast %277 : vector<2x1x128xf32> to vector<2x32x128xf32>
    %283 = arith.mulf %256, %282 : vector<2x32x128xf32>
    %284 = vector.broadcast %281 : vector<2x1x128xf32> to vector<2x32x128xf32>
    %285 = arith.addf %283, %284 : vector<2x32x128xf32>
    %286 = vector.shape_cast %198 : vector<64x128xf32> to vector<2x32x128xf32>
    %287 = arith.addf %285, %286 : vector<2x32x128xf32>
    %cst_233 = arith.constant 0.000000e+00 : f32
    %288 = vector.broadcast %cst_233 : f32 to vector<2x32x128xf32>
    %289 = arith.maximumf %287, %288 : vector<2x32x128xf32>
    %290 = vector.shape_cast %289 : vector<2x32x128xf32> to vector<64x128xf32>
    %291 = vector.extract_strided_slice %290 {offsets = [0, 0], sizes = [16, 128], strides = [1, 1]} : vector<64x128xf32> to vector<16x128xf32>
    %c8_234 = arith.constant 8 : index
    %c0_235 = arith.constant 0 : index
    %292 = vector.load %arg9[%c8_234, %c0_235] : memref<128x128xf32, #tpu.memory_space<vmem>>, vector<16x128xf32>
    tpu.vector_store %arg9[%c8_234, %c0_235], %291 {strides = array<i32>} : memref<128x128xf32, #tpu.memory_space<vmem>>, vector<16x128xf32>,
    %293 = vector.extract_strided_slice %290 {offsets = [16, 0], sizes = [16, 128], strides = [1, 1]} : vector<64x128xf32> to vector<16x128xf32>
    %c40_236 = arith.constant 40 : index
    %c0_237 = arith.constant 0 : index
    %294 = vector.load %arg9[%c40_236, %c0_237] : memref<128x128xf32, #tpu.memory_space<vmem>>, vector<16x128xf32>
    tpu.vector_store %arg9[%c40_236, %c0_237], %293 {strides = array<i32>} : memref<128x128xf32, #tpu.memory_space<vmem>>, vector<16x128xf32>,
    %295 = vector.extract_strided_slice %290 {offsets = [32, 0], sizes = [16, 128], strides = [1, 1]} : vector<64x128xf32> to vector<16x128xf32>
    %c72_238 = arith.constant 72 : index
    %c0_239 = arith.constant 0 : index
    %296 = vector.load %arg9[%c72_238, %c0_239] : memref<128x128xf32, #tpu.memory_space<vmem>>, vector<16x128xf32>
    tpu.vector_store %arg9[%c72_238, %c0_239], %295 {strides = array<i32>} : memref<128x128xf32, #tpu.memory_space<vmem>>, vector<16x128xf32>,
    %297 = vector.extract_strided_slice %290 {offsets = [48, 0], sizes = [16, 128], strides = [1, 1]} : vector<64x128xf32> to vector<16x128xf32>
    %c104_240 = arith.constant 104 : index
    %c0_241 = arith.constant 0 : index
    %298 = vector.load %arg9[%c104_240, %c0_241] : memref<128x128xf32, #tpu.memory_space<vmem>>, vector<16x128xf32>
    tpu.vector_store %arg9[%c104_240, %c0_241], %297 {strides = array<i32>} : memref<128x128xf32, #tpu.memory_space<vmem>>, vector<16x128xf32>,
    %c6_242 = arith.constant 6 : index
    %c0_243 = arith.constant 0 : index
    %299 = tpu.strided_load %arg9[%c6_242, %c0_243] {strides = array<i32: 2, 1>} : memref<128x128xf32, #tpu.memory_space<vmem>>, vector<8x128xf32>
    %c38_244 = arith.constant 38 : index
    %c0_245 = arith.constant 0 : index
    %300 = tpu.strided_load %arg9[%c38_244, %c0_245] {strides = array<i32: 2, 1>} : memref<128x128xf32, #tpu.memory_space<vmem>>, vector<8x128xf32>
    %c70_246 = arith.constant 70 : index
    %c0_247 = arith.constant 0 : index
    %301 = tpu.strided_load %arg9[%c70_246, %c0_247] {strides = array<i32: 2, 1>} : memref<128x128xf32, #tpu.memory_space<vmem>>, vector<8x128xf32>
    %c102_248 = arith.constant 102 : index
    %c0_249 = arith.constant 0 : index
    %302 = tpu.strided_load %arg9[%c102_248, %c0_249] {strides = array<i32: 2, 1>} : memref<128x128xf32, #tpu.memory_space<vmem>>, vector<8x128xf32>
    %303 = tpu.concatenate %299, %300, %301, %302 in 0 : vector<8x128xf32>, vector<8x128xf32>, vector<8x128xf32>, vector<8x128xf32> -> vector<32x128xf32>
    %304 = arith.truncf %303 : vector<32x128xf32> to vector<32x128xbf16>
    %c15 = arith.constant 15 : index
    %c0_250 = arith.constant 0 : index
    %c0_251 = arith.constant 0 : index
    %305 = vector.load %arg2[%c15, %c0_250, %c0_251] : memref<26x128x128xbf16, #tpu.memory_space<vmem>>, vector<1x128x128xbf16>
    %306 = vector.shape_cast %305 : vector<1x128x128xbf16> to vector<128x128xbf16>
    %cst_252 = arith.constant dense<0.000000e+00> : vector<32x128xf32>
    %307 = tpu.matmul %304, %306, %cst_252 {dimension_numbers = #tpu.dot_dimension_numbers<[1], [0], [0], [1], [0, 0, 1, 1], [], []>} : vector<32x128xbf16>, vector<128x128xbf16>, vector<32x128xf32> -> vector<32x128xf32>
    %c7_253 = arith.constant 7 : index
    %c0_254 = arith.constant 0 : index
    %308 = tpu.strided_load %arg9[%c7_253, %c0_254] {strides = array<i32: 2, 1>} : memref<128x128xf32, #tpu.memory_space<vmem>>, vector<8x128xf32>
    %c39_255 = arith.constant 39 : index
    %c0_256 = arith.constant 0 : index
    %309 = tpu.strided_load %arg9[%c39_255, %c0_256] {strides = array<i32: 2, 1>} : memref<128x128xf32, #tpu.memory_space<vmem>>, vector<8x128xf32>
    %c71_257 = arith.constant 71 : index
    %c0_258 = arith.constant 0 : index
    %310 = tpu.strided_load %arg9[%c71_257, %c0_258] {strides = array<i32: 2, 1>} : memref<128x128xf32, #tpu.memory_space<vmem>>, vector<8x128xf32>
    %c103_259 = arith.constant 103 : index
    %c0_260 = arith.constant 0 : index
    %311 = tpu.strided_load %arg9[%c103_259, %c0_260] {strides = array<i32: 2, 1>} : memref<128x128xf32, #tpu.memory_space<vmem>>, vector<8x128xf32>
    %312 = tpu.concatenate %308, %309, %310, %311 in 0 : vector<8x128xf32>, vector<8x128xf32>, vector<8x128xf32>, vector<8x128xf32> -> vector<32x128xf32>
    %313 = arith.truncf %312 : vector<32x128xf32> to vector<32x128xbf16>
    %c16 = arith.constant 16 : index
    %c0_261 = arith.constant 0 : index
    %c0_262 = arith.constant 0 : index
    %314 = vector.load %arg2[%c16, %c0_261, %c0_262] : memref<26x128x128xbf16, #tpu.memory_space<vmem>>, vector<1x128x128xbf16>
    %315 = vector.shape_cast %314 : vector<1x128x128xbf16> to vector<128x128xbf16>
    %cst_263 = arith.constant dense<0.000000e+00> : vector<32x128xf32>
    %316 = tpu.matmul %313, %315, %cst_263 {dimension_numbers = #tpu.dot_dimension_numbers<[1], [0], [0], [1], [0, 0, 1, 1], [], []>} : vector<32x128xbf16>, vector<128x128xbf16>, vector<32x128xf32> -> vector<32x128xf32>
    %317 = arith.addf %307, %316 : vector<32x128xf32>
    %c8_264 = arith.constant 8 : index
    %c0_265 = arith.constant 0 : index
    %318 = tpu.strided_load %arg9[%c8_264, %c0_265] {strides = array<i32: 2, 1>} : memref<128x128xf32, #tpu.memory_space<vmem>>, vector<8x128xf32>
    %c40_266 = arith.constant 40 : index
    %c0_267 = arith.constant 0 : index
    %319 = tpu.strided_load %arg9[%c40_266, %c0_267] {strides = array<i32: 2, 1>} : memref<128x128xf32, #tpu.memory_space<vmem>>, vector<8x128xf32>
    %c72_268 = arith.constant 72 : index
    %c0_269 = arith.constant 0 : index
    %320 = tpu.strided_load %arg9[%c72_268, %c0_269] {strides = array<i32: 2, 1>} : memref<128x128xf32, #tpu.memory_space<vmem>>, vector<8x128xf32>
    %c104_270 = arith.constant 104 : index
    %c0_271 = arith.constant 0 : index
    %321 = tpu.strided_load %arg9[%c104_270, %c0_271] {strides = array<i32: 2, 1>} : memref<128x128xf32, #tpu.memory_space<vmem>>, vector<8x128xf32>
    %322 = tpu.concatenate %318, %319, %320, %321 in 0 : vector<8x128xf32>, vector<8x128xf32>, vector<8x128xf32>, vector<8x128xf32> -> vector<32x128xf32>
    %323 = arith.truncf %322 : vector<32x128xf32> to vector<32x128xbf16>
    %c17 = arith.constant 17 : index
    %c0_272 = arith.constant 0 : index
    %c0_273 = arith.constant 0 : index
    %324 = vector.load %arg2[%c17, %c0_272, %c0_273] : memref<26x128x128xbf16, #tpu.memory_space<vmem>>, vector<1x128x128xbf16>
    %325 = vector.shape_cast %324 : vector<1x128x128xbf16> to vector<128x128xbf16>
    %cst_274 = arith.constant dense<0.000000e+00> : vector<32x128xf32>
    %326 = tpu.matmul %323, %325, %cst_274 {dimension_numbers = #tpu.dot_dimension_numbers<[1], [0], [0], [1], [0, 0, 1, 1], [], []>} : vector<32x128xbf16>, vector<128x128xbf16>, vector<32x128xf32> -> vector<32x128xf32>
    %327 = arith.addf %317, %326 : vector<32x128xf32>
    %c9_275 = arith.constant 9 : index
    %c0_276 = arith.constant 0 : index
    %328 = tpu.strided_load %arg9[%c9_275, %c0_276] {strides = array<i32: 2, 1>} : memref<128x128xf32, #tpu.memory_space<vmem>>, vector<8x128xf32>
    %c41_277 = arith.constant 41 : index
    %c0_278 = arith.constant 0 : index
    %329 = tpu.strided_load %arg9[%c41_277, %c0_278] {strides = array<i32: 2, 1>} : memref<128x128xf32, #tpu.memory_space<vmem>>, vector<8x128xf32>
    %c73_279 = arith.constant 73 : index
    %c0_280 = arith.constant 0 : index
    %330 = tpu.strided_load %arg9[%c73_279, %c0_280] {strides = array<i32: 2, 1>} : memref<128x128xf32, #tpu.memory_space<vmem>>, vector<8x128xf32>
    %c105_281 = arith.constant 105 : index
    %c0_282 = arith.constant 0 : index
    %331 = tpu.strided_load %arg9[%c105_281, %c0_282] {strides = array<i32: 2, 1>} : memref<128x128xf32, #tpu.memory_space<vmem>>, vector<8x128xf32>
    %332 = tpu.concatenate %328, %329, %330, %331 in 0 : vector<8x128xf32>, vector<8x128xf32>, vector<8x128xf32>, vector<8x128xf32> -> vector<32x128xf32>
    %333 = arith.truncf %332 : vector<32x128xf32> to vector<32x128xbf16>
    %c18 = arith.constant 18 : index
    %c0_283 = arith.constant 0 : index
    %c0_284 = arith.constant 0 : index
    %334 = vector.load %arg2[%c18, %c0_283, %c0_284] : memref<26x128x128xbf16, #tpu.memory_space<vmem>>, vector<1x128x128xbf16>
    %335 = vector.shape_cast %334 : vector<1x128x128xbf16> to vector<128x128xbf16>
    %cst_285 = arith.constant dense<0.000000e+00> : vector<32x128xf32>
    %336 = tpu.matmul %333, %335, %cst_285 {dimension_numbers = #tpu.dot_dimension_numbers<[1], [0], [0], [1], [0, 0, 1, 1], [], []>} : vector<32x128xbf16>, vector<128x128xbf16>, vector<32x128xf32> -> vector<32x128xf32>
    %337 = arith.addf %327, %336 : vector<32x128xf32>
    %c10_286 = arith.constant 10 : index
    %c0_287 = arith.constant 0 : index
    %338 = tpu.strided_load %arg9[%c10_286, %c0_287] {strides = array<i32: 2, 1>} : memref<128x128xf32, #tpu.memory_space<vmem>>, vector<8x128xf32>
    %c42_288 = arith.constant 42 : index
    %c0_289 = arith.constant 0 : index
    %339 = tpu.strided_load %arg9[%c42_288, %c0_289] {strides = array<i32: 2, 1>} : memref<128x128xf32, #tpu.memory_space<vmem>>, vector<8x128xf32>
    %c74_290 = arith.constant 74 : index
    %c0_291 = arith.constant 0 : index
    %340 = tpu.strided_load %arg9[%c74_290, %c0_291] {strides = array<i32: 2, 1>} : memref<128x128xf32, #tpu.memory_space<vmem>>, vector<8x128xf32>
    %c106_292 = arith.constant 106 : index
    %c0_293 = arith.constant 0 : index
    %341 = tpu.strided_load %arg9[%c106_292, %c0_293] {strides = array<i32: 2, 1>} : memref<128x128xf32, #tpu.memory_space<vmem>>, vector<8x128xf32>
    %342 = tpu.concatenate %338, %339, %340, %341 in 0 : vector<8x128xf32>, vector<8x128xf32>, vector<8x128xf32>, vector<8x128xf32> -> vector<32x128xf32>
    %343 = arith.truncf %342 : vector<32x128xf32> to vector<32x128xbf16>
    %c19 = arith.constant 19 : index
    %c0_294 = arith.constant 0 : index
    %c0_295 = arith.constant 0 : index
    %344 = vector.load %arg2[%c19, %c0_294, %c0_295] : memref<26x128x128xbf16, #tpu.memory_space<vmem>>, vector<1x128x128xbf16>
    %345 = vector.shape_cast %344 : vector<1x128x128xbf16> to vector<128x128xbf16>
    %cst_296 = arith.constant dense<0.000000e+00> : vector<32x128xf32>
    %346 = tpu.matmul %343, %345, %cst_296 {dimension_numbers = #tpu.dot_dimension_numbers<[1], [0], [0], [1], [0, 0, 1, 1], [], []>} : vector<32x128xbf16>, vector<128x128xbf16>, vector<32x128xf32> -> vector<32x128xf32>
    %347 = arith.addf %337, %346 : vector<32x128xf32>
    %348 = vector.shape_cast %347 : vector<32x128xf32> to vector<2x16x128xf32>
    %cst_297 = arith.constant dense<0.000000e+00> : vector<2x128xf32>
    %349 = vector.multi_reduction <add>, %348, %cst_297 [1] : vector<2x16x128xf32> to vector<2x128xf32>
    %350 = vector.shape_cast %349 : vector<2x128xf32> to vector<2x1x128xf32>
    %cst_298 = arith.constant 6.250000e-02 : f32
    %351 = vector.broadcast %cst_298 : f32 to vector<2x1x128xf32>
    %352 = arith.mulf %350, %351 : vector<2x1x128xf32>
    %353 = arith.mulf %348, %348 : vector<2x16x128xf32>
    %cst_299 = arith.constant dense<0.000000e+00> : vector<2x128xf32>
    %354 = vector.multi_reduction <add>, %353, %cst_299 [1] : vector<2x16x128xf32> to vector<2x128xf32>
    %355 = vector.shape_cast %354 : vector<2x128xf32> to vector<2x1x128xf32>
    %cst_300 = arith.constant 6.250000e-02 : f32
    %356 = vector.broadcast %cst_300 : f32 to vector<2x1x128xf32>
    %357 = arith.mulf %355, %356 : vector<2x1x128xf32>
    %358 = arith.mulf %352, %352 : vector<2x1x128xf32>
    %359 = arith.subf %357, %358 : vector<2x1x128xf32>
    %cst_301 = arith.constant 0.000000e+00 : f32
    %360 = vector.broadcast %cst_301 : f32 to vector<2x1x128xf32>
    %361 = arith.maximumf %359, %360 : vector<2x1x128xf32>
    %c3_302 = arith.constant 3 : index
    %c0_303 = arith.constant 0 : index
    %362 = vector.load %arg3[%c3_302, %c0_303] : memref<6x128xf32, #tpu.memory_space<vmem>>, vector<1x128xf32>
    %c3_304 = arith.constant 3 : index
    %c0_305 = arith.constant 0 : index
    %363 = vector.load %arg4[%c3_304, %c0_305] : memref<6x128xf32, #tpu.memory_space<vmem>>, vector<1x128xf32>
    %cst_306 = arith.constant 9.99999974E-6 : f32
    %364 = vector.broadcast %cst_306 : f32 to vector<2x1x128xf32>
    %365 = arith.addf %361, %364 : vector<2x1x128xf32>
    %366 = math.rsqrt %365 : vector<2x1x128xf32>
    %367 = vector.shape_cast %362 : vector<1x128xf32> to vector<1x1x128xf32>
    %368 = vector.broadcast %367 : vector<1x1x128xf32> to vector<2x1x128xf32>
    %369 = arith.mulf %368, %366 : vector<2x1x128xf32>
    %370 = arith.mulf %352, %369 : vector<2x1x128xf32>
    %371 = vector.shape_cast %363 : vector<1x128xf32> to vector<1x1x128xf32>
    %372 = vector.broadcast %371 : vector<1x1x128xf32> to vector<2x1x128xf32>
    %373 = arith.subf %372, %370 : vector<2x1x128xf32>
    %374 = vector.broadcast %369 : vector<2x1x128xf32> to vector<2x16x128xf32>
    %375 = arith.mulf %348, %374 : vector<2x16x128xf32>
    %376 = vector.broadcast %373 : vector<2x1x128xf32> to vector<2x16x128xf32>
    %377 = arith.addf %375, %376 : vector<2x16x128xf32>
    %cst_307 = arith.constant 0.000000e+00 : f32
    %378 = vector.broadcast %cst_307 : f32 to vector<2x16x128xf32>
    %379 = arith.maximumf %377, %378 : vector<2x16x128xf32>
    %380 = vector.shape_cast %379 : vector<2x16x128xf32> to vector<32x128xf32>
    %c8_308 = arith.constant 8 : index
    %c0_309 = arith.constant 0 : index
    %381 = tpu.strided_load %arg9[%c8_308, %c0_309] {strides = array<i32: 2, 1>} : memref<128x128xf32, #tpu.memory_space<vmem>>, vector<8x128xf32>
    %c40_310 = arith.constant 40 : index
    %c0_311 = arith.constant 0 : index
    %382 = tpu.strided_load %arg9[%c40_310, %c0_311] {strides = array<i32: 2, 1>} : memref<128x128xf32, #tpu.memory_space<vmem>>, vector<8x128xf32>
    %c72_312 = arith.constant 72 : index
    %c0_313 = arith.constant 0 : index
    %383 = tpu.strided_load %arg9[%c72_312, %c0_313] {strides = array<i32: 2, 1>} : memref<128x128xf32, #tpu.memory_space<vmem>>, vector<8x128xf32>
    %c104_314 = arith.constant 104 : index
    %c0_315 = arith.constant 0 : index
    %384 = tpu.strided_load %arg9[%c104_314, %c0_315] {strides = array<i32: 2, 1>} : memref<128x128xf32, #tpu.memory_space<vmem>>, vector<8x128xf32>
    %385 = tpu.concatenate %381, %382, %383, %384 in 0 : vector<8x128xf32>, vector<8x128xf32>, vector<8x128xf32>, vector<8x128xf32> -> vector<32x128xf32>
    %386 = arith.truncf %385 : vector<32x128xf32> to vector<32x128xbf16>
    %c25 = arith.constant 25 : index
    %c0_316 = arith.constant 0 : index
    %c0_317 = arith.constant 0 : index
    %387 = vector.load %arg2[%c25, %c0_316, %c0_317] : memref<26x128x128xbf16, #tpu.memory_space<vmem>>, vector<1x128x128xbf16>
    %388 = vector.shape_cast %387 : vector<1x128x128xbf16> to vector<128x128xbf16>
    %cst_318 = arith.constant dense<0.000000e+00> : vector<32x128xf32>
    %389 = tpu.matmul %386, %388, %cst_318 {dimension_numbers = #tpu.dot_dimension_numbers<[1], [0], [0], [1], [0, 0, 1, 1], [], []>} : vector<32x128xbf16>, vector<128x128xbf16>, vector<32x128xf32> -> vector<32x128xf32>
    %390 = vector.shape_cast %389 : vector<32x128xf32> to vector<2x16x128xf32>
    %cst_319 = arith.constant dense<0.000000e+00> : vector<2x128xf32>
    %391 = vector.multi_reduction <add>, %390, %cst_319 [1] : vector<2x16x128xf32> to vector<2x128xf32>
    %392 = vector.shape_cast %391 : vector<2x128xf32> to vector<2x1x128xf32>
    %cst_320 = arith.constant 6.250000e-02 : f32
    %393 = vector.broadcast %cst_320 : f32 to vector<2x1x128xf32>
    %394 = arith.mulf %392, %393 : vector<2x1x128xf32>
    %395 = arith.mulf %390, %390 : vector<2x16x128xf32>
    %cst_321 = arith.constant dense<0.000000e+00> : vector<2x128xf32>
    %396 = vector.multi_reduction <add>, %395, %cst_321 [1] : vector<2x16x128xf32> to vector<2x128xf32>
    %397 = vector.shape_cast %396 : vector<2x128xf32> to vector<2x1x128xf32>
    %cst_322 = arith.constant 6.250000e-02 : f32
    %398 = vector.broadcast %cst_322 : f32 to vector<2x1x128xf32>
    %399 = arith.mulf %397, %398 : vector<2x1x128xf32>
    %400 = arith.mulf %394, %394 : vector<2x1x128xf32>
    %401 = arith.subf %399, %400 : vector<2x1x128xf32>
    %cst_323 = arith.constant 0.000000e+00 : f32
    %402 = vector.broadcast %cst_323 : f32 to vector<2x1x128xf32>
    %403 = arith.maximumf %401, %402 : vector<2x1x128xf32>
    %c5_324 = arith.constant 5 : index
    %c0_325 = arith.constant 0 : index
    %404 = vector.load %arg3[%c5_324, %c0_325] : memref<6x128xf32, #tpu.memory_space<vmem>>, vector<1x128xf32>
    %c5_326 = arith.constant 5 : index
    %c0_327 = arith.constant 0 : index
    %405 = vector.load %arg4[%c5_326, %c0_327] : memref<6x128xf32, #tpu.memory_space<vmem>>, vector<1x128xf32>
    %cst_328 = arith.constant 9.99999974E-6 : f32
    %406 = vector.broadcast %cst_328 : f32 to vector<2x1x128xf32>
    %407 = arith.addf %403, %406 : vector<2x1x128xf32>
    %408 = math.rsqrt %407 : vector<2x1x128xf32>
    %409 = vector.shape_cast %404 : vector<1x128xf32> to vector<1x1x128xf32>
    %410 = vector.broadcast %409 : vector<1x1x128xf32> to vector<2x1x128xf32>
    %411 = arith.mulf %410, %408 : vector<2x1x128xf32>
    %412 = arith.mulf %394, %411 : vector<2x1x128xf32>
    %413 = vector.shape_cast %405 : vector<1x128xf32> to vector<1x1x128xf32>
    %414 = vector.broadcast %413 : vector<1x1x128xf32> to vector<2x1x128xf32>
    %415 = arith.subf %414, %412 : vector<2x1x128xf32>
    %416 = vector.broadcast %411 : vector<2x1x128xf32> to vector<2x16x128xf32>
    %417 = arith.mulf %390, %416 : vector<2x16x128xf32>
    %418 = vector.broadcast %415 : vector<2x1x128xf32> to vector<2x16x128xf32>
    %419 = arith.addf %417, %418 : vector<2x16x128xf32>
    %420 = vector.shape_cast %419 : vector<2x16x128xf32> to vector<32x128xf32>
    %421 = vector.extract_strided_slice %380 {offsets = [0, 0], sizes = [8, 128], strides = [1, 1]} : vector<32x128xf32> to vector<8x128xf32>
    %c8_329 = arith.constant 8 : index
    %c0_330 = arith.constant 0 : index
    %422 = vector.load %arg8[%c8_329, %c0_330] : memref<128x128xf32, #tpu.memory_space<vmem>>, vector<8x128xf32>
    tpu.vector_store %arg8[%c8_329, %c0_330], %421 {strides = array<i32>} : memref<128x128xf32, #tpu.memory_space<vmem>>, vector<8x128xf32>,
    %c16_331 = arith.constant 16 : index
    %c0_332 = arith.constant 0 : index
    %423 = vector.load %arg8[%c16_331, %c0_332] : memref<128x128xf32, #tpu.memory_space<vmem>>, vector<2x128xf32>
    tpu.vector_store %arg8[%c16_331, %c0_332], %0 {strides = array<i32>} : memref<128x128xf32, #tpu.memory_space<vmem>>, vector<2x128xf32>,
    %424 = vector.extract_strided_slice %380 {offsets = [8, 0], sizes = [8, 128], strides = [1, 1]} : vector<32x128xf32> to vector<8x128xf32>
    %c40_333 = arith.constant 40 : index
    %c0_334 = arith.constant 0 : index
    %425 = vector.load %arg8[%c40_333, %c0_334] : memref<128x128xf32, #tpu.memory_space<vmem>>, vector<8x128xf32>
    tpu.vector_store %arg8[%c40_333, %c0_334], %424 {strides = array<i32>} : memref<128x128xf32, #tpu.memory_space<vmem>>, vector<8x128xf32>,
    %c48 = arith.constant 48 : index
    %c0_335 = arith.constant 0 : index
    %426 = vector.load %arg8[%c48, %c0_335] : memref<128x128xf32, #tpu.memory_space<vmem>>, vector<2x128xf32>
    tpu.vector_store %arg8[%c48, %c0_335], %0 {strides = array<i32>} : memref<128x128xf32, #tpu.memory_space<vmem>>, vector<2x128xf32>,
    %427 = vector.extract_strided_slice %380 {offsets = [16, 0], sizes = [8, 128], strides = [1, 1]} : vector<32x128xf32> to vector<8x128xf32>
    %c72_336 = arith.constant 72 : index
    %c0_337 = arith.constant 0 : index
    %428 = vector.load %arg8[%c72_336, %c0_337] : memref<128x128xf32, #tpu.memory_space<vmem>>, vector<8x128xf32>
    tpu.vector_store %arg8[%c72_336, %c0_337], %427 {strides = array<i32>} : memref<128x128xf32, #tpu.memory_space<vmem>>, vector<8x128xf32>,
    %c80 = arith.constant 80 : index
    %c0_338 = arith.constant 0 : index
    %429 = vector.load %arg8[%c80, %c0_338] : memref<128x128xf32, #tpu.memory_space<vmem>>, vector<2x128xf32>
    tpu.vector_store %arg8[%c80, %c0_338], %0 {strides = array<i32>} : memref<128x128xf32, #tpu.memory_space<vmem>>, vector<2x128xf32>,
    %430 = vector.extract_strided_slice %380 {offsets = [24, 0], sizes = [8, 128], strides = [1, 1]} : vector<32x128xf32> to vector<8x128xf32>
    %c104_339 = arith.constant 104 : index
    %c0_340 = arith.constant 0 : index
    %431 = vector.load %arg8[%c104_339, %c0_340] : memref<128x128xf32, #tpu.memory_space<vmem>>, vector<8x128xf32>
    tpu.vector_store %arg8[%c104_339, %c0_340], %430 {strides = array<i32>} : memref<128x128xf32, #tpu.memory_space<vmem>>, vector<8x128xf32>,
    %c112 = arith.constant 112 : index
    %c0_341 = arith.constant 0 : index
    %432 = vector.load %arg8[%c112, %c0_341] : memref<128x128xf32, #tpu.memory_space<vmem>>, vector<2x128xf32>
    tpu.vector_store %arg8[%c112, %c0_341], %0 {strides = array<i32>} : memref<128x128xf32, #tpu.memory_space<vmem>>, vector<2x128xf32>,
    %c6_342 = arith.constant 6 : index
    %c0_343 = arith.constant 0 : index
    %433 = vector.load %arg8[%c6_342, %c0_343] : memref<128x128xf32, #tpu.memory_space<vmem>>, vector<8x128xf32>
    %c38_344 = arith.constant 38 : index
    %c0_345 = arith.constant 0 : index
    %434 = vector.load %arg8[%c38_344, %c0_345] : memref<128x128xf32, #tpu.memory_space<vmem>>, vector<8x128xf32>
    %c70_346 = arith.constant 70 : index
    %c0_347 = arith.constant 0 : index
    %435 = vector.load %arg8[%c70_346, %c0_347] : memref<128x128xf32, #tpu.memory_space<vmem>>, vector<8x128xf32>
    %c102_348 = arith.constant 102 : index
    %c0_349 = arith.constant 0 : index
    %436 = vector.load %arg8[%c102_348, %c0_349] : memref<128x128xf32, #tpu.memory_space<vmem>>, vector<8x128xf32>
    %437 = tpu.concatenate %433, %434, %435, %436 in 0 : vector<8x128xf32>, vector<8x128xf32>, vector<8x128xf32>, vector<8x128xf32> -> vector<32x128xf32>
    %438 = arith.truncf %437 : vector<32x128xf32> to vector<32x128xbf16>
    %c20 = arith.constant 20 : index
    %c0_350 = arith.constant 0 : index
    %c0_351 = arith.constant 0 : index
    %439 = vector.load %arg2[%c20, %c0_350, %c0_351] : memref<26x128x128xbf16, #tpu.memory_space<vmem>>, vector<1x128x128xbf16>
    %440 = vector.shape_cast %439 : vector<1x128x128xbf16> to vector<128x128xbf16>
    %cst_352 = arith.constant dense<0.000000e+00> : vector<32x128xf32>
    %441 = tpu.matmul %438, %440, %cst_352 {dimension_numbers = #tpu.dot_dimension_numbers<[1], [0], [0], [1], [0, 0, 1, 1], [], []>} : vector<32x128xbf16>, vector<128x128xbf16>, vector<32x128xf32> -> vector<32x128xf32>
    %c7_353 = arith.constant 7 : index
    %c0_354 = arith.constant 0 : index
    %442 = vector.load %arg8[%c7_353, %c0_354] : memref<128x128xf32, #tpu.memory_space<vmem>>, vector<8x128xf32>
    %c39_355 = arith.constant 39 : index
    %c0_356 = arith.constant 0 : index
    %443 = vector.load %arg8[%c39_355, %c0_356] : memref<128x128xf32, #tpu.memory_space<vmem>>, vector<8x128xf32>
    %c71_357 = arith.constant 71 : index
    %c0_358 = arith.constant 0 : index
    %444 = vector.load %arg8[%c71_357, %c0_358] : memref<128x128xf32, #tpu.memory_space<vmem>>, vector<8x128xf32>
    %c103_359 = arith.constant 103 : index
    %c0_360 = arith.constant 0 : index
    %445 = vector.load %arg8[%c103_359, %c0_360] : memref<128x128xf32, #tpu.memory_space<vmem>>, vector<8x128xf32>
    %446 = tpu.concatenate %442, %443, %444, %445 in 0 : vector<8x128xf32>, vector<8x128xf32>, vector<8x128xf32>, vector<8x128xf32> -> vector<32x128xf32>
    %447 = arith.truncf %446 : vector<32x128xf32> to vector<32x128xbf16>
    %c21 = arith.constant 21 : index
    %c0_361 = arith.constant 0 : index
    %c0_362 = arith.constant 0 : index
    %448 = vector.load %arg2[%c21, %c0_361, %c0_362] : memref<26x128x128xbf16, #tpu.memory_space<vmem>>, vector<1x128x128xbf16>
    %449 = vector.shape_cast %448 : vector<1x128x128xbf16> to vector<128x128xbf16>
    %cst_363 = arith.constant dense<0.000000e+00> : vector<32x128xf32>
    %450 = tpu.matmul %447, %449, %cst_363 {dimension_numbers = #tpu.dot_dimension_numbers<[1], [0], [0], [1], [0, 0, 1, 1], [], []>} : vector<32x128xbf16>, vector<128x128xbf16>, vector<32x128xf32> -> vector<32x128xf32>
    %451 = arith.addf %441, %450 : vector<32x128xf32>
    %c8_364 = arith.constant 8 : index
    %c0_365 = arith.constant 0 : index
    %452 = vector.load %arg8[%c8_364, %c0_365] : memref<128x128xf32, #tpu.memory_space<vmem>>, vector<8x128xf32>
    %c40_366 = arith.constant 40 : index
    %c0_367 = arith.constant 0 : index
    %453 = vector.load %arg8[%c40_366, %c0_367] : memref<128x128xf32, #tpu.memory_space<vmem>>, vector<8x128xf32>
    %c72_368 = arith.constant 72 : index
    %c0_369 = arith.constant 0 : index
    %454 = vector.load %arg8[%c72_368, %c0_369] : memref<128x128xf32, #tpu.memory_space<vmem>>, vector<8x128xf32>
    %c104_370 = arith.constant 104 : index
    %c0_371 = arith.constant 0 : index
    %455 = vector.load %arg8[%c104_370, %c0_371] : memref<128x128xf32, #tpu.memory_space<vmem>>, vector<8x128xf32>
    %456 = tpu.concatenate %452, %453, %454, %455 in 0 : vector<8x128xf32>, vector<8x128xf32>, vector<8x128xf32>, vector<8x128xf32> -> vector<32x128xf32>
    %457 = arith.truncf %456 : vector<32x128xf32> to vector<32x128xbf16>
    %c22 = arith.constant 22 : index
    %c0_372 = arith.constant 0 : index
    %c0_373 = arith.constant 0 : index
    %458 = vector.load %arg2[%c22, %c0_372, %c0_373] : memref<26x128x128xbf16, #tpu.memory_space<vmem>>, vector<1x128x128xbf16>
    %459 = vector.shape_cast %458 : vector<1x128x128xbf16> to vector<128x128xbf16>
    %cst_374 = arith.constant dense<0.000000e+00> : vector<32x128xf32>
    %460 = tpu.matmul %457, %459, %cst_374 {dimension_numbers = #tpu.dot_dimension_numbers<[1], [0], [0], [1], [0, 0, 1, 1], [], []>} : vector<32x128xbf16>, vector<128x128xbf16>, vector<32x128xf32> -> vector<32x128xf32>
    %461 = arith.addf %451, %460 : vector<32x128xf32>
    %c9_375 = arith.constant 9 : index
    %c0_376 = arith.constant 0 : index
    %462 = vector.load %arg8[%c9_375, %c0_376] : memref<128x128xf32, #tpu.memory_space<vmem>>, vector<8x128xf32>
    %c41_377 = arith.constant 41 : index
    %c0_378 = arith.constant 0 : index
    %463 = vector.load %arg8[%c41_377, %c0_378] : memref<128x128xf32, #tpu.memory_space<vmem>>, vector<8x128xf32>
    %c73_379 = arith.constant 73 : index
    %c0_380 = arith.constant 0 : index
    %464 = vector.load %arg8[%c73_379, %c0_380] : memref<128x128xf32, #tpu.memory_space<vmem>>, vector<8x128xf32>
    %c105_381 = arith.constant 105 : index
    %c0_382 = arith.constant 0 : index
    %465 = vector.load %arg8[%c105_381, %c0_382] : memref<128x128xf32, #tpu.memory_space<vmem>>, vector<8x128xf32>
    %466 = tpu.concatenate %462, %463, %464, %465 in 0 : vector<8x128xf32>, vector<8x128xf32>, vector<8x128xf32>, vector<8x128xf32> -> vector<32x128xf32>
    %467 = arith.truncf %466 : vector<32x128xf32> to vector<32x128xbf16>
    %c23 = arith.constant 23 : index
    %c0_383 = arith.constant 0 : index
    %c0_384 = arith.constant 0 : index
    %468 = vector.load %arg2[%c23, %c0_383, %c0_384] : memref<26x128x128xbf16, #tpu.memory_space<vmem>>, vector<1x128x128xbf16>
    %469 = vector.shape_cast %468 : vector<1x128x128xbf16> to vector<128x128xbf16>
    %cst_385 = arith.constant dense<0.000000e+00> : vector<32x128xf32>
    %470 = tpu.matmul %467, %469, %cst_385 {dimension_numbers = #tpu.dot_dimension_numbers<[1], [0], [0], [1], [0, 0, 1, 1], [], []>} : vector<32x128xbf16>, vector<128x128xbf16>, vector<32x128xf32> -> vector<32x128xf32>
    %471 = arith.addf %461, %470 : vector<32x128xf32>
    %c10_386 = arith.constant 10 : index
    %c0_387 = arith.constant 0 : index
    %472 = vector.load %arg8[%c10_386, %c0_387] : memref<128x128xf32, #tpu.memory_space<vmem>>, vector<8x128xf32>
    %c42_388 = arith.constant 42 : index
    %c0_389 = arith.constant 0 : index
    %473 = vector.load %arg8[%c42_388, %c0_389] : memref<128x128xf32, #tpu.memory_space<vmem>>, vector<8x128xf32>
    %c74_390 = arith.constant 74 : index
    %c0_391 = arith.constant 0 : index
    %474 = vector.load %arg8[%c74_390, %c0_391] : memref<128x128xf32, #tpu.memory_space<vmem>>, vector<8x128xf32>
    %c106_392 = arith.constant 106 : index
    %c0_393 = arith.constant 0 : index
    %475 = vector.load %arg8[%c106_392, %c0_393] : memref<128x128xf32, #tpu.memory_space<vmem>>, vector<8x128xf32>
    %476 = tpu.concatenate %472, %473, %474, %475 in 0 : vector<8x128xf32>, vector<8x128xf32>, vector<8x128xf32>, vector<8x128xf32> -> vector<32x128xf32>
    %477 = arith.truncf %476 : vector<32x128xf32> to vector<32x128xbf16>
    %c24 = arith.constant 24 : index
    %c0_394 = arith.constant 0 : index
    %c0_395 = arith.constant 0 : index
    %478 = vector.load %arg2[%c24, %c0_394, %c0_395] : memref<26x128x128xbf16, #tpu.memory_space<vmem>>, vector<1x128x128xbf16>
    %479 = vector.shape_cast %478 : vector<1x128x128xbf16> to vector<128x128xbf16>
    %cst_396 = arith.constant dense<0.000000e+00> : vector<32x128xf32>
    %480 = tpu.matmul %477, %479, %cst_396 {dimension_numbers = #tpu.dot_dimension_numbers<[1], [0], [0], [1], [0, 0, 1, 1], [], []>} : vector<32x128xbf16>, vector<128x128xbf16>, vector<32x128xf32> -> vector<32x128xf32>
    %481 = arith.addf %471, %480 : vector<32x128xf32>
    %482 = vector.shape_cast %481 : vector<32x128xf32> to vector<2x16x128xf32>
    %cst_397 = arith.constant dense<0.000000e+00> : vector<2x128xf32>
    %483 = vector.multi_reduction <add>, %482, %cst_397 [1] : vector<2x16x128xf32> to vector<2x128xf32>
    %484 = vector.shape_cast %483 : vector<2x128xf32> to vector<2x1x128xf32>
    %cst_398 = arith.constant 6.250000e-02 : f32
    %485 = vector.broadcast %cst_398 : f32 to vector<2x1x128xf32>
    %486 = arith.mulf %484, %485 : vector<2x1x128xf32>
    %487 = arith.mulf %482, %482 : vector<2x16x128xf32>
    %cst_399 = arith.constant dense<0.000000e+00> : vector<2x128xf32>
    %488 = vector.multi_reduction <add>, %487, %cst_399 [1] : vector<2x16x128xf32> to vector<2x128xf32>
    %489 = vector.shape_cast %488 : vector<2x128xf32> to vector<2x1x128xf32>
    %cst_400 = arith.constant 6.250000e-02 : f32
    %490 = vector.broadcast %cst_400 : f32 to vector<2x1x128xf32>
    %491 = arith.mulf %489, %490 : vector<2x1x128xf32>
    %492 = arith.mulf %486, %486 : vector<2x1x128xf32>
    %493 = arith.subf %491, %492 : vector<2x1x128xf32>
    %cst_401 = arith.constant 0.000000e+00 : f32
    %494 = vector.broadcast %cst_401 : f32 to vector<2x1x128xf32>
    %495 = arith.maximumf %493, %494 : vector<2x1x128xf32>
    %c4_402 = arith.constant 4 : index
    %c0_403 = arith.constant 0 : index
    %496 = vector.load %arg3[%c4_402, %c0_403] : memref<6x128xf32, #tpu.memory_space<vmem>>, vector<1x128xf32>
    %c4_404 = arith.constant 4 : index
    %c0_405 = arith.constant 0 : index
    %497 = vector.load %arg4[%c4_404, %c0_405] : memref<6x128xf32, #tpu.memory_space<vmem>>, vector<1x128xf32>
    %cst_406 = arith.constant 9.99999974E-6 : f32
    %498 = vector.broadcast %cst_406 : f32 to vector<2x1x128xf32>
    %499 = arith.addf %495, %498 : vector<2x1x128xf32>
    %500 = math.rsqrt %499 : vector<2x1x128xf32>
    %501 = vector.shape_cast %496 : vector<1x128xf32> to vector<1x1x128xf32>
    %502 = vector.broadcast %501 : vector<1x1x128xf32> to vector<2x1x128xf32>
    %503 = arith.mulf %502, %500 : vector<2x1x128xf32>
    %504 = arith.mulf %486, %503 : vector<2x1x128xf32>
    %505 = vector.shape_cast %497 : vector<1x128xf32> to vector<1x1x128xf32>
    %506 = vector.broadcast %505 : vector<1x1x128xf32> to vector<2x1x128xf32>
    %507 = arith.subf %506, %504 : vector<2x1x128xf32>
    %508 = vector.broadcast %503 : vector<2x1x128xf32> to vector<2x16x128xf32>
    %509 = arith.mulf %482, %508 : vector<2x16x128xf32>
    %510 = vector.broadcast %507 : vector<2x1x128xf32> to vector<2x16x128xf32>
    %511 = arith.addf %509, %510 : vector<2x16x128xf32>
    %512 = vector.shape_cast %420 : vector<32x128xf32> to vector<2x16x128xf32>
    %513 = arith.addf %511, %512 : vector<2x16x128xf32>
    %cst_407 = arith.constant 0.000000e+00 : f32
    %514 = vector.broadcast %cst_407 : f32 to vector<2x16x128xf32>
    %515 = arith.maximumf %513, %514 : vector<2x16x128xf32>
    %516 = vector.shape_cast %515 : vector<2x16x128xf32> to vector<32x128xf32>
    %517 = vector.extract_strided_slice %516 {offsets = [0, 0], sizes = [8, 128], strides = [1, 1]} : vector<32x128xf32> to vector<8x128xf32>
    %c8_408 = arith.constant 8 : index
    %c0_409 = arith.constant 0 : index
    %518 = vector.load %arg9[%c8_408, %c0_409] : memref<128x128xf32, #tpu.memory_space<vmem>>, vector<8x128xf32>
    tpu.vector_store %arg9[%c8_408, %c0_409], %517 {strides = array<i32>} : memref<128x128xf32, #tpu.memory_space<vmem>>, vector<8x128xf32>,
    %c16_410 = arith.constant 16 : index
    %c0_411 = arith.constant 0 : index
    %519 = vector.load %arg9[%c16_410, %c0_411] : memref<128x128xf32, #tpu.memory_space<vmem>>, vector<2x128xf32>
    tpu.vector_store %arg9[%c16_410, %c0_411], %0 {strides = array<i32>} : memref<128x128xf32, #tpu.memory_space<vmem>>, vector<2x128xf32>,
    %520 = vector.extract_strided_slice %516 {offsets = [8, 0], sizes = [8, 128], strides = [1, 1]} : vector<32x128xf32> to vector<8x128xf32>
    %c40_412 = arith.constant 40 : index
    %c0_413 = arith.constant 0 : index
    %521 = vector.load %arg9[%c40_412, %c0_413] : memref<128x128xf32, #tpu.memory_space<vmem>>, vector<8x128xf32>
    tpu.vector_store %arg9[%c40_412, %c0_413], %520 {strides = array<i32>} : memref<128x128xf32, #tpu.memory_space<vmem>>, vector<8x128xf32>,
    %c48_414 = arith.constant 48 : index
    %c0_415 = arith.constant 0 : index
    %522 = vector.load %arg9[%c48_414, %c0_415] : memref<128x128xf32, #tpu.memory_space<vmem>>, vector<2x128xf32>
    tpu.vector_store %arg9[%c48_414, %c0_415], %0 {strides = array<i32>} : memref<128x128xf32, #tpu.memory_space<vmem>>, vector<2x128xf32>,
    %523 = vector.extract_strided_slice %516 {offsets = [16, 0], sizes = [8, 128], strides = [1, 1]} : vector<32x128xf32> to vector<8x128xf32>
    %c72_416 = arith.constant 72 : index
    %c0_417 = arith.constant 0 : index
    %524 = vector.load %arg9[%c72_416, %c0_417] : memref<128x128xf32, #tpu.memory_space<vmem>>, vector<8x128xf32>
    tpu.vector_store %arg9[%c72_416, %c0_417], %523 {strides = array<i32>} : memref<128x128xf32, #tpu.memory_space<vmem>>, vector<8x128xf32>,
    %c80_418 = arith.constant 80 : index
    %c0_419 = arith.constant 0 : index
    %525 = vector.load %arg9[%c80_418, %c0_419] : memref<128x128xf32, #tpu.memory_space<vmem>>, vector<2x128xf32>
    tpu.vector_store %arg9[%c80_418, %c0_419], %0 {strides = array<i32>} : memref<128x128xf32, #tpu.memory_space<vmem>>, vector<2x128xf32>,
    %526 = vector.extract_strided_slice %516 {offsets = [24, 0], sizes = [8, 128], strides = [1, 1]} : vector<32x128xf32> to vector<8x128xf32>
    %c104_420 = arith.constant 104 : index
    %c0_421 = arith.constant 0 : index
    %527 = vector.load %arg9[%c104_420, %c0_421] : memref<128x128xf32, #tpu.memory_space<vmem>>, vector<8x128xf32>
    tpu.vector_store %arg9[%c104_420, %c0_421], %526 {strides = array<i32>} : memref<128x128xf32, #tpu.memory_space<vmem>>, vector<8x128xf32>,
    %c112_422 = arith.constant 112 : index
    %c0_423 = arith.constant 0 : index
    %528 = vector.load %arg9[%c112_422, %c0_423] : memref<128x128xf32, #tpu.memory_space<vmem>>, vector<2x128xf32>
    tpu.vector_store %arg9[%c112_422, %c0_423], %0 {strides = array<i32>} : memref<128x128xf32, #tpu.memory_space<vmem>>, vector<2x128xf32>,
    %c8_424 = arith.constant 8 : index
    %c0_425 = arith.constant 0 : index
    %529 = vector.load %arg9[%c8_424, %c0_425] : memref<128x128xf32, #tpu.memory_space<vmem>>, vector<1x128xf32>
    %c40_426 = arith.constant 40 : index
    %c0_427 = arith.constant 0 : index
    %530 = vector.load %arg9[%c40_426, %c0_427] : memref<128x128xf32, #tpu.memory_space<vmem>>, vector<1x128xf32>
    %c72_428 = arith.constant 72 : index
    %c0_429 = arith.constant 0 : index
    %531 = vector.load %arg9[%c72_428, %c0_429] : memref<128x128xf32, #tpu.memory_space<vmem>>, vector<1x128xf32>
    %c104_430 = arith.constant 104 : index
    %c0_431 = arith.constant 0 : index
    %532 = vector.load %arg9[%c104_430, %c0_431] : memref<128x128xf32, #tpu.memory_space<vmem>>, vector<1x128xf32>
    %533 = tpu.concatenate %529, %530, %531, %532 in 0 : vector<1x128xf32>, vector<1x128xf32>, vector<1x128xf32>, vector<1x128xf32> -> vector<4x128xf32>
    %534 = arith.truncf %533 : vector<4x128xf32> to vector<4x128xbf16>
    %c0_432 = arith.constant 0 : index
    %c0_433 = arith.constant 0 : index
    %c0_434 = arith.constant 0 : index
    %535 = vector.load %arg5[%c0_432, %c0_433, %c0_434] : memref<8x128x128xbf16, #tpu.memory_space<vmem>>, vector<1x128x128xbf16>
    %536 = vector.shape_cast %535 : vector<1x128x128xbf16> to vector<128x128xbf16>
    %cst_435 = arith.constant dense<0.000000e+00> : vector<4x128xf32>
    %537 = tpu.matmul %534, %536, %cst_435 {dimension_numbers = #tpu.dot_dimension_numbers<[1], [0], [0], [1], [0, 0, 1, 1], [], []>} : vector<4x128xbf16>, vector<128x128xbf16>, vector<4x128xf32> -> vector<4x128xf32>
    %c9_436 = arith.constant 9 : index
    %c0_437 = arith.constant 0 : index
    %538 = vector.load %arg9[%c9_436, %c0_437] : memref<128x128xf32, #tpu.memory_space<vmem>>, vector<1x128xf32>
    %c41_438 = arith.constant 41 : index
    %c0_439 = arith.constant 0 : index
    %539 = vector.load %arg9[%c41_438, %c0_439] : memref<128x128xf32, #tpu.memory_space<vmem>>, vector<1x128xf32>
    %c73_440 = arith.constant 73 : index
    %c0_441 = arith.constant 0 : index
    %540 = vector.load %arg9[%c73_440, %c0_441] : memref<128x128xf32, #tpu.memory_space<vmem>>, vector<1x128xf32>
    %c105_442 = arith.constant 105 : index
    %c0_443 = arith.constant 0 : index
    %541 = vector.load %arg9[%c105_442, %c0_443] : memref<128x128xf32, #tpu.memory_space<vmem>>, vector<1x128xf32>
    %542 = tpu.concatenate %538, %539, %540, %541 in 0 : vector<1x128xf32>, vector<1x128xf32>, vector<1x128xf32>, vector<1x128xf32> -> vector<4x128xf32>
    %543 = arith.truncf %542 : vector<4x128xf32> to vector<4x128xbf16>
    %c1_444 = arith.constant 1 : index
    %c0_445 = arith.constant 0 : index
    %c0_446 = arith.constant 0 : index
    %544 = vector.load %arg5[%c1_444, %c0_445, %c0_446] : memref<8x128x128xbf16, #tpu.memory_space<vmem>>, vector<1x128x128xbf16>
    %545 = vector.shape_cast %544 : vector<1x128x128xbf16> to vector<128x128xbf16>
    %cst_447 = arith.constant dense<0.000000e+00> : vector<4x128xf32>
    %546 = tpu.matmul %543, %545, %cst_447 {dimension_numbers = #tpu.dot_dimension_numbers<[1], [0], [0], [1], [0, 0, 1, 1], [], []>} : vector<4x128xbf16>, vector<128x128xbf16>, vector<4x128xf32> -> vector<4x128xf32>
    %547 = arith.addf %537, %546 : vector<4x128xf32>
    %c10_448 = arith.constant 10 : index
    %c0_449 = arith.constant 0 : index
    %548 = vector.load %arg9[%c10_448, %c0_449] : memref<128x128xf32, #tpu.memory_space<vmem>>, vector<1x128xf32>
    %c42_450 = arith.constant 42 : index
    %c0_451 = arith.constant 0 : index
    %549 = vector.load %arg9[%c42_450, %c0_451] : memref<128x128xf32, #tpu.memory_space<vmem>>, vector<1x128xf32>
    %c74_452 = arith.constant 74 : index
    %c0_453 = arith.constant 0 : index
    %550 = vector.load %arg9[%c74_452, %c0_453] : memref<128x128xf32, #tpu.memory_space<vmem>>, vector<1x128xf32>
    %c106_454 = arith.constant 106 : index
    %c0_455 = arith.constant 0 : index
    %551 = vector.load %arg9[%c106_454, %c0_455] : memref<128x128xf32, #tpu.memory_space<vmem>>, vector<1x128xf32>
    %552 = tpu.concatenate %548, %549, %550, %551 in 0 : vector<1x128xf32>, vector<1x128xf32>, vector<1x128xf32>, vector<1x128xf32> -> vector<4x128xf32>
    %553 = arith.truncf %552 : vector<4x128xf32> to vector<4x128xbf16>
    %c2_456 = arith.constant 2 : index
    %c0_457 = arith.constant 0 : index
    %c0_458 = arith.constant 0 : index
    %554 = vector.load %arg5[%c2_456, %c0_457, %c0_458] : memref<8x128x128xbf16, #tpu.memory_space<vmem>>, vector<1x128x128xbf16>
    %555 = vector.shape_cast %554 : vector<1x128x128xbf16> to vector<128x128xbf16>
    %cst_459 = arith.constant dense<0.000000e+00> : vector<4x128xf32>
    %556 = tpu.matmul %553, %555, %cst_459 {dimension_numbers = #tpu.dot_dimension_numbers<[1], [0], [0], [1], [0, 0, 1, 1], [], []>} : vector<4x128xbf16>, vector<128x128xbf16>, vector<4x128xf32> -> vector<4x128xf32>
    %557 = arith.addf %547, %556 : vector<4x128xf32>
    %c11_460 = arith.constant 11 : index
    %c0_461 = arith.constant 0 : index
    %558 = vector.load %arg9[%c11_460, %c0_461] : memref<128x128xf32, #tpu.memory_space<vmem>>, vector<1x128xf32>
    %c43 = arith.constant 43 : index
    %c0_462 = arith.constant 0 : index
    %559 = vector.load %arg9[%c43, %c0_462] : memref<128x128xf32, #tpu.memory_space<vmem>>, vector<1x128xf32>
    %c75 = arith.constant 75 : index
    %c0_463 = arith.constant 0 : index
    %560 = vector.load %arg9[%c75, %c0_463] : memref<128x128xf32, #tpu.memory_space<vmem>>, vector<1x128xf32>
    %c107 = arith.constant 107 : index
    %c0_464 = arith.constant 0 : index
    %561 = vector.load %arg9[%c107, %c0_464] : memref<128x128xf32, #tpu.memory_space<vmem>>, vector<1x128xf32>
    %562 = tpu.concatenate %558, %559, %560, %561 in 0 : vector<1x128xf32>, vector<1x128xf32>, vector<1x128xf32>, vector<1x128xf32> -> vector<4x128xf32>
    %563 = arith.truncf %562 : vector<4x128xf32> to vector<4x128xbf16>
    %c3_465 = arith.constant 3 : index
    %c0_466 = arith.constant 0 : index
    %c0_467 = arith.constant 0 : index
    %564 = vector.load %arg5[%c3_465, %c0_466, %c0_467] : memref<8x128x128xbf16, #tpu.memory_space<vmem>>, vector<1x128x128xbf16>
    %565 = vector.shape_cast %564 : vector<1x128x128xbf16> to vector<128x128xbf16>
    %cst_468 = arith.constant dense<0.000000e+00> : vector<4x128xf32>
    %566 = tpu.matmul %563, %565, %cst_468 {dimension_numbers = #tpu.dot_dimension_numbers<[1], [0], [0], [1], [0, 0, 1, 1], [], []>} : vector<4x128xbf16>, vector<128x128xbf16>, vector<4x128xf32> -> vector<4x128xf32>
    %567 = arith.addf %557, %566 : vector<4x128xf32>
    %c12_469 = arith.constant 12 : index
    %c0_470 = arith.constant 0 : index
    %568 = vector.load %arg9[%c12_469, %c0_470] : memref<128x128xf32, #tpu.memory_space<vmem>>, vector<1x128xf32>
    %c44 = arith.constant 44 : index
    %c0_471 = arith.constant 0 : index
    %569 = vector.load %arg9[%c44, %c0_471] : memref<128x128xf32, #tpu.memory_space<vmem>>, vector<1x128xf32>
    %c76 = arith.constant 76 : index
    %c0_472 = arith.constant 0 : index
    %570 = vector.load %arg9[%c76, %c0_472] : memref<128x128xf32, #tpu.memory_space<vmem>>, vector<1x128xf32>
    %c108 = arith.constant 108 : index
    %c0_473 = arith.constant 0 : index
    %571 = vector.load %arg9[%c108, %c0_473] : memref<128x128xf32, #tpu.memory_space<vmem>>, vector<1x128xf32>
    %572 = tpu.concatenate %568, %569, %570, %571 in 0 : vector<1x128xf32>, vector<1x128xf32>, vector<1x128xf32>, vector<1x128xf32> -> vector<4x128xf32>
    %573 = arith.truncf %572 : vector<4x128xf32> to vector<4x128xbf16>
    %c4_474 = arith.constant 4 : index
    %c0_475 = arith.constant 0 : index
    %c0_476 = arith.constant 0 : index
    %574 = vector.load %arg5[%c4_474, %c0_475, %c0_476] : memref<8x128x128xbf16, #tpu.memory_space<vmem>>, vector<1x128x128xbf16>
    %575 = vector.shape_cast %574 : vector<1x128x128xbf16> to vector<128x128xbf16>
    %cst_477 = arith.constant dense<0.000000e+00> : vector<4x128xf32>
    %576 = tpu.matmul %573, %575, %cst_477 {dimension_numbers = #tpu.dot_dimension_numbers<[1], [0], [0], [1], [0, 0, 1, 1], [], []>} : vector<4x128xbf16>, vector<128x128xbf16>, vector<4x128xf32> -> vector<4x128xf32>
    %577 = arith.addf %567, %576 : vector<4x128xf32>
    %c13_478 = arith.constant 13 : index
    %c0_479 = arith.constant 0 : index
    %578 = vector.load %arg9[%c13_478, %c0_479] : memref<128x128xf32, #tpu.memory_space<vmem>>, vector<1x128xf32>
    %c45 = arith.constant 45 : index
    %c0_480 = arith.constant 0 : index
    %579 = vector.load %arg9[%c45, %c0_480] : memref<128x128xf32, #tpu.memory_space<vmem>>, vector<1x128xf32>
    %c77 = arith.constant 77 : index
    %c0_481 = arith.constant 0 : index
    %580 = vector.load %arg9[%c77, %c0_481] : memref<128x128xf32, #tpu.memory_space<vmem>>, vector<1x128xf32>
    %c109 = arith.constant 109 : index
    %c0_482 = arith.constant 0 : index
    %581 = vector.load %arg9[%c109, %c0_482] : memref<128x128xf32, #tpu.memory_space<vmem>>, vector<1x128xf32>
    %582 = tpu.concatenate %578, %579, %580, %581 in 0 : vector<1x128xf32>, vector<1x128xf32>, vector<1x128xf32>, vector<1x128xf32> -> vector<4x128xf32>
    %583 = arith.truncf %582 : vector<4x128xf32> to vector<4x128xbf16>
    %c5_483 = arith.constant 5 : index
    %c0_484 = arith.constant 0 : index
    %c0_485 = arith.constant 0 : index
    %584 = vector.load %arg5[%c5_483, %c0_484, %c0_485] : memref<8x128x128xbf16, #tpu.memory_space<vmem>>, vector<1x128x128xbf16>
    %585 = vector.shape_cast %584 : vector<1x128x128xbf16> to vector<128x128xbf16>
    %cst_486 = arith.constant dense<0.000000e+00> : vector<4x128xf32>
    %586 = tpu.matmul %583, %585, %cst_486 {dimension_numbers = #tpu.dot_dimension_numbers<[1], [0], [0], [1], [0, 0, 1, 1], [], []>} : vector<4x128xbf16>, vector<128x128xbf16>, vector<4x128xf32> -> vector<4x128xf32>
    %587 = arith.addf %577, %586 : vector<4x128xf32>
    %c14_487 = arith.constant 14 : index
    %c0_488 = arith.constant 0 : index
    %588 = vector.load %arg9[%c14_487, %c0_488] : memref<128x128xf32, #tpu.memory_space<vmem>>, vector<1x128xf32>
    %c46 = arith.constant 46 : index
    %c0_489 = arith.constant 0 : index
    %589 = vector.load %arg9[%c46, %c0_489] : memref<128x128xf32, #tpu.memory_space<vmem>>, vector<1x128xf32>
    %c78 = arith.constant 78 : index
    %c0_490 = arith.constant 0 : index
    %590 = vector.load %arg9[%c78, %c0_490] : memref<128x128xf32, #tpu.memory_space<vmem>>, vector<1x128xf32>
    %c110 = arith.constant 110 : index
    %c0_491 = arith.constant 0 : index
    %591 = vector.load %arg9[%c110, %c0_491] : memref<128x128xf32, #tpu.memory_space<vmem>>, vector<1x128xf32>
    %592 = tpu.concatenate %588, %589, %590, %591 in 0 : vector<1x128xf32>, vector<1x128xf32>, vector<1x128xf32>, vector<1x128xf32> -> vector<4x128xf32>
    %593 = arith.truncf %592 : vector<4x128xf32> to vector<4x128xbf16>
    %c6_492 = arith.constant 6 : index
    %c0_493 = arith.constant 0 : index
    %c0_494 = arith.constant 0 : index
    %594 = vector.load %arg5[%c6_492, %c0_493, %c0_494] : memref<8x128x128xbf16, #tpu.memory_space<vmem>>, vector<1x128x128xbf16>
    %595 = vector.shape_cast %594 : vector<1x128x128xbf16> to vector<128x128xbf16>
    %cst_495 = arith.constant dense<0.000000e+00> : vector<4x128xf32>
    %596 = tpu.matmul %593, %595, %cst_495 {dimension_numbers = #tpu.dot_dimension_numbers<[1], [0], [0], [1], [0, 0, 1, 1], [], []>} : vector<4x128xbf16>, vector<128x128xbf16>, vector<4x128xf32> -> vector<4x128xf32>
    %597 = arith.addf %587, %596 : vector<4x128xf32>
    %c15_496 = arith.constant 15 : index
    %c0_497 = arith.constant 0 : index
    %598 = vector.load %arg9[%c15_496, %c0_497] : memref<128x128xf32, #tpu.memory_space<vmem>>, vector<1x128xf32>
    %c47 = arith.constant 47 : index
    %c0_498 = arith.constant 0 : index
    %599 = vector.load %arg9[%c47, %c0_498] : memref<128x128xf32, #tpu.memory_space<vmem>>, vector<1x128xf32>
    %c79 = arith.constant 79 : index
    %c0_499 = arith.constant 0 : index
    %600 = vector.load %arg9[%c79, %c0_499] : memref<128x128xf32, #tpu.memory_space<vmem>>, vector<1x128xf32>
    %c111 = arith.constant 111 : index
    %c0_500 = arith.constant 0 : index
    %601 = vector.load %arg9[%c111, %c0_500] : memref<128x128xf32, #tpu.memory_space<vmem>>, vector<1x128xf32>
    %602 = tpu.concatenate %598, %599, %600, %601 in 0 : vector<1x128xf32>, vector<1x128xf32>, vector<1x128xf32>, vector<1x128xf32> -> vector<4x128xf32>
    %603 = arith.truncf %602 : vector<4x128xf32> to vector<4x128xbf16>
    %c7_501 = arith.constant 7 : index
    %c0_502 = arith.constant 0 : index
    %c0_503 = arith.constant 0 : index
    %604 = vector.load %arg5[%c7_501, %c0_502, %c0_503] : memref<8x128x128xbf16, #tpu.memory_space<vmem>>, vector<1x128x128xbf16>
    %605 = vector.shape_cast %604 : vector<1x128x128xbf16> to vector<128x128xbf16>
    %cst_504 = arith.constant dense<0.000000e+00> : vector<4x128xf32>
    %606 = tpu.matmul %603, %605, %cst_504 {dimension_numbers = #tpu.dot_dimension_numbers<[1], [0], [0], [1], [0, 0, 1, 1], [], []>} : vector<4x128xbf16>, vector<128x128xbf16>, vector<4x128xf32> -> vector<4x128xf32>
    %607 = arith.addf %597, %606 : vector<4x128xf32>
    %c0_505 = arith.constant 0 : index
    %c0_506 = arith.constant 0 : index
    %608 = vector.load %arg6[%c0_505, %c0_506] : memref<1x128xf32, #tpu.memory_space<vmem>>, vector<1x128xf32>
    %609 = vector.broadcast %608 : vector<1x128xf32> to vector<4x128xf32>
    %610 = arith.addf %607, %609 : vector<4x128xf32>
    %c0_507 = arith.constant 0 : index
    %c0_508 = arith.constant 0 : index
    %611 = vector.load %arg7[%c0_507, %c0_508] : memref<4x128xf32, #tpu.memory_space<vmem>>, vector<4x128xf32>
    tpu.vector_store %arg7[%c0_507, %c0_508], %610 {strides = array<i32>} : memref<4x128xf32, #tpu.memory_space<vmem>>, vector<4x128xf32>,
    return
  }
  func.func @transform_0(%arg0: i32) -> (i32, i32, i32) {
    %c0_i32 = arith.constant 0 : i32
    %c0_i32_0 = arith.constant 0 : i32
    %c0_i32_1 = arith.constant 0 : i32
    %c0_i32_2 = arith.constant 0 : i32
    return %c0_i32, %c0_i32_0, %c0_i32_1 : i32, i32, i32
  }
  func.func @transform_1(%arg0: i32) -> (i32, i32, i32) {
    %c0_i32 = arith.constant 0 : i32
    %c0_i32_0 = arith.constant 0 : i32
    %c0_i32_1 = arith.constant 0 : i32
    %c0_i32_2 = arith.constant 0 : i32
    return %c0_i32, %c0_i32_0, %c0_i32_1 : i32, i32, i32
  }
  func.func @transform_2(%arg0: i32) -> (i32, i32) {
    %c0_i32 = arith.constant 0 : i32
    %c0_i32_0 = arith.constant 0 : i32
    %c0_i32_1 = arith.constant 0 : i32
    return %c0_i32, %c0_i32_0 : i32, i32
  }
  func.func @transform_3(%arg0: i32) -> (i32, i32) {
    %c0_i32 = arith.constant 0 : i32
    %c0_i32_0 = arith.constant 0 : i32
    %c0_i32_1 = arith.constant 0 : i32
    return %c0_i32, %c0_i32_0 : i32, i32
  }
  func.func @transform_4(%arg0: i32) -> (i32, i32, i32) {
    %c0_i32 = arith.constant 0 : i32
    %c0_i32_0 = arith.constant 0 : i32
    %c0_i32_1 = arith.constant 0 : i32
    %c0_i32_2 = arith.constant 0 : i32
    return %c0_i32, %c0_i32_0, %c0_i32_1 : i32, i32, i32
  }
  func.func @transform_5(%arg0: i32) -> (i32, i32) {
    %c0_i32 = arith.constant 0 : i32
    %c0_i32_0 = arith.constant 0 : i32
    %c0_i32_1 = arith.constant 0 : i32
    return %c0_i32, %c0_i32_0 : i32, i32
  }
  func.func @transform_6(%arg0: i32) -> (i32, i32) {
    %c0_i32 = arith.constant 0 : i32
    %c0_i32_0 = arith.constant 0 : i32
    %c0_i32_1 = arith.constant 0 : i32
    return %c0_i32, %c0_i32_0 : i32, i32
  }
}

</mosaic_0001>

<bundles_post_ra>
// kernel: tpu_custom_call.1
= control target key start
LH: loop header
LB: loop body
LE: loop exit
PB: predicated region body
PF: predicated region fallthrough
CT: control target
= control target key end

     0   :  { %11 = vsyncpa [#allocation5], 0  ;;  %s6347_s0 = inlined_call_operand.vmem [shape: f32[4,16,8], index: 0, kind: input, shape index: {}]   ;;  %s6348_s1 = inlined_call_operand.hbm [shape: bf16[26,128,128], index: 1, kind: input, shape index: {}]   ;;  %s6349_s2 = inlined_call_operand.vmem [shape: f32[6,128], index: 2, kind: input, shape index: {}]   ;;  %s6350_s3 = inlined_call_operand.vmem [shape: f32[6,128], index: 3, kind: input, shape index: {}]   ;;  %s6351_s4 = inlined_call_operand.hbm [shape: bf16[8,128,128], index: 4, kind: input, shape index: {}]   ;;  %s6352_s5 = inlined_call_operand.vmem [shape: f32[1,128], index: 5, kind: input, shape index: {}]   ;;  %s6353_s6 = inlined_call_operand.hbm [shape: f32[4,128], index: 6, kind: output, shape index: {}]  }
   0x1   :  { %12 = vsyncpa [#allocation8], 0 }
   0x2   :  { %13 = vsyncpa [#allocation6], 0  ;;  %s20_s23 = sshll.u32 %s6348_s1, 4  ;;  %s5741_s24 = smov [#allocation4]   ;;  %s21_s23 = int_to_ptr.hbm [resolvable:$true] %s20_s23 }
   0x3   :  { %s22_s25 = sshll.u32 %s5741_s24, 4  ;;  %s37_s28 = sshll.u32 %s6351_s4, 4  ;;  %s23_s25 = int_to_ptr.vmem [resolvable:$true] %s22_s25  ;;  %s38_s28 = int_to_ptr.hbm [resolvable:$true] %s37_s28 }
   0x4   :  { %s5742_s29 = smov 64   ;;  %s5743_s30 = smov 4  }
   0x5   :  { %28 = dma.hbm_to_vmem [thread:$0]  %s21_s23, 26624, %s23_s25, [#allocation5], %s5742_s29, %s5742_s29, %s5743_s30  }
   0x6   :  { %s5744_s7 = smov [#allocation7]  }
   0x7   :  { %s39_s8 = sshll.u32 %s5744_s7, 4  ;;  %s40_s8 = int_to_ptr.vmem [resolvable:$true] %s39_s8 }
   0x8   :  { %45 = dma.hbm_to_vmem [thread:$0]  %s38_s28, 8192, %s40_s8, [#allocation8], %s5742_s29, %s5742_s29, %s5743_s30  }
   0x9   :  { %5735 = dma.done.wait [#allocation5], 26624  }
   0xa   :  { %5736 = vsyncadd [#allocation5], 4294940672 }
   0xb   :  { %5737 = dma.done.wait [#allocation8], 8192  }
   0xc   :  { %5738 = vsyncadd [#allocation8], 4294959104  ;;  %v5745_v0 = vmov 0.0   ;;  %v5354_v1 = vld [vmem:[#allocation4 + $0x78] sm:$0xff]  ;;  %v5353_v5 = vld [vmem:[#allocation4 + $0x70] sm:$0xff]  ;;  %vm90_vm0 = vcmask 64512  }
   0xd   :  { %56 = vst [vmem:[#allocation2] sm:$0xff] %v5745_v0  ;;  %v5346_v2 = vld [vmem:[#allocation4 + $0x38] sm:$0xff]  ;;  %221 = vmatpush.bf16.msra.mxu0 %v5354_v1  ;;  %v5345_v6 = vld [vmem:[#allocation4 + $0x30] sm:$0xff]  ;;  %v5352_v9 = vld [vmem:[#allocation4 + $0x68] sm:$0xff]  ;;  %s5746_s20 = smov [#allocation9]   ;;  %s4234_s23 = sshll.u32 %s6353_s6, 4  ;;  %s4235_s23 = int_to_ptr.hbm [resolvable:$true] %s4234_s23 }
   0xe   :  { %59 = vst [vmem:[#allocation2 + $0x18] sm:$0xff] %v5745_v0  ;;  %v5362_v3 = vld [vmem:[#allocation4 + $0xb8] sm:$0xff]  ;;  %298 = vmatpush.bf16.msra.mxu1 %v5346_v2  ;;  %v5361_v7 = vld [vmem:[#allocation4 + $0xb0] sm:$0xff]  ;;  %v5344_v10 = vld [vmem:[#allocation4 + $0x28] sm:$0xff]  ;;  %s4232_s21 = sshll.u32 %s5746_s20, 4  ;;  %s4233_s21 = int_to_ptr.vmem [resolvable:$true] %s4232_s21 }
   0xf   :  { %60 = vst [vmem:[#allocation2 + $0x20] sm:$0xff] %v5745_v0  ;;  %v5370_v4 = vld [vmem:[#allocation4 + $0xf8] sm:$0xff]  ;;  %404 = vmatpush.bf16.msra.mxu2 %v5362_v3  ;;  %v5369_v8 = vld [vmem:[#allocation4 + $0xf0] sm:$0xff]  ;;  %v5360_v11 = vld [vmem:[#allocation4 + $0xa8] sm:$0xff] }
  0x10   :  { %63 = vst [vmem:[#allocation2 + $0x38] sm:$0xff] %v5745_v0  ;;  %518 = vmatpush.bf16.msra.mxu3 %v5370_v4  ;;  %v5368_v12 = vld [vmem:[#allocation4 + $0xe8] sm:$0xff]  ;;  %v5351_v13 = vld [vmem:[#allocation4 + $0x60] sm:$0xff]  ;;  %v5805_v21 = vld [vmem:[%s6347_s0 + $0x10] sm:$0xff] }
  0x11   :  { %64 = vst [vmem:[#allocation2 + $0x40] sm:$0xff] %v5745_v0  ;;  %222 = vmatpush.bf16.msra.mxu0 %v5353_v5  ;;  %v5343_v14 = vld [vmem:[#allocation4 + $0x20] sm:$0xff]  ;;  %v5796_v18 = vld [vmem:[%s6347_s0 + $0x8] sm:$0xff]  ;;  %v5810_v22 = vld [vmem:[%s6347_s0 + $0x18] sm:$0xff]  ;;  %v98_v23 = vsel %vm90_vm0, %v5805_v21, 0.0 }
  0x12   :  { %67 = vst [vmem:[#allocation2 + $0x58] sm:$0xff] %v5745_v0  ;;  %299 = vmatpush.bf16.msra.mxu1 %v5345_v6  ;;  %v5791_v15 = vld [vmem:[%s6347_s0] sm:$0xff]  ;;  %v92_v20 = vsel %vm90_vm0, %v5796_v18, 0.0  ;;  %v99_v24 = vsel %vm90_vm0, %v5810_v22, 0.0  ;;  %v5350_v25 = vld [vmem:[#allocation4 + $0x58] sm:$0xff]  ;;  %v5349_v29 = vld [vmem:[#allocation4 + $0x50] sm:$0xff] }
  0x13   :  { %68 = vst [vmem:[#allocation2 + $0x60] sm:$0xff] %v5745_v0  ;;  %405 = vmatpush.bf16.msra.mxu2 %v5361_v7  ;;  %v5359_v16 = vld [vmem:[#allocation4 + $0xa0] sm:$0xff]  ;;  %v91_v19 = vsel %vm90_vm0, %v5791_v15, 0.0  ;;  %v5342_v26 = vld [vmem:[#allocation4 + $0x18] sm:$0xff]  ;;  %v5341_v30 = vld [vmem:[#allocation4 + $0x10] sm:$0xff]  ;;  %v5652_v57 = vpack.c.bf16 %v5796_v18, %v5791_v15 }
  0x14   :  { %71 = vst [vmem:[#allocation2 + $0x78] sm:$0xff] %v5745_v0  ;;  %519 = vmatpush.bf16.msra.mxu3 %v5369_v8  ;;  %v5367_v17 = vld [vmem:[#allocation4 + $0xe0] sm:$0xff]  ;;  %v5358_v27 = vld [vmem:[#allocation4 + $0x98] sm:$0xff]  ;;  %v5357_v32 = vld [vmem:[#allocation4 + $0x90] sm:$0xff] }
  0x15   :  { %72 = vst [vmem:[#allocation3] sm:$0xff] %v5745_v0  ;;  %223 = vmatpush.bf16.msra.mxu0 %v5352_v9  ;;  %v5366_v28 = vld [vmem:[#allocation4 + $0xd8] sm:$0xff]  ;;  %v5819_v31 = vld [vmem:[%s6347_s0 + $0x20] sm:$0xff]  ;;  %v5365_v33 = vld [vmem:[#allocation4 + $0xd0] sm:$0xff] }
  0x16   :  { %75 = vst [vmem:[#allocation3 + $0x18] sm:$0xff] %v5745_v0  ;;  %300 = vmatpush.bf16.msra.mxu1 %v5344_v10  ;;  %v5824_v34 = vld [vmem:[%s6347_s0 + $0x28] sm:$0xff]  ;;  %v105_v35 = vsel %vm90_vm0, %v5819_v31, 0.0  ;;  %v5347_v41 = vld [vmem:[#allocation4 + $0x40] sm:$0xff]  ;;  %v5378_v51 = vld [vmem:[#allocation4 + $0x138] sm:$0xff] }
  0x17   :  { %76 = vst [vmem:[#allocation3 + $0x20] sm:$0xff] %v5745_v0  ;;  %406 = vmatpush.bf16.msra.mxu2 %v5360_v11  ;;  %v106_v36 = vsel %vm90_vm0, %v5824_v34, 0.0  ;;  %v5348_v37 = vld [vmem:[#allocation4 + $0x48] sm:$0xff]  ;;  %v5339_v42 = vld [vmem:[#allocation4] sm:$0xff]  ;;  %v5377_v55 = vld [vmem:[#allocation4 + $0x130] sm:$0xff]  ;;  %v5655_v11 = vpack.c.bf16 %v5810_v22, %v5805_v21  ;;  %v5658_v21 = vpack.c.bf16 %v5824_v34, %v5819_v31 }
  0x18   :  { %79 = vst [vmem:[#allocation3 + $0x38] sm:$0xff] %v5745_v0  ;;  %520 = vmatpush.bf16.msra.mxu3 %v5368_v12  ;;  %v5340_v38 = vld [vmem:[#allocation4 + $0x8] sm:$0xff]  ;;  %v5355_v43 = vld [vmem:[#allocation4 + $0x80] sm:$0xff]  ;;  %vm5832_vm1 = vmpackc.low %vm90_vm0, %vm90_vm0 }
  0x19   :  { %80 = vst [vmem:[#allocation3 + $0x40] sm:$0xff] %v5745_v0  ;;  %224 = vmatpush.bf16.msra.mxu0 %v5351_v13  ;;  %v5356_v39 = vld [vmem:[#allocation4 + $0x88] sm:$0xff]  ;;  %v5363_v48 = vld [vmem:[#allocation4 + $0xc0] sm:$0xff]  ;;  %v4249_v58 = vld [vmem:[%s6347_s0 + $0x30] sm:$0xff] }
  0x1a   :  { %83 = vst [vmem:[#allocation3 + $0x58] sm:$0xff] %v5745_v0  ;;  %301 = vmatpush.bf16.msra.mxu1 %v5343_v14  ;;  %v5364_v40 = vld [vmem:[#allocation4 + $0xc8] sm:$0xff]  ;;  %v4250_v59 = vld [vmem:[%s6347_s0 + $0x38] sm:$0xff]  ;;  %v112_v60 = vsel %vm90_vm0, %v4249_v58, 0.0  ;;  %v5375_v63 = vld [vmem:[#allocation4 + $0x120] sm:$0xff] }
  0x1b   :  { %84 = vst [vmem:[#allocation3 + $0x60] sm:$0xff] %v5745_v0  ;;  %407 = vmatpush.bf16.msra.mxu2 %v5359_v16  ;;  %v5376_v61 = vld [vmem:[#allocation4 + $0x128] sm:$0xff]  ;;  %v113_v62 = vsel %vm90_vm0, %v4250_v59, 0.0  ;;  %v5374_v6 = vld [vmem:[#allocation4 + $0x118] sm:$0xff]  ;;  %v5373_v10 = vld [vmem:[#allocation4 + $0x110] sm:$0xff] }
  0x1c   :  { %87 = vst [vmem:[#allocation3 + $0x78] sm:$0xff] %v5745_v0  ;;  %521 = vmatpush.bf16.msra.mxu3 %v5367_v17  ;;  %v5372_v12 = vld [vmem:[#allocation4 + $0x108] sm:$0xff]  ;;  %v5371_v13 = vld [vmem:[#allocation4 + $0x100] sm:$0xff] }
  0x1d   :  { %93 = vst [vmem:[#allocation2 + $0x8] sm:$0xff] %v91_v19  ;;  %225 = vmatpush.bf16.msra.mxu0 %v5350_v25 }
  0x1e   :  { %94 = vst [vmem:[#allocation2 + $0x10] sm:$0xff] %v92_v20  ;;  %302 = vmatpush.bf16.msra.mxu1 %v5342_v26 }
  0x1f   :  { %100 = vst [vmem:[#allocation2 + $0x28] sm:$0xff] %v98_v23  ;;  %408 = vmatpush.bf16.msra.mxu2 %v5358_v27 }
  0x20   :  { %101 = vst [vmem:[#allocation2 + $0x30] sm:$0xff] %v99_v24  ;;  %522 = vmatpush.bf16.msra.mxu3 %v5366_v28 }
  0x21   :  { %107 = vst [vmem:[#allocation2 + $0x48] sm:$0xff] %v105_v35  ;;  %226 = vmatpush.bf16.msra.mxu0 %v5349_v29  ;;  %v5661_v35 = vpack.c.bf16 %v4250_v59, %v4249_v58 }
  0x22   :  { %108 = vst [vmem:[#allocation2 + $0x50] sm:$0xff] %v106_v36  ;;  %303 = vmatpush.bf16.msra.mxu1 %v5341_v30 }
  0x23   :  { %409 = vmatpush.bf16.msra.mxu2 %v5357_v32  ;;  %114 = vst [vmem:[#allocation2 + $0x68] sm:$0xff] %v112_v60 }
  0x24   :  { %523 = vmatpush.bf16.msra.mxu3 %v5365_v33  ;;  %v144_v44 = vld [vmem:[#allocation2 + $0x7] sm:$0xff]  ;;  %115 = vst [vmem:[#allocation2 + $0x70] sm:$0xff] %v113_v62 }
  0x25   :  { %227 = vmatpush.bf16.msra.mxu0 %v5348_v37  ;;  %v145_v45 = vld [vmem:[#allocation2 + $0xf] sm:$0xff]  ;;  %v116_v46 = vld [vmem:[#allocation2 + $0x6] sm:$0xff] }
  0x26   :  { %304 = vmatpush.bf16.msra.mxu1 %v5340_v38  ;;  %v117_v47 = vld [vmem:[#allocation2 + $0xe] sm:$0xff]  ;;  %v152_v52 = vpack.c.bf16 %v145_v45, %v144_v44  ;;  %v118_v2 = vld [vmem:[#allocation2 + $0x26] sm:$0xff] }
  0x27   :  { %410 = vmatpush.bf16.msra.mxu2 %v5356_v39  ;;  %v441_v49 = vld [vmem:[#allocation2 + $0x9] sm:$0xff]  ;;  %v442_v50 = vld [vmem:[#allocation2 + $0x11] sm:$0xff]  ;;  %v124_v53 = vpack.c.bf16 %v117_v47, %v116_v46 }
  0x28   :  { %524 = vmatpush.bf16.msra.mxu3 %v5364_v40  ;;  %v449_v54 = vpack.c.bf16 %v442_v50, %v441_v49  ;;  %v146_v0 = vld [vmem:[#allocation2 + $0x27] sm:$0xff]  ;;  %v147_v1 = vld [vmem:[#allocation2 + $0x2f] sm:$0xff] }
  0x29   :  { %228 = vmatpush.bf16.msra.mxu0 %v5347_v41  ;;  %v119_v3 = vld [vmem:[#allocation2 + $0x2e] sm:$0xff]  ;;  %v153_v7 = vpack.c.bf16 %v147_v1, %v146_v0  ;;  %v120_v16 = vld [vmem:[#allocation2 + $0x46] sm:$0xff] }
  0x2a   :  { %305 = vmatpush.bf16.msra.mxu1 %v5339_v42  ;;  %v443_v4 = vld [vmem:[#allocation2 + $0x29] sm:$0xff]  ;;  %v444_v5 = vld [vmem:[#allocation2 + $0x31] sm:$0xff]  ;;  %v125_v8 = vpack.c.bf16 %v119_v3, %v118_v2 }
  0x2b   :  { %411 = vmatpush.bf16.msra.mxu2 %v5355_v43  ;;  %v450_v9 = vpack.c.bf16 %v444_v5, %v443_v4  ;;  %v148_v14 = vld [vmem:[#allocation2 + $0x47] sm:$0xff]  ;;  %v149_v15 = vld [vmem:[#allocation2 + $0x4f] sm:$0xff] }
  0x2c   :  { %525 = vmatpush.bf16.msra.mxu3 %v5363_v48  ;;  %229 = vmatmul.bf16.vlgmr.msra.gmra.mxu0 %v152_v52  ;;  %v121_v17 = vld [vmem:[#allocation2 + $0x4e] sm:$0xff]  ;;  %v154_v20 = vpack.c.bf16 %v149_v15, %v148_v14  ;;  %v122_v26 = vld [vmem:[#allocation2 + $0x66] sm:$0xff] }
  0x2d   :  { %632 = vmatpush.bf16.msrb.mxu0 %v5378_v51  ;;  %306 = vmatmul.bf16.vlgmr.msra.gmra.mxu1 %v124_v53  ;;  %v445_v18 = vld [vmem:[#allocation2 + $0x49] sm:$0xff]  ;;  %v446_v19 = vld [vmem:[#allocation2 + $0x51] sm:$0xff]  ;;  %v126_v23 = vpack.c.bf16 %v121_v17, %v120_v16 }
  0x2e   :  { %5653 = vmatmul.msk.bf16.vlgmr.msra.gmra.mxu2 %vm5832_vm1, %v5652_v57  ;;  %v451_v24 = vpack.c.bf16 %v446_v19, %v445_v18  ;;  %v150_v22 = vld [vmem:[#allocation2 + $0x67] sm:$0xff]  ;;  %v151_v25 = vld [vmem:[#allocation2 + $0x6f] sm:$0xff] }
  0x2f   :  { %526 = vmatmul.bf16.vlgmr.msra.gmra.mxu3 %v449_v54  ;;  %v123_v27 = vld [vmem:[#allocation2 + $0x6e] sm:$0xff]  ;;  %v155_v30 = vpack.c.bf16 %v151_v25, %v150_v22 }
  0x30   :  { %v447_v28 = vld [vmem:[#allocation2 + $0x69] sm:$0xff]  ;;  %v448_v29 = vld [vmem:[#allocation2 + $0x71] sm:$0xff]  ;;  %v127_v32 = vpack.c.bf16 %v123_v27, %v122_v26 }
  0x31   :  { %633 = vmatpush.bf16.msrb.mxu0 %v5377_v55  ;;  %v452_v33 = vpack.c.bf16 %v448_v29, %v447_v28  ;;  %v555_v31 = vld [vmem:[#allocation2 + $0xa] sm:$0xff]  ;;  %v556_v34 = vld [vmem:[#allocation2 + $0x12] sm:$0xff] }
  0x32   :  { %v563_v36 = vpack.c.bf16 %v556_v34, %v555_v31  ;;  %v557_v37 = vld [vmem:[#allocation2 + $0x2a] sm:$0xff]  ;;  %v558_v38 = vld [vmem:[#allocation2 + $0x32] sm:$0xff] }
  0x33   :  { %v564_v39 = vpack.c.bf16 %v558_v38, %v557_v37  ;;  %v559_v40 = vld [vmem:[#allocation2 + $0x4a] sm:$0xff]  ;;  %v560_v41 = vld [vmem:[#allocation2 + $0x52] sm:$0xff] }
  0x34   :  { %v565_v42 = vpack.c.bf16 %v560_v41, %v559_v40  ;;  %v561_v43 = vld [vmem:[#allocation2 + $0x6a] sm:$0xff]  ;;  %v562_v44 = vld [vmem:[#allocation2 + $0x72] sm:$0xff] }
  0x35   :  { %634 = vmatpush.bf16.msrb.mxu0 %v5376_v61  ;;  %v566_v45 = vpack.c.bf16 %v562_v44, %v561_v43  ;;  %v5402_v29 = vld [vmem:[#allocation4 + $0x1f8] sm:$0xff]  ;;  %v5401_v31 = vld [vmem:[#allocation4 + $0x1f0] sm:$0xff]  ;;  %v5400_v43 = vld [vmem:[#allocation4 + $0x1e8] sm:$0xff] }
  0x36   :  { %1078 = vmatpush.bf16.msrb.mxu3 %v5402_v29  ;;  %v5394_v40 = vld [vmem:[#allocation4 + $0x1b8] sm:$0xff] }
  0x37   :  { %v5386_v41 = vld [vmem:[#allocation4 + $0x178] sm:$0xff]  ;;  %895 = vmatpush.bf16.msrb.mxu1 %v5394_v40 }
  0x38   :  { %972 = vmatpush.bf16.msrb.mxu2 %v5386_v41  ;;  %v5382_v29 = vld [vmem:[#allocation4 + $0x158] sm:$0xff] }
  0x39   :  { %635 = vmatpush.bf16.msrb.mxu0 %v5375_v63 }
  0x3a   :  { %1079 = vmatpush.bf16.msrb.mxu3 %v5401_v31 }
  0x3c   :  { %234 = vmatmul.bf16.gmra.mxu0 %v153_v7 }
  0x3d   :  { %636 = vmatpush.bf16.msrb.mxu0 %v5374_v6  ;;  %311 = vmatmul.bf16.gmra.mxu1 %v125_v8 }
  0x3e   :  { %5656 = vmatmul.msk.bf16.gmra.mxu2 %vm5832_vm1, %v5655_v11  ;;  %1080 = vmatpush.bf16.msrb.mxu3 %v5400_v43 }
  0x3f   :  { %531 = vmatmul.bf16.gmra.mxu3 %v450_v9 }
  0x41   :  { %637 = vmatpush.bf16.msrb.mxu0 %v5373_v10 }
  0x45   :  { %638 = vmatpush.bf16.msrb.mxu0 %v5372_v12 }
  0x49   :  { %639 = vmatpush.bf16.msrb.mxu0 %v5371_v13 }
  0x4c   :  { %239 = vmatmul.bf16.gmra.mxu0 %v154_v20 }
  0x4d   :  { %316 = vmatmul.bf16.gmra.mxu1 %v126_v23 }
  0x4e   :  { %5659 = vmatmul.msk.bf16.gmra.mxu2 %vm5832_vm1, %v5658_v21 }
  0x4f   :  { %536 = vmatmul.bf16.gmra.mxu3 %v451_v24 }
  0x5c   :  { %244 = vmatmul.bf16.gmra.mxu0 %v155_v30 }
  0x5d   :  { %321 = vmatmul.bf16.gmra.mxu1 %v127_v32 }
  0x5e   :  { %5662 = vmatmul.msk.bf16.gmra.mxu2 %vm5832_vm1, %v5661_v35 }
  0x5f   :  { %541 = vmatmul.bf16.gmra.mxu3 %v452_v33 }
  0x6c   :  { %640 = vmatmul.bf16.vlgmr.msrb.gmra.mxu0 %v563_v36 }
  0x7c   :  { %645 = vmatmul.bf16.gmra.mxu0 %v564_v39 }
  0x8c   :  { %650 = vmatmul.bf16.gmra.mxu0 %v565_v42  ;;  %v5410_v42 = vld [vmem:[#allocation4 + $0x238] sm:$0xff] }
  0x8d   :  { %1192 = vmatpush.bf16.msra.mxu0 %v5410_v42 }
  0x9c   :  { %655 = vmatmul.bf16.gmra.mxu0 %v566_v45 }
  0xa9   :  { %v230_v46 = vpop.f32.mrf.mxu0 }
  0xaa   :  { %v307_v51 = vpop.f32.mrf.mxu1 }
  0xab   :  { %v308_v1 = vadd.f32 %v307_v51, %v230_v46  ;;  %v5393_v51 = vld [vmem:[#allocation4 + $0x1b0] sm:$0xff] }
  0xac   :  { %896 = vmatpush.bf16.msrb.mxu1 %v5393_v51 }
  0xb1   :  { %v232_v47 = vpop.f32.mrf.mxu0  ;;  %v413_v53 = vpop.f32.mrf.mxu2 }
  0xb2   :  { %v527_v54 = vpop.f32.mrf.mxu3  ;;  %v309_v56 = vpop.f32.mrf.mxu1  ;;  %v433_v4 = vadd.f32 %v413_v53, %v308_v1  ;;  %v5385_v53 = vld [vmem:[#allocation4 + $0x170] sm:$0xff] }
  0xb3   :  { %v310_v0 = vadd.f32 %v309_v56, %v232_v47  ;;  %v5399_v56 = vld [vmem:[#allocation4 + $0x1e0] sm:$0xff]  ;;  %973 = vmatpush.bf16.msrb.mxu2 %v5385_v53 }
  0xb4   :  { %v547_v9 = vadd.f32 %v527_v54, %v433_v4  ;;  %v5409_v54 = vld [vmem:[#allocation4 + $0x230] sm:$0xff]  ;;  %1081 = vmatpush.bf16.msrb.mxu3 %v5399_v56  ;;  %v5380_v56 = vld [vmem:[#allocation4 + $0x148] sm:$0xff] }
  0xb5   :  { %1193 = vmatpush.bf16.msra.mxu0 %v5409_v54  ;;  %v5388_v54 = vld [vmem:[#allocation4 + $0x188] sm:$0xff] }
  0xb9   :  { %v235_v48 = vpop.f32.mrf.mxu0  ;;  %v415_v57 = vpop.f32.mrf.mxu2 }
  0xba   :  { %v529_v58 = vpop.f32.mrf.mxu3  ;;  %v312_v60 = vpop.f32.mrf.mxu1  ;;  %v434_v2 = vadd.f32 %v415_v57, %v310_v0 }
  0xbb   :  { %v313_v7 = vadd.f32 %v312_v60, %v235_v48 }
  0xbc   :  { %v548_v8 = vadd.f32 %v529_v58, %v434_v2 }
  0xc1   :  { %v237_v49 = vpop.f32.mrf.mxu0  ;;  %v418_v61 = vpop.f32.mrf.mxu2 }
  0xc2   :  { %v532_v63 = vpop.f32.mrf.mxu3  ;;  %v314_v3 = vpop.f32.mrf.mxu1  ;;  %v435_v10 = vadd.f32 %v418_v61, %v313_v7  ;;  %v5398_v7 = vld [vmem:[#allocation4 + $0x1d8] sm:$0xff] }
  0xc3   :  { %v315_v18 = vadd.f32 %v314_v3, %v237_v49  ;;  %v5392_v3 = vld [vmem:[#allocation4 + $0x1a8] sm:$0xff]  ;;  %1082 = vmatpush.bf16.msrb.mxu3 %v5398_v7 }
  0xc4   :  { %v549_v14 = vadd.f32 %v532_v63, %v435_v10  ;;  %897 = vmatpush.bf16.msrb.mxu1 %v5392_v3 }
  0xc9   :  { %v5858_v50 = vpop.f32.mrf.mxu0  ;;  %v420_v5 = vpop.f32.mrf.mxu2 }
  0xca   :  { %v534_v12 = vpop.f32.mrf.mxu3  ;;  %v317_v15 = vpop.f32.mrf.mxu1  ;;  %v436_v21 = vadd.f32 %v420_v5, %v315_v18  ;;  %v5384_v5 = vld [vmem:[#allocation4 + $0x168] sm:$0xff]  ;;  %v5383_v18 = vld [vmem:[#allocation4 + $0x160] sm:$0xff] }
  0xcb   :  { %974 = vmatpush.bf16.msrb.mxu2 %v5384_v5 }
  0xcc   :  { %v550_v30 = vadd.f32 %v534_v12, %v436_v21 }
  0xcf   :  { %975 = vmatpush.bf16.msrb.mxu2 %v5383_v18 }
  0xd1   :  { %v5860_v52 = vpop.f32.mrf.mxu0  ;;  %v423_v19 = vpop.f32.mrf.mxu2 }
  0xd2   :  { %v537_v28 = vpop.f32.mrf.mxu3  ;;  %v319_v33 = vpop.f32.mrf.mxu1 }
  0xd3   :  { %v320_v57 = vadd.f32 %v319_v33, %v5860_v52  ;;  %976 = vmatpush.bf16.msrb.mxu2 %v5382_v29 }
  0xd9   :  { %v5862_v55 = vpop.f32.mrf.mxu0  ;;  %v425_v34 = vpop.f32.mrf.mxu2 }
  0xda   :  { %v539_v46 = vpop.f32.mrf.mxu3  ;;  %v322_v58 = vpop.f32.mrf.mxu1  ;;  %v438_v63 = vadd.f32 %v425_v34, %v320_v57  ;;  %v5404_v57 = vld [vmem:[#allocation4 + $0x208] sm:$0xff] }
  0xdc   :  { %v552_v10 = vadd.f32 %v539_v46, %v438_v63  ;;  %v5405_v46 = vld [vmem:[#allocation4 + $0x210] sm:$0xff] }
  0xe1   :  { %v5864_v59 = vpop.f32.mrf.mxu0  ;;  %v428_v0 = vpop.f32.mrf.mxu2 }
  0xe9   :  { %v641_v62 = vpop.f32.mrf.mxu0  ;;  %v430_v33 = vpop.f32.mrf.mxu2 }
  0xea   :  { %v5868_v13 = vadd.f32 %v641_v62, %v547_v9  ;;  %v318_v62 = vadd.f32 %v317_v15, %v5858_v50  ;;  %v323_v50 = vadd.f32 %v322_v58, %v5862_v55  ;;  %v5391_v15 = vld [vmem:[#allocation4 + $0x1a0] sm:$0xff]  ;;  %v324_v55 = vpop.f32.mrf.mxu1 }
  0xeb   :  { %898 = vmatpush.bf16.msrb.mxu1 %v5391_v15  ;;  %v5917_v15 = vld [vmem:[%s6349_s2] sm:$0x1] }
  0xec   :  { %v689_v20 = vmul.f32 %v5868_v13, %v5868_v13  ;;  %v437_v4 = vadd.f32 %v423_v19, %v318_v62  ;;  %v5407_v19 = vld [vmem:[#allocation4 + $0x220] sm:$0xff] }
  0xf1   :  { %v643_v6 = vpop.f32.mrf.mxu0 }
  0xf2   :  { %v5866_v11 = vadd.f32 %v643_v6, %v548_v8  ;;  %v5408_v6 = vld [vmem:[#allocation4 + $0x228] sm:$0xff] }
  0xf3   :  { %1194 = vmatpush.bf16.msra.mxu0 %v5408_v6 }
  0xf4   :  { %v690_v16 = vmul.f32 %v5866_v11, %v5866_v11  ;;  %v669_v23 = vadd.f32 %v5866_v11, %v5868_v13 }
  0xf6   :  { %v697_v22 = vadd.f32 %v690_v16, %v689_v20  ;;  %v551_v16 = vadd.f32 %v537_v28, %v437_v4  ;;  %v5397_v20 = vld [vmem:[#allocation4 + $0x1d0] sm:$0xff]  ;;  %v5390_v28 = vld [vmem:[#allocation4 + $0x198] sm:$0xff] }
  0xf7   :  { %1195 = vmatpush.bf16.msra.mxu0 %v5407_v19  ;;  %1083 = vmatpush.bf16.msrb.mxu3 %v5397_v20 }
  0xf8   :  { %899 = vmatpush.bf16.msrb.mxu1 %v5390_v28 }
  0xf9   :  { %v646_v17 = vpop.f32.mrf.mxu0 }
  0xfa   :  { %v5876_v24 = vadd.f32 %v646_v17, %v549_v14  ;;  %v542_v17 = vpop.f32.mrf.mxu3 }
  0xfc   :  { %v670_v25 = vadd.f32 %v669_v23, %v5876_v24  ;;  %v691_v26 = vmul.f32 %v5876_v24, %v5876_v24  ;;  %v439_v23 = vadd.f32 %v428_v0, %v323_v50  ;;  %v5387_v0 = vld [vmem:[#allocation4 + $0x180] sm:$0xff] }
  0xfe   :  { %v698_v27 = vadd.f32 %v697_v22, %v691_v26 }
 0x101   :  { %v648_v32 = vpop.f32.mrf.mxu0 }
 0x102   :  { %v5881_v35 = vadd.f32 %v648_v32, %v550_v30  ;;  %v5406_v30 = vld [vmem:[#allocation4 + $0x218] sm:$0xff]  ;;  %v553_v32 = vadd.f32 %v542_v17, %v439_v23  ;;  %v544_v51 = vpop.f32.mrf.mxu3 }
 0x103   :  { %1196 = vmatpush.bf16.msra.mxu0 %v5406_v30 }
 0x104   :  { %v671_v36 = vadd.f32 %v670_v25, %v5881_v35  ;;  %v692_v37 = vmul.f32 %v5881_v35, %v5881_v35 }
 0x106   :  { %v672_v38 = vrot.slane %v671_v36, 4  ;;  %v699_v39 = vadd.f32 %v698_v27, %v692_v37  ;;  %v325_v37 = vadd.f32 %v324_v55, %v5864_v59 }
 0x107   :  { %1197 = vmatpush.bf16.msra.mxu0 %v5405_v46 }
 0x108   :  { %v673_v44 = vadd.f32 %v672_v38, %v671_v36  ;;  %v700_v45 = vrot.slane %v699_v39, 4  ;;  %v5396_v36 = vld [vmem:[#allocation4 + $0x1c8] sm:$0xff]  ;;  %v440_v43 = vadd.f32 %v430_v33, %v325_v37 }
 0x109   :  { %v651_v47 = vpop.f32.mrf.mxu0  ;;  %1084 = vmatpush.bf16.msrb.mxu3 %v5396_v36 }
 0x10a   :  { %v674_v48 = vrot.slane %v673_v44, 2  ;;  %v701_v49 = vadd.f32 %v700_v45, %v699_v39  ;;  %v5895_v27 = vadd.f32 %v651_v47, %v551_v16  ;;  %v5381_v45 = vld [vmem:[#allocation4 + $0x150] sm:$0xff]  ;;  %v554_v58 = vadd.f32 %v544_v51, %v440_v43 }
 0x10b   :  { %977 = vmatpush.bf16.msrb.mxu2 %v5381_v45  ;;  %1198 = vmatpush.bf16.msra.mxu0 %v5404_v57 }
 0x10c   :  { %v675_v60 = vadd.f32 %v674_v48, %v673_v44  ;;  %v702_v61 = vrot.slane %v701_v49, 2  ;;  %v693_v40 = vmul.f32 %v5895_v27, %v5895_v27  ;;  %v5389_v44 = vld [vmem:[#allocation4 + $0x190] sm:$0xff] }
 0x10d   :  { %900 = vmatpush.bf16.msrb.mxu1 %v5389_v44 }
 0x10e   :  { %v676_v1 = vrot.slane %v675_v60, 1  ;;  %v703_v2 = vadd.f32 %v702_v61, %v701_v49  ;;  %v5395_v49 = vld [vmem:[#allocation4 + $0x1c0] sm:$0xff] }
 0x10f   :  { %1085 = vmatpush.bf16.msrb.mxu3 %v5395_v49  ;;  %978 = vmatpush.bf16.msrb.mxu2 %v5380_v56  ;;  %v5417_v49 = vld [vmem:[#allocation4 + $0x270] sm:$0xff] }
 0x110   :  { %v677_v8 = vadd.f32 %v676_v1, %v675_v60  ;;  %v704_v52 = vrot.slane %v703_v2, 1  ;;  %v5379_v1 = vld [vmem:[#allocation4 + $0x140] sm:$0xff] }
 0x111   :  { %v653_v9 = vpop.f32.mrf.mxu0  ;;  %901 = vmatpush.bf16.msrb.mxu1 %v5388_v54 }
 0x112   :  { %v5889_v12 = vmul.f32 0.03125, %v677_v8  ;;  %v705_v14 = vadd.f32 %v704_v52, %v703_v2  ;;  %v5893_v25 = vadd.f32 %v653_v9, %v552_v10  ;;  %v5403_v2 = vld [vmem:[#allocation4 + $0x200] sm:$0xff] }
 0x113   :  { %979 = vmatpush.bf16.msrb.mxu2 %v5379_v1  ;;  %1199 = vmatpush.bf16.msra.mxu0 %v5403_v2  ;;  %v5416_v2 = vld [vmem:[#allocation4 + $0x268] sm:$0xff] }
 0x114   :  { %v715_v21 = vmul.f32 0.03125, %v705_v14  ;;  %v717_v22 = vmul.f32 %v5889_v12, %v5889_v12  ;;  %v694_v34 = vmul.f32 %v5893_v25, %v5893_v25  ;;  %v678_v41 = vadd.f32 %v5893_v25, %v5895_v27 }
 0x115   :  { %902 = vmatpush.bf16.msrb.mxu1 %v5387_v0 }
 0x116   :  { %v719_v26 = vsub.f32 %v715_v21, %v717_v22  ;;  %v706_v59 = vadd.f32 %v694_v34, %v693_v40  ;;  %v5923_v22 = vld [vmem:[%s6350_s3] sm:$0x1] }
 0x118   :  { %v721_v31 = vmax.f32 %v719_v26, 0.0 }
 0x119   :  { %v656_v38 = vpop.f32.mrf.mxu0 }
 0x11a   :  { %v725_v39 = vadd.f32 1e-05, %v721_v31  ;;  %v5904_v42 = vadd.f32 %v656_v38, %v553_v32 }
 0x11c   :  { %5618 = vrsqrt.f32 %v725_v39  ;;  %v679_v47 = vadd.f32 %v678_v41, %v5904_v42  ;;  %v695_v48 = vmul.f32 %v5904_v42, %v5904_v42  ;;  %vm733_vm3 = vweird.f32 %v725_v39 }
 0x11e   :  { %v707_v53 = vadd.f32 %v706_v59, %v695_v48 }
 0x121   :  { %v658_v60 = vpop.f32.mrf.mxu0 }
 0x122   :  { %v5619_v61 = vpop.eup %5618  ;;  %v5909_v62 = vadd.f32 %v658_v60, %v554_v58 }
 0x123   :  { %v728_v63 = vmul.f32 %v5619_v61, %v725_v39  ;;  %vm734_vm2 = vweird.f32 %v5619_v61 }
 0x124   :  { %v680_v3 = vadd.f32 %v679_v47, %v5909_v62  ;;  %v696_v4 = vmul.f32 %v5909_v62, %v5909_v62  ;;  %vm735_vm4 = vmor %vm733_vm3, %vm734_vm2 }
 0x125   :  { %v729_v5 = vmul.f32 %v5619_v61, %v728_v63 }
 0x126   :  { %v681_v6 = vrot.slane %v680_v3, 4  ;;  %v708_v7 = vadd.f32 %v707_v53, %v696_v4 }
 0x127   :  { %v730_v8 = vmul.f32 0.5, %v729_v5  ;;  %v5415_v5 = vld [vmem:[#allocation4 + $0x260] sm:$0xff] }
 0x128   :  { %v682_v52 = vadd.f32 %v681_v6, %v680_v3  ;;  %v709_v9 = vrot.slane %v708_v7, 4 }
 0x129   :  { %v731_v50 = vsub.f32 1.5, %v730_v8 }
 0x12a   :  { %v683_v10 = vrot.slane %v682_v52, 2  ;;  %v710_v14 = vadd.f32 %v709_v9, %v708_v7 }
 0x12b   :  { %v732_v16 = vmul.f32 %v5619_v61, %v731_v50 }
 0x12c   :  { %v684_v17 = vadd.f32 %v683_v10, %v682_v52  ;;  %v711_v18 = vrot.slane %v710_v14, 2  ;;  %v5414_v52 = vld [vmem:[#allocation4 + $0x258] sm:$0xff] }
 0x12d   :  { %v736_v19 = vsel %vm735_vm4, %v5619_v61, %v732_v16 }
 0x12e   :  { %v747_v20 = vmul.f32 %v736_v19, %v5917_v15  ;;  %v685_v23 = vrot.slane %v684_v17, 1  ;;  %v712_v21 = vadd.f32 %v711_v18, %v710_v14  ;;  %v5413_v18 = vld [vmem:[#allocation4 + $0x250] sm:$0xff] }
 0x130   :  { %v749_v55 = vmul.f32 %v747_v20, %v5889_v12  ;;  %v753_v26 = vperm.slane %v747_v20, 0  ;;  %v686_v28 = vadd.f32 %v685_v23, %v684_v17  ;;  %v713_v29 = vrot.slane %v712_v21, 1 }
 0x132   :  { %v751_v30 = vsub.f32 %v5923_v22, %v749_v55  ;;  %v755_v32 = vmul.f32 %v753_v26, %v5868_v13  ;;  %v757_v33 = vmul.f32 %v753_v26, %v5876_v24  ;;  %v5929_v31 = vmul.f32 0.03125, %v686_v28 }
 0x133   :  { %v714_v34 = vadd.f32 %v713_v29, %v712_v21  ;;  %v756_v36 = vmul.f32 %v753_v26, %v5866_v11  ;;  %v758_v37 = vmul.f32 %v753_v26, %v5881_v35  ;;  %v5418_v35 = vld [vmem:[#allocation4 + $0x278] sm:$0xff] }
 0x134   :  { %v763_v38 = vperm.slane %v751_v30, 0  ;;  %v718_v12 = vmul.f32 %v5929_v31, %v5929_v31  ;;  %1306 = vmatpush.bf16.msra.mxu1 %v5418_v35 }
 0x135   :  { %v716_v39 = vmul.f32 0.03125, %v714_v34 }
 0x136   :  { %v765_v40 = vadd.f32 %v763_v38, %v755_v32  ;;  %v766_v41 = vadd.f32 %v763_v38, %v756_v36  ;;  %v767_v43 = vadd.f32 %v763_v38, %v757_v33  ;;  %v768_v44 = vadd.f32 %v763_v38, %v758_v37 }
 0x137   :  { %v720_v45 = vsub.f32 %v716_v39, %v718_v12 }
 0x138   :  { %v773_v13 = vmax.f32 %v765_v40, 0.0  ;;  %v774_v46 = vmax.f32 %v766_v41, 0.0  ;;  %v775_v24 = vmax.f32 %v767_v43, 0.0  ;;  %v776_v59 = vmax.f32 %v768_v44, 0.0  ;;  %1307 = vmatpush.bf16.msra.mxu1 %v5417_v49 }
 0x139   :  { %v722_v47 = vmax.f32 %v720_v45, 0.0 }
 0x13a   :  { %781 = vst [vmem:[#allocation3 + $0x8] sm:$0xff] %v773_v13  ;;  %v1009_v48 = vpack.c.bf16 %v774_v46, %v773_v13  ;;  %v1010_v7 = vpack.c.bf16 %v776_v59, %v775_v24 }
 0x13b   :  { %782 = vst [vmem:[#allocation3 + $0x10] sm:$0xff] %v774_v46  ;;  %v726_v11 = vadd.f32 1e-05, %v722_v47 }
 0x13c   :  { %783 = vst [vmem:[#allocation3 + $0x28] sm:$0xff] %v775_v24  ;;  %1086 = vmatmul.bf16.vlgmr.msrb.gmra.mxu3 %v1009_v48  ;;  %1308 = vmatpush.bf16.msra.mxu1 %v5416_v2 }
 0x13d   :  { %784 = vst [vmem:[#allocation3 + $0x30] sm:$0xff] %v776_v59  ;;  %5620 = vrsqrt.f32 %v726_v11  ;;  %vm743_vm6 = vweird.f32 %v726_v11 }
 0x140   :  { %1309 = vmatpush.bf16.msra.mxu1 %v5415_v5 }
 0x141   :  { %v818_v51 = vld [vmem:[#allocation3 + $0x7] sm:$0xff] }
 0x142   :  { %v789_v53 = vld [vmem:[#allocation3 + $0x6] sm:$0xff]  ;;  %v819_v54 = vld [vmem:[#allocation3 + $0xf] sm:$0xff] }
 0x143   :  { %v790_v56 = vld [vmem:[#allocation3 + $0xe] sm:$0xff]  ;;  %v5621_v58 = vpop.eup %5620  ;;  %v826_v60 = vpack.c.bf16 %v819_v54, %v818_v51  ;;  %v791_v16 = vld [vmem:[#allocation3 + $0x26] sm:$0xff] }
 0x144   :  { %v1115_v57 = vld [vmem:[#allocation3 + $0x9] sm:$0xff]  ;;  %v797_v61 = vpack.c.bf16 %v790_v56, %v789_v53  ;;  %v1116_v63 = vld [vmem:[#allocation3 + $0x11] sm:$0xff]  ;;  %v738_v0 = vmul.f32 %v5621_v58, %v726_v11  ;;  %vm744_vm5 = vweird.f32 %v5621_v58  ;;  %1310 = vmatpush.bf16.msra.mxu1 %v5414_v52 }
 0x145   :  { %v1123_v1 = vpack.c.bf16 %v1116_v63, %v1115_v57  ;;  %903 = vmatmul.bf16.vlgmr.msrb.gmra.mxu1 %v826_v60  ;;  %vm745_vm7 = vmor %vm743_vm6, %vm744_vm5  ;;  %v820_v10 = vld [vmem:[#allocation3 + $0x27] sm:$0xff]  ;;  %v821_v14 = vld [vmem:[#allocation3 + $0x2f] sm:$0xff] }
 0x146   :  { %980 = vmatmul.bf16.vlgmr.msrb.gmra.mxu2 %v797_v61  ;;  %v739_v3 = vmul.f32 %v5621_v58, %v738_v0  ;;  %v792_v17 = vld [vmem:[#allocation3 + $0x2e] sm:$0xff]  ;;  %v827_v55 = vpack.c.bf16 %v821_v14, %v820_v10 }
 0x147   :  { %1200 = vmatmul.bf16.vlgmr.msra.gmra.mxu0 %v1123_v1  ;;  %v1117_v23 = vld [vmem:[#allocation3 + $0x29] sm:$0xff]  ;;  %v1118_v21 = vld [vmem:[#allocation3 + $0x31] sm:$0xff]  ;;  %v798_v30 = vpack.c.bf16 %v792_v17, %v791_v16 }
 0x148   :  { %v740_v4 = vmul.f32 0.5, %v739_v3  ;;  %1311 = vmatpush.bf16.msra.mxu1 %v5413_v18  ;;  %v1230_v60 = vld [vmem:[#allocation3 + $0x12] sm:$0xff]  ;;  %v1231_v63 = vld [vmem:[#allocation3 + $0x2a] sm:$0xff] }
 0x149   :  { %v1232_v0 = vld [vmem:[#allocation3 + $0x32] sm:$0xff] }
 0x14a   :  { %v741_v6 = vsub.f32 1.5, %v740_v4  ;;  %v1238_v1 = vpack.c.bf16 %v1232_v0, %v1231_v63 }
 0x14c   :  { %v742_v8 = vmul.f32 %v5621_v58, %v741_v6  ;;  %1091 = vmatmul.bf16.gmra.mxu3 %v1010_v7 }
 0x14e   :  { %v746_v9 = vsel %vm745_vm7, %v5621_v58, %v742_v8  ;;  %v1229_v58 = vld [vmem:[#allocation3 + $0xa] sm:$0xff] }
 0x14f   :  { %v748_v50 = vmul.f32 %v746_v9, %v5917_v15  ;;  %v1124_v15 = vpack.c.bf16 %v1118_v21, %v1117_v23  ;;  %v1237_v61 = vpack.c.bf16 %v1230_v60, %v1229_v58  ;;  %v5441_v58 = vld [vmem:[#allocation4 + $0x330] sm:$0xff] }
 0x151   :  { %v750_v19 = vmul.f32 %v748_v50, %v5929_v31  ;;  %v754_v20 = vperm.slane %v748_v50, 0 }
 0x153   :  { %v752_v26 = vsub.f32 %v5923_v22, %v750_v19  ;;  %v759_v28 = vmul.f32 %v754_v20, %v5895_v27  ;;  %v761_v29 = vmul.f32 %v754_v20, %v5904_v42  ;;  %v760_v32 = vmul.f32 %v754_v20, %v5893_v25  ;;  %v5412_v22 = vld [vmem:[#allocation4 + $0x248] sm:$0xff]  ;;  %v5411_v42 = vld [vmem:[#allocation4 + $0x240] sm:$0xff] }
 0x154   :  { %v762_v33 = vmul.f32 %v754_v20, %v5909_v62  ;;  %1312 = vmatpush.bf16.msra.mxu1 %v5412_v22 }
 0x155   :  { %v764_v34 = vperm.slane %v752_v26, 0  ;;  %908 = vmatmul.bf16.gmra.mxu1 %v827_v55 }
 0x156   :  { %985 = vmatmul.bf16.gmra.mxu2 %v798_v30 }
 0x157   :  { %1205 = vmatmul.bf16.gmra.mxu0 %v1124_v15  ;;  %v769_v31 = vadd.f32 %v764_v34, %v759_v28  ;;  %v770_v36 = vadd.f32 %v764_v34, %v760_v32  ;;  %v771_v37 = vadd.f32 %v764_v34, %v761_v29  ;;  %v772_v38 = vadd.f32 %v764_v34, %v762_v33 }
 0x158   :  { %1313 = vmatpush.bf16.msra.mxu1 %v5411_v42 }
 0x159   :  { %v777_v39 = vmax.f32 %v769_v31, 0.0  ;;  %v778_v27 = vmax.f32 %v770_v36, 0.0  ;;  %v779_v12 = vmax.f32 %v771_v37, 0.0  ;;  %v780_v40 = vmax.f32 %v772_v38, 0.0 }
 0x15b   :  { %785 = vst [vmem:[#allocation3 + $0x48] sm:$0xff] %v777_v39  ;;  %v1011_v41 = vpack.c.bf16 %v778_v27, %v777_v39  ;;  %v1012_v47 = vpack.c.bf16 %v780_v40, %v779_v12 }
 0x15c   :  { %786 = vst [vmem:[#allocation3 + $0x50] sm:$0xff] %v778_v27 }
 0x15d   :  { %787 = vst [vmem:[#allocation3 + $0x68] sm:$0xff] %v779_v12  ;;  %1096 = vmatmul.bf16.gmra.mxu3 %v1011_v41 }
 0x15e   :  { %788 = vst [vmem:[#allocation3 + $0x70] sm:$0xff] %v780_v40 }
 0x162   :  { %v822_v25 = vld [vmem:[#allocation3 + $0x47] sm:$0xff] }
 0x163   :  { %v793_v62 = vld [vmem:[#allocation3 + $0x46] sm:$0xff]  ;;  %v823_v43 = vld [vmem:[#allocation3 + $0x4f] sm:$0xff] }
 0x164   :  { %v794_v44 = vld [vmem:[#allocation3 + $0x4e] sm:$0xff]  ;;  %v828_v13 = vpack.c.bf16 %v823_v43, %v822_v25  ;;  %v795_v35 = vld [vmem:[#allocation3 + $0x66] sm:$0xff] }
 0x165   :  { %v1119_v45 = vld [vmem:[#allocation3 + $0x49] sm:$0xff]  ;;  %v799_v46 = vpack.c.bf16 %v794_v44, %v793_v62  ;;  %v1120_v24 = vld [vmem:[#allocation3 + $0x51] sm:$0xff] }
 0x166   :  { %v1125_v59 = vpack.c.bf16 %v1120_v24, %v1119_v45  ;;  %913 = vmatmul.bf16.gmra.mxu1 %v828_v13  ;;  %v824_v48 = vld [vmem:[#allocation3 + $0x67] sm:$0xff]  ;;  %v825_v11 = vld [vmem:[#allocation3 + $0x6f] sm:$0xff] }
 0x167   :  { %990 = vmatmul.bf16.gmra.mxu2 %v799_v46  ;;  %v796_v49 = vld [vmem:[#allocation3 + $0x6e] sm:$0xff]  ;;  %v829_v54 = vpack.c.bf16 %v825_v11, %v824_v48 }
 0x168   :  { %1210 = vmatmul.bf16.gmra.mxu0 %v1125_v59  ;;  %v1121_v51 = vld [vmem:[#allocation3 + $0x69] sm:$0xff]  ;;  %v1122_v53 = vld [vmem:[#allocation3 + $0x71] sm:$0xff]  ;;  %v800_v56 = vpack.c.bf16 %v796_v49, %v795_v35 }
 0x169   :  { %v1126_v57 = vpack.c.bf16 %v1122_v53, %v1121_v51  ;;  %v1233_v2 = vld [vmem:[#allocation3 + $0x4a] sm:$0xff]  ;;  %v1234_v3 = vld [vmem:[#allocation3 + $0x52] sm:$0xff] }
 0x16a   :  { %v1239_v4 = vpack.c.bf16 %v1234_v3, %v1233_v2  ;;  %v1235_v5 = vld [vmem:[#allocation3 + $0x6a] sm:$0xff]  ;;  %v1236_v6 = vld [vmem:[#allocation3 + $0x72] sm:$0xff] }
 0x16b   :  { %v1240_v7 = vpack.c.bf16 %v1236_v6, %v1235_v5  ;;  %v5442_v49 = vld [vmem:[#allocation4 + $0x338] sm:$0xff] }
 0x16c   :  { %1752 = vmatpush.bf16.msrb.mxu0 %v5442_v49  ;;  %v5434_v2 = vld [vmem:[#allocation4 + $0x2f8] sm:$0xff] }
 0x16d   :  { %1101 = vmatmul.bf16.gmra.mxu3 %v1012_v47  ;;  %v5426_v3 = vld [vmem:[#allocation4 + $0x2b8] sm:$0xff]  ;;  %1569 = vmatpush.bf16.msra.mxu2 %v5434_v2 }
 0x16e   :  { %1646 = vmatpush.bf16.msra.mxu3 %v5426_v3 }
 0x170   :  { %1753 = vmatpush.bf16.msrb.mxu0 %v5441_v58 }
 0x176   :  { %918 = vmatmul.bf16.gmra.mxu1 %v829_v54 }
 0x177   :  { %995 = vmatmul.bf16.gmra.mxu2 %v800_v56 }
 0x178   :  { %1215 = vmatmul.bf16.gmra.mxu0 %v1126_v57 }
 0x186   :  { %1314 = vmatmul.bf16.vlgmr.msra.gmra.mxu1 %v1237_v61 }
 0x196   :  { %1319 = vmatmul.bf16.gmra.mxu1 %v1238_v1 }
 0x1a6   :  { %1324 = vmatmul.bf16.gmra.mxu1 %v1239_v4  ;;  %v5450_v4 = vld [vmem:[#allocation4 + $0x378] sm:$0xff] }
 0x1a7   :  { %1866 = vmatpush.bf16.msrb.mxu1 %v5450_v4 }
 0x1b6   :  { %1329 = vmatmul.bf16.gmra.mxu1 %v1240_v7  ;;  %v5440_v7 = vld [vmem:[#allocation4 + $0x328] sm:$0xff] }
 0x1b7   :  { %1754 = vmatpush.bf16.msrb.mxu0 %v5440_v7  ;;  %v5445_v7 = vld [vmem:[#allocation4 + $0x350] sm:$0xff] }
 0x1bf   :  { %v1087_v17 = vpop.f32.mrf.mxu3 }
 0x1c2   :  { %v904_v8 = vpop.f32.mrf.mxu1 }
 0x1c4   :  { %v1201_v19 = vpop.f32.mrf.mxu0 }
 0x1c7   :  { %v1089_v23 = vpop.f32.mrf.mxu3 }
 0x1c9   :  { %v981_v14 = vpop.f32.mrf.mxu2 }
 0x1ca   :  { %v906_v52 = vpop.f32.mrf.mxu1  ;;  %v982_v15 = vadd.f32 %v981_v14, %v904_v8 }
 0x1cc   :  { %v1203_v26 = vpop.f32.mrf.mxu0  ;;  %v1107_v31 = vadd.f32 %v1087_v17, %v982_v15 }
 0x1ce   :  { %v1221_v27 = vadd.f32 %v1201_v19, %v1107_v31  ;;  %v5433_v19 = vld [vmem:[#allocation4 + $0x2f0] sm:$0xff]  ;;  %v5448_v31 = vld [vmem:[#allocation4 + $0x368] sm:$0xff] }
 0x1cf   :  { %v1092_v28 = vpop.f32.mrf.mxu3  ;;  %1570 = vmatpush.bf16.msra.mxu2 %v5433_v19  ;;  %v5420_v19 = vld [vmem:[#allocation4 + $0x288] sm:$0xff] }
 0x1d1   :  { %v983_v18 = vpop.f32.mrf.mxu2 }
 0x1d2   :  { %v909_v9 = vpop.f32.mrf.mxu1  ;;  %v984_v30 = vadd.f32 %v983_v18, %v906_v52 }
 0x1d4   :  { %v1206_v33 = vpop.f32.mrf.mxu0  ;;  %v1108_v34 = vadd.f32 %v1089_v23, %v984_v30  ;;  %v5425_v23 = vld [vmem:[#allocation4 + $0x2b0] sm:$0xff] }
 0x1d5   :  { %1647 = vmatpush.bf16.msra.mxu3 %v5425_v23  ;;  %v5444_v23 = vld [vmem:[#allocation4 + $0x348] sm:$0xff] }
 0x1d6   :  { %v1222_v22 = vadd.f32 %v1203_v26, %v1108_v34  ;;  %v5424_v34 = vld [vmem:[#allocation4 + $0x2a8] sm:$0xff] }
 0x1d7   :  { %v1094_v38 = vpop.f32.mrf.mxu3 }
 0x1d9   :  { %v986_v55 = vpop.f32.mrf.mxu2  ;;  %1648 = vmatpush.bf16.msra.mxu3 %v5424_v34 }
 0x1da   :  { %v911_v50 = vpop.f32.mrf.mxu1  ;;  %v987_v36 = vadd.f32 %v986_v55, %v909_v9  ;;  %v5449_v55 = vld [vmem:[#allocation4 + $0x370] sm:$0xff] }
 0x1db   :  { %1867 = vmatpush.bf16.msrb.mxu1 %v5449_v55 }
 0x1dc   :  { %v1109_v39 = vadd.f32 %v1092_v28, %v987_v36  ;;  %v1208_v41 = vpop.f32.mrf.mxu0 }
 0x1de   :  { %v1223_v43 = vadd.f32 %v1206_v33, %v1109_v39  ;;  %v5432_v33 = vld [vmem:[#allocation4 + $0x2e8] sm:$0xff] }
 0x1df   :  { %1571 = vmatpush.bf16.msra.mxu2 %v5432_v33  ;;  %1868 = vmatpush.bf16.msrb.mxu1 %v5448_v31 }
 0x1e0   :  { %v1097_v59 = vpop.f32.mrf.mxu3 }
 0x1e1   :  { %v988_v32 = vpop.f32.mrf.mxu2 }
 0x1e2   :  { %v989_v25 = vadd.f32 %v988_v32, %v911_v50 }
 0x1e3   :  { %v5942_v10 = vpop.f32.mrf.mxu1 }
 0x1e4   :  { %v1110_v24 = vadd.f32 %v1094_v38, %v989_v25 }
 0x1e5   :  { %v1211_v54 = vpop.f32.mrf.mxu0 }
 0x1e6   :  { %v1224_v53 = vadd.f32 %v1208_v41, %v1110_v24 }
 0x1e8   :  { %v1099_v63 = vpop.f32.mrf.mxu3 }
 0x1ea   :  { %v991_v42 = vpop.f32.mrf.mxu2 }
 0x1eb   :  { %v5944_v16 = vpop.f32.mrf.mxu1  ;;  %v992_v17 = vadd.f32 %v991_v42, %v5942_v10 }
 0x1ed   :  { %v1213_v18 = vpop.f32.mrf.mxu0 }
 0x1f0   :  { %v1102_v36 = vpop.f32.mrf.mxu3 }
 0x1f2   :  { %v993_v51 = vpop.f32.mrf.mxu2 }
 0x1f3   :  { %v5946_v20 = vpop.f32.mrf.mxu1  ;;  %v994_v52 = vadd.f32 %v993_v51, %v5944_v16  ;;  %v1111_v16 = vadd.f32 %v1097_v59, %v992_v17  ;;  %v5430_v51 = vld [vmem:[#allocation4 + $0x2d8] sm:$0xff] }
 0x1f5   :  { %v1112_v30 = vadd.f32 %v1099_v63, %v994_v52  ;;  %v1225_v25 = vadd.f32 %v1211_v54, %v1111_v16  ;;  %v5446_v54 = vld [vmem:[#allocation4 + $0x358] sm:$0xff]  ;;  %v5443_v16 = vld [vmem:[#allocation4 + $0x340] sm:$0xff] }
 0x1f7   :  { %v1226_v41 = vadd.f32 %v1213_v18, %v1112_v30  ;;  %v5428_v18 = vld [vmem:[#allocation4 + $0x2c8] sm:$0xff] }
 0x1fa   :  { %v996_v9 = vpop.f32.mrf.mxu2 }
 0x1fb   :  { %v5948_v21 = vpop.f32.mrf.mxu1  ;;  %v997_v10 = vadd.f32 %v996_v9, %v5946_v20 }
 0x203   :  { %v1315_v29 = vpop.f32.mrf.mxu1 }
 0x204   :  { %v5952_v40 = vadd.f32 %v1315_v29, %v1221_v27  ;;  %v5439_v29 = vld [vmem:[#allocation4 + $0x320] sm:$0xff] }
 0x205   :  { %1755 = vmatpush.bf16.msrb.mxu0 %v5439_v29 }
 0x206   :  { %v1363_v45 = vmul.f32 %v5952_v40, %v5952_v40 }
 0x20b   :  { %v1317_v37 = vpop.f32.mrf.mxu1 }
 0x20c   :  { %v5950_v12 = vadd.f32 %v1317_v37, %v1222_v22  ;;  %v5438_v22 = vld [vmem:[#allocation4 + $0x318] sm:$0xff] }
 0x20d   :  { %1756 = vmatpush.bf16.msrb.mxu0 %v5438_v22 }
 0x20e   :  { %v1364_v62 = vmul.f32 %v5950_v12, %v5950_v12  ;;  %v1343_v13 = vadd.f32 %v5950_v12, %v5952_v40 }
 0x210   :  { %v1371_v47 = vadd.f32 %v1364_v62, %v1363_v45  ;;  %v5431_v62 = vld [vmem:[#allocation4 + $0x2e0] sm:$0xff]  ;;  %v1113_v45 = vadd.f32 %v1102_v36, %v997_v10 }
 0x211   :  { %1572 = vmatpush.bf16.msra.mxu2 %v5431_v62 }
 0x213   :  { %v1320_v44 = vpop.f32.mrf.mxu1 }
 0x214   :  { %v5960_v46 = vadd.f32 %v1320_v44, %v1223_v43  ;;  %v5423_v43 = vld [vmem:[#allocation4 + $0x2a0] sm:$0xff] }
 0x215   :  { %v5447_v44 = vld [vmem:[#allocation4 + $0x360] sm:$0xff]  ;;  %1649 = vmatpush.bf16.msra.mxu3 %v5423_v43  ;;  %1573 = vmatpush.bf16.msra.mxu2 %v5430_v51 }
 0x216   :  { %v1344_v48 = vadd.f32 %v1343_v13, %v5960_v46  ;;  %v1365_v11 = vmul.f32 %v5960_v46, %v5960_v46  ;;  %v998_v13 = vpop.f32.mrf.mxu2  ;;  %1869 = vmatpush.bf16.msrb.mxu1 %v5447_v44 }
 0x217   :  { %v999_v49 = vadd.f32 %v998_v13, %v5948_v21 }
 0x218   :  { %v1372_v35 = vadd.f32 %v1371_v47, %v1365_v11  ;;  %v5437_v47 = vld [vmem:[#allocation4 + $0x310] sm:$0xff] }
 0x219   :  { %1757 = vmatpush.bf16.msrb.mxu0 %v5437_v47  ;;  %v6007_v47 = vld [vmem:[%s6350_s3 + $0x1] sm:$0x1] }
 0x21a   :  { %1870 = vmatpush.bf16.msrb.mxu1 %v5446_v54 }
 0x21b   :  { %v1322_v56 = vpop.f32.mrf.mxu1 }
 0x21c   :  { %v5965_v57 = vadd.f32 %v1322_v56, %v1224_v53  ;;  %v5422_v53 = vld [vmem:[#allocation4 + $0x298] sm:$0xff] }
 0x21d   :  { %1650 = vmatpush.bf16.msra.mxu3 %v5422_v53 }
 0x21e   :  { %v1345_v60 = vadd.f32 %v1344_v48, %v5965_v57  ;;  %v1366_v61 = vmul.f32 %v5965_v57, %v5965_v57  ;;  %v1216_v48 = vpop.f32.mrf.mxu0  ;;  %1871 = vmatpush.bf16.msrb.mxu1 %v5445_v7 }
 0x220   :  { %v1346_v0 = vrot.slane %v1345_v60, 4  ;;  %v1373_v1 = vadd.f32 %v1372_v35, %v1366_v61  ;;  %v5436_v61 = vld [vmem:[#allocation4 + $0x308] sm:$0xff] }
 0x221   :  { %1758 = vmatpush.bf16.msrb.mxu0 %v5436_v61 }
 0x222   :  { %v1347_v5 = vadd.f32 %v1346_v0, %v1345_v60  ;;  %v1374_v6 = vrot.slane %v1373_v1, 4  ;;  %v1227_v60 = vadd.f32 %v1216_v48, %v1113_v45  ;;  %v1104_v0 = vpop.f32.mrf.mxu3  ;;  %1872 = vmatpush.bf16.msrb.mxu1 %v5444_v23 }
 0x223   :  { %v1325_v8 = vpop.f32.mrf.mxu1  ;;  %v1114_v4 = vadd.f32 %v1104_v0, %v999_v49 }
 0x224   :  { %v1348_v50 = vrot.slane %v1347_v5, 2  ;;  %v1375_v14 = vadd.f32 %v1374_v6, %v1373_v1  ;;  %v5979_v35 = vadd.f32 %v1325_v8, %v1225_v25  ;;  %v5421_v6 = vld [vmem:[#allocation4 + $0x290] sm:$0xff]  ;;  %v6001_v25 = vld [vmem:[%s6349_s2 + $0x1] sm:$0x1] }
 0x225   :  { %1651 = vmatpush.bf16.msra.mxu3 %v5421_v6 }
 0x226   :  { %v1349_v26 = vadd.f32 %v1348_v50, %v1347_v5  ;;  %v1376_v28 = vrot.slane %v1375_v14, 2  ;;  %v1367_v2 = vmul.f32 %v5979_v35, %v5979_v35  ;;  %v5429_v5 = vld [vmem:[#allocation4 + $0x2d0] sm:$0xff]  ;;  %v5435_v50 = vld [vmem:[#allocation4 + $0x300] sm:$0xff]  ;;  %v1218_v17 = vpop.f32.mrf.mxu0  ;;  %1873 = vmatpush.bf16.msrb.mxu1 %v5443_v16 }
 0x227   :  { %1574 = vmatpush.bf16.msra.mxu2 %v5429_v5  ;;  %1759 = vmatpush.bf16.msrb.mxu0 %v5435_v50  ;;  %v1228_v55 = vadd.f32 %v1218_v17, %v1114_v4  ;;  %v5458_v50 = vld [vmem:[#allocation4 + $0x3b8] sm:$0xff] }
 0x228   :  { %v1350_v15 = vrot.slane %v1349_v26, 1  ;;  %v1377_v32 = vadd.f32 %v1376_v28, %v1375_v14 }
 0x229   :  { %1652 = vmatpush.bf16.msra.mxu3 %v5420_v19 }
 0x22a   :  { %v1351_v37 = vadd.f32 %v1350_v15, %v1349_v26  ;;  %v1378_v38 = vrot.slane %v1377_v32, 1  ;;  %v5427_v15 = vld [vmem:[#allocation4 + $0x2c0] sm:$0xff] }
 0x22b   :  { %v1327_v39 = vpop.f32.mrf.mxu1  ;;  %1575 = vmatpush.bf16.msra.mxu2 %v5428_v18 }
 0x22c   :  { %v5973_v27 = vmul.f32 0.03125, %v1351_v37  ;;  %v1379_v42 = vadd.f32 %v1378_v38, %v1377_v32  ;;  %v5977_v59 = vadd.f32 %v1327_v39, %v1226_v41  ;;  %v5419_v32 = vld [vmem:[#allocation4 + $0x280] sm:$0xff] }
 0x22d   :  { %1653 = vmatpush.bf16.msra.mxu3 %v5419_v32 }
 0x22e   :  { %v1389_v20 = vmul.f32 0.03125, %v1379_v42  ;;  %v1391_v24 = vmul.f32 %v5973_v27, %v5973_v27  ;;  %v1368_v58 = vmul.f32 %v5977_v59, %v5977_v59  ;;  %v1352_v21 = vadd.f32 %v5977_v59, %v5979_v35 }
 0x22f   :  { %1576 = vmatpush.bf16.msra.mxu2 %v5427_v15 }
 0x230   :  { %v1393_v11 = vsub.f32 %v1389_v20, %v1391_v24  ;;  %v1380_v8 = vadd.f32 %v1368_v58, %v1367_v2 }
 0x232   :  { %v1395_v56 = vmax.f32 %v1393_v11, 0.0 }
 0x233   :  { %v1330_v63 = vpop.f32.mrf.mxu1  ;;  %1980 = vmatpush.bf16.msrb.mxu2 %v5458_v50 }
 0x234   :  { %v1399_v1 = vadd.f32 1e-05, %v1395_v56  ;;  %v5988_v3 = vadd.f32 %v1330_v63, %v1227_v60 }
 0x236   :  { %5622 = vrsqrt.f32 %v1399_v1  ;;  %v1353_v52 = vadd.f32 %v1352_v21, %v5988_v3  ;;  %v1369_v9 = vmul.f32 %v5988_v3, %v5988_v3  ;;  %vm1407_vm9 = vweird.f32 %v1399_v1 }
 0x238   :  { %v1381_v14 = vadd.f32 %v1380_v8, %v1369_v9 }
 0x23b   :  { %v1332_v26 = vpop.f32.mrf.mxu1 }
 0x23c   :  { %v5623_v28 = vpop.eup %5622  ;;  %v5993_v29 = vadd.f32 %v1332_v26, %v1228_v55 }
 0x23d   :  { %v1402_v30 = vmul.f32 %v5623_v28, %v1399_v1  ;;  %vm1408_vm8 = vweird.f32 %v5623_v28 }
 0x23e   :  { %v1354_v33 = vadd.f32 %v1353_v52, %v5993_v29  ;;  %v1370_v34 = vmul.f32 %v5993_v29, %v5993_v29  ;;  %vm1409_vm10 = vmor %vm1407_vm9, %vm1408_vm8 }
 0x23f   :  { %v1403_v31 = vmul.f32 %v5623_v28, %v1402_v30 }
 0x240   :  { %v1355_v10 = vrot.slane %v1354_v33, 4  ;;  %v1382_v36 = vadd.f32 %v1381_v14, %v1370_v34  ;;  %v5457_v14 = vld [vmem:[#allocation4 + $0x3b0] sm:$0xff] }
 0x241   :  { %v1404_v37 = vmul.f32 0.5, %v1403_v31  ;;  %1981 = vmatpush.bf16.msrb.mxu2 %v5457_v14 }
 0x242   :  { %v1356_v38 = vadd.f32 %v1355_v10, %v1354_v33  ;;  %v1383_v22 = vrot.slane %v1382_v36, 4  ;;  %v5456_v33 = vld [vmem:[#allocation4 + $0x3a8] sm:$0xff] }
 0x243   :  { %v1405_v39 = vsub.f32 1.5, %v1404_v37 }
 0x244   :  { %v1357_v42 = vrot.slane %v1356_v38, 2  ;;  %v1384_v41 = vadd.f32 %v1383_v22, %v1382_v36  ;;  %v6021_v22 = vld [vmem:[#allocation2] sm:$0xff] }
 0x245   :  { %v1406_v62 = vmul.f32 %v5623_v28, %v1405_v39  ;;  %1982 = vmatpush.bf16.msrb.mxu2 %v5456_v33 }
 0x246   :  { %v1358_v43 = vadd.f32 %v1357_v42, %v1356_v38  ;;  %v1385_v44 = vrot.slane %v1384_v41, 2 }
 0x247   :  { %v1410_v45 = vsel %vm1409_vm10, %v5623_v28, %v1406_v62 }
 0x248   :  { %v1421_v13 = vmul.f32 %v1410_v45, %v6001_v25  ;;  %v1359_v20 = vrot.slane %v1358_v43, 1  ;;  %v1386_v24 = vadd.f32 %v1385_v44, %v1384_v41  ;;  %v5455_v41 = vld [vmem:[#allocation4 + $0x3a0] sm:$0xff]  ;;  %v5454_v44 = vld [vmem:[#allocation4 + $0x398] sm:$0xff] }
 0x249   :  { %1983 = vmatpush.bf16.msrb.mxu2 %v5455_v41 }
 0x24a   :  { %v1423_v48 = vmul.f32 %v1421_v13, %v5973_v27  ;;  %v1427_v11 = vperm.slane %v1421_v13, 0  ;;  %v1360_v49 = vadd.f32 %v1359_v20, %v1358_v43  ;;  %v1387_v51 = vrot.slane %v1386_v24, 1 }
 0x24c   :  { %v1425_v53 = vsub.f32 %v6007_v47, %v1423_v48  ;;  %v1429_v54 = vmul.f32 %v1427_v11, %v5952_v40  ;;  %v1431_v56 = vmul.f32 %v1427_v11, %v5960_v46  ;;  %v6013_v58 = vmul.f32 0.03125, %v1360_v49  ;;  %v5453_v48 = vld [vmem:[#allocation4 + $0x390] sm:$0xff] }
 0x24d   :  { %v1388_v60 = vadd.f32 %v1387_v51, %v1386_v24  ;;  %v1430_v61 = vmul.f32 %v1427_v11, %v5950_v12  ;;  %v1432_v63 = vmul.f32 %v1427_v11, %v5965_v57  ;;  %1984 = vmatpush.bf16.msrb.mxu2 %v5454_v44 }
 0x24e   :  { %v1437_v0 = vperm.slane %v1425_v53, 0  ;;  %v1392_v27 = vmul.f32 %v6013_v58, %v6013_v58 }
 0x24f   :  { %v1390_v1 = vmul.f32 0.03125, %v1388_v60 }
 0x250   :  { %v1439_v2 = vadd.f32 %v1437_v0, %v1429_v54  ;;  %v1440_v21 = vadd.f32 %v1437_v0, %v1430_v61  ;;  %v1441_v4 = vadd.f32 %v1437_v0, %v1431_v56  ;;  %v1442_v5 = vadd.f32 %v1437_v0, %v1432_v63 }
 0x251   :  { %v1394_v6 = vsub.f32 %v1390_v1, %v1392_v27  ;;  %1985 = vmatpush.bf16.msrb.mxu2 %v5453_v48 }
 0x252   :  { %v1447_v40 = vmax.f32 %v1439_v2, 0.0  ;;  %v1448_v7 = vmax.f32 %v1440_v21, 0.0  ;;  %v1449_v46 = vmax.f32 %v1441_v4, 0.0  ;;  %v1450_v8 = vmax.f32 %v1442_v5, 0.0  ;;  %v5451_v5 = vld [vmem:[#allocation4 + $0x380] sm:$0xff] }
 0x253   :  { %v1396_v52 = vmax.f32 %v1394_v6, 0.0 }
 0x254   :  { %1455 = vst [vmem:[#allocation2 + $0x8] sm:$0xff] %v1447_v40  ;;  %v1683_v9 = vpack.c.bf16 %v1448_v7, %v1447_v40  ;;  %v1684_v12 = vpack.c.bf16 %v1450_v8, %v1449_v46 }
 0x255   :  { %1456 = vst [vmem:[#allocation2 + $0x10] sm:$0xff] %v1448_v7  ;;  %v1400_v57 = vadd.f32 1e-05, %v1396_v52 }
 0x256   :  { %1457 = vst [vmem:[#allocation2 + $0x28] sm:$0xff] %v1449_v46  ;;  %1760 = vmatmul.bf16.vlgmr.msrb.gmra.mxu0 %v1683_v9 }
 0x257   :  { %1458 = vst [vmem:[#allocation2 + $0x30] sm:$0xff] %v1450_v8  ;;  %5624 = vrsqrt.f32 %v1400_v57  ;;  %vm1417_vm12 = vweird.f32 %v1400_v57 }
 0x25b   :  { %v1492_v17 = vld [vmem:[#allocation2 + $0x7] sm:$0xff] }
 0x25c   :  { %v1463_v18 = vld [vmem:[#allocation2 + $0x6] sm:$0xff]  ;;  %v1493_v19 = vld [vmem:[#allocation2 + $0xf] sm:$0xff] }
 0x25d   :  { %v1464_v23 = vld [vmem:[#allocation2 + $0xe] sm:$0xff]  ;;  %v5625_v26 = vpop.eup %5624  ;;  %v1500_v28 = vpack.c.bf16 %v1493_v19, %v1492_v17  ;;  %v1465_v24 = vld [vmem:[#allocation2 + $0x26] sm:$0xff] }
 0x25e   :  { %v1789_v55 = vld [vmem:[#allocation2 + $0x9] sm:$0xff]  ;;  %v1471_v30 = vpack.c.bf16 %v1464_v23, %v1463_v18  ;;  %v1790_v15 = vld [vmem:[#allocation2 + $0x11] sm:$0xff]  ;;  %v1412_v32 = vmul.f32 %v5625_v26, %v1400_v57  ;;  %vm1418_vm11 = vweird.f32 %v5625_v26 }
 0x25f   :  { %v1797_v16 = vpack.c.bf16 %v1790_v15, %v1789_v55  ;;  %1577 = vmatmul.bf16.vlgmr.msra.gmra.mxu2 %v1500_v28  ;;  %v1495_v34 = vld [vmem:[#allocation2 + $0x2f] sm:$0xff]  ;;  %vm1419_vm13 = vmor %vm1417_vm12, %vm1418_vm11  ;;  %v1494_v20 = vld [vmem:[#allocation2 + $0x27] sm:$0xff] }
 0x260   :  { %1654 = vmatmul.bf16.vlgmr.msra.gmra.mxu3 %v1471_v30  ;;  %v1466_v31 = vld [vmem:[#allocation2 + $0x2e] sm:$0xff]  ;;  %v1413_v36 = vmul.f32 %v5625_v26, %v1412_v32  ;;  %v1501_v51 = vpack.c.bf16 %v1495_v34, %v1494_v20 }
 0x261   :  { %v6019_v10 = vld [vmem:[#allocation2 + $0xa] sm:$0xff]  ;;  %1874 = vmatmul.bf16.vlgmr.msrb.gmra.mxu1 %v1797_v16  ;;  %v1472_v60 = vpack.c.bf16 %v1466_v31, %v1465_v24  ;;  %v1904_v32 = vld [vmem:[#allocation2 + $0x12] sm:$0xff] }
 0x262   :  { %v1791_v37 = vld [vmem:[#allocation2 + $0x29] sm:$0xff]  ;;  %v1792_v38 = vld [vmem:[#allocation2 + $0x31] sm:$0xff]  ;;  %2884 = vst [vmem:[#allocation2 + $0x10] sm:$0x3] %v6021_v22  ;;  %v1414_v42 = vmul.f32 0.5, %v1413_v36  ;;  %v1911_v16 = vpack.c.bf16 %v1904_v32, %v6019_v10 }
 0x263   :  { %v6024_v39 = vld [vmem:[#allocation2 + $0x2a] sm:$0xff]  ;;  %v1798_v61 = vpack.c.bf16 %v1792_v38, %v1791_v37  ;;  %v1906_v33 = vld [vmem:[#allocation2 + $0x32] sm:$0xff] }
 0x264   :  { %2886 = vst [vmem:[#allocation2 + $0x30] sm:$0x3] %v6021_v22  ;;  %v1415_v62 = vsub.f32 1.5, %v1414_v42  ;;  %v1912_v34 = vpack.c.bf16 %v1906_v33, %v6024_v39 }
 0x266   :  { %v1416_v43 = vmul.f32 %v5625_v26, %v1415_v62  ;;  %1765 = vmatmul.bf16.gmra.mxu0 %v1684_v12 }
 0x268   :  { %v1420_v45 = vsel %vm1419_vm13, %v5625_v26, %v1416_v43 }
 0x269   :  { %v1422_v13 = vmul.f32 %v1420_v45, %v6001_v25 }
 0x26b   :  { %v1424_v11 = vmul.f32 %v1422_v13, %v6013_v58  ;;  %v1428_v49 = vperm.slane %v1422_v13, 0 }
 0x26d   :  { %v1426_v53 = vsub.f32 %v6007_v47, %v1424_v11  ;;  %v1433_v54 = vmul.f32 %v1428_v49, %v5979_v35  ;;  %v1435_v56 = vmul.f32 %v1428_v49, %v5988_v3  ;;  %v1434_v63 = vmul.f32 %v1428_v49, %v5977_v59  ;;  %v5452_v47 = vld [vmem:[#allocation4 + $0x388] sm:$0xff] }
 0x26e   :  { %v1436_v25 = vmul.f32 %v1428_v49, %v5993_v29  ;;  %1986 = vmatpush.bf16.msrb.mxu2 %v5452_v47 }
 0x26f   :  { %v1438_v0 = vperm.slane %v1426_v53, 0  ;;  %1582 = vmatmul.bf16.gmra.mxu2 %v1501_v51 }
 0x270   :  { %1659 = vmatmul.bf16.gmra.mxu3 %v1472_v60 }
 0x271   :  { %1879 = vmatmul.bf16.gmra.mxu1 %v1798_v61  ;;  %v1443_v58 = vadd.f32 %v1438_v0, %v1433_v54  ;;  %v1444_v1 = vadd.f32 %v1438_v0, %v1434_v63  ;;  %v1445_v27 = vadd.f32 %v1438_v0, %v1435_v56  ;;  %v1446_v2 = vadd.f32 %v1438_v0, %v1436_v25 }
 0x272   :  { %1987 = vmatpush.bf16.msrb.mxu2 %v5451_v5 }
 0x273   :  { %v1451_v21 = vmax.f32 %v1443_v58, 0.0  ;;  %v1452_v35 = vmax.f32 %v1444_v1, 0.0  ;;  %v1453_v4 = vmax.f32 %v1445_v27, 0.0  ;;  %v1454_v3 = vmax.f32 %v1446_v2, 0.0 }
 0x275   :  { %1459 = vst [vmem:[#allocation2 + $0x48] sm:$0xff] %v1451_v21  ;;  %v1685_v6 = vpack.c.bf16 %v1452_v35, %v1451_v21  ;;  %v1686_v59 = vpack.c.bf16 %v1454_v3, %v1453_v4 }
 0x276   :  { %1460 = vst [vmem:[#allocation2 + $0x50] sm:$0xff] %v1452_v35 }
 0x277   :  { %1461 = vst [vmem:[#allocation2 + $0x68] sm:$0xff] %v1453_v4  ;;  %1770 = vmatmul.bf16.gmra.mxu0 %v1685_v6 }
 0x278   :  { %1462 = vst [vmem:[#allocation2 + $0x70] sm:$0xff] %v1454_v3 }
 0x27c   :  { %v1496_v29 = vld [vmem:[#allocation2 + $0x47] sm:$0xff] }
 0x27d   :  { %v1467_v40 = vld [vmem:[#allocation2 + $0x46] sm:$0xff]  ;;  %v1497_v7 = vld [vmem:[#allocation2 + $0x4f] sm:$0xff] }
 0x27e   :  { %v1468_v46 = vld [vmem:[#allocation2 + $0x4e] sm:$0xff]  ;;  %v1502_v52 = vpack.c.bf16 %v1497_v7, %v1496_v29  ;;  %v1469_v26 = vld [vmem:[#allocation2 + $0x66] sm:$0xff] }
 0x27f   :  { %v1793_v8 = vld [vmem:[#allocation2 + $0x49] sm:$0xff]  ;;  %v1473_v9 = vpack.c.bf16 %v1468_v46, %v1467_v40  ;;  %v1794_v12 = vld [vmem:[#allocation2 + $0x51] sm:$0xff] }
 0x280   :  { %v1799_v57 = vpack.c.bf16 %v1794_v12, %v1793_v8  ;;  %1587 = vmatmul.bf16.gmra.mxu2 %v1502_v52  ;;  %v1499_v50 = vld [vmem:[#allocation2 + $0x6f] sm:$0xff]  ;;  %v1498_v55 = vld [vmem:[#allocation2 + $0x67] sm:$0xff] }
 0x281   :  { %1664 = vmatmul.bf16.gmra.mxu3 %v1473_v9  ;;  %v1470_v14 = vld [vmem:[#allocation2 + $0x6e] sm:$0xff]  ;;  %v1503_v28 = vpack.c.bf16 %v1499_v50, %v1498_v55 }
 0x282   :  { %v1907_v17 = vld [vmem:[#allocation2 + $0x4a] sm:$0xff]  ;;  %1884 = vmatmul.bf16.gmra.mxu1 %v1799_v57  ;;  %v1474_v30 = vpack.c.bf16 %v1470_v14, %v1469_v26  ;;  %v1908_v31 = vld [vmem:[#allocation2 + $0x52] sm:$0xff] }
 0x283   :  { %v1795_v18 = vld [vmem:[#allocation2 + $0x69] sm:$0xff]  ;;  %v1796_v19 = vld [vmem:[#allocation2 + $0x71] sm:$0xff]  ;;  %2888 = vst [vmem:[#allocation2 + $0x50] sm:$0x3] %v6021_v22  ;;  %v1913_v36 = vpack.c.bf16 %v1908_v31, %v1907_v17 }
 0x284   :  { %v1909_v23 = vld [vmem:[#allocation2 + $0x6a] sm:$0xff]  ;;  %v1800_v15 = vpack.c.bf16 %v1796_v19, %v1795_v18  ;;  %v1910_v37 = vld [vmem:[#allocation2 + $0x72] sm:$0xff] }
 0x285   :  { %2890 = vst [vmem:[#allocation2 + $0x70] sm:$0x3] %v6021_v22  ;;  %v1914_v38 = vpack.c.bf16 %v1910_v37, %v1909_v23 }
 0x287   :  { %1775 = vmatmul.bf16.gmra.mxu0 %v1686_v59 }
 0x290   :  { %1592 = vmatmul.bf16.gmra.mxu2 %v1503_v28 }
 0x291   :  { %1669 = vmatmul.bf16.gmra.mxu3 %v1474_v30 }
 0x292   :  { %1889 = vmatmul.bf16.gmra.mxu1 %v1800_v15 }
 0x2a0   :  { %1988 = vmatmul.bf16.vlgmr.msrb.gmra.mxu2 %v1911_v16 }
 0x2b0   :  { %1993 = vmatmul.bf16.gmra.mxu2 %v1912_v34 }
 0x2c0   :  { %1998 = vmatmul.bf16.gmra.mxu2 %v1913_v36 }
 0x2d0   :  { %2003 = vmatmul.bf16.gmra.mxu2 %v1914_v38  ;;  %v5474_v38 = vld [vmem:[#allocation4 + $0x438] sm:$0xff] }
 0x2d1   :  { %2247 = vmatpush.bf16.msrb.mxu3 %v5474_v38 }
 0x2d3   :  { %v1761_v20 = vpop.f32.mrf.mxu0 }
 0x2db   :  { %v1763_v39 = vpop.f32.mrf.mxu0 }
 0x2de   :  { %v1875_v10 = vpop.f32.mrf.mxu1 }
 0x2e2   :  { %v1578_v42 = vpop.f32.mrf.mxu2 }
 0x2e3   :  { %v1655_v45 = vpop.f32.mrf.mxu3  ;;  %v1766_v53 = vpop.f32.mrf.mxu0 }
 0x2e4   :  { %v1656_v60 = vadd.f32 %v1655_v45, %v1578_v42  ;;  %v5482_v42 = vld [vmem:[#allocation4 + $0x478] sm:$0xff] }
 0x2e5   :  { %v5498_v45 = vld [vmem:[#allocation4 + $0x4f8] sm:$0xff]  ;;  %2408 = vmatpush.bf16.msra.mxu0 %v5482_v42  ;;  %v5469_v42 = vld [vmem:[#allocation4 + $0x410] sm:$0xff] }
 0x2e6   :  { %v1877_v49 = vpop.f32.mrf.mxu1  ;;  %v1781_v0 = vadd.f32 %v1761_v20, %v1656_v60  ;;  %2604 = vmatpush.bf16.msra.mxu2 %v5498_v45  ;;  %v5497_v60 = vld [vmem:[#allocation4 + $0x4f0] sm:$0xff] }
 0x2e7   :  { %v5493_v45 = vld [vmem:[#allocation4 + $0x4d0] sm:$0xff] }
 0x2e8   :  { %v1895_v21 = vadd.f32 %v1875_v10, %v1781_v0 }
 0x2ea   :  { %v1580_v41 = vpop.f32.mrf.mxu2  ;;  %2605 = vmatpush.bf16.msra.mxu2 %v5497_v60 }
 0x2eb   :  { %v1657_v24 = vpop.f32.mrf.mxu3  ;;  %v1768_v2 = vpop.f32.mrf.mxu0 }
 0x2ec   :  { %v1658_v56 = vadd.f32 %v1657_v24, %v1580_v41  ;;  %v5490_v41 = vld [vmem:[#allocation4 + $0x4b8] sm:$0xff] }
 0x2ed   :  { %2506 = vmatpush.bf16.msra.mxu1 %v5490_v41  ;;  %v5477_v41 = vld [vmem:[#allocation4 + $0x450] sm:$0xff] }
 0x2ee   :  { %v1880_v61 = vpop.f32.mrf.mxu1  ;;  %v1782_v25 = vadd.f32 %v1763_v39, %v1658_v56 }
 0x2f0   :  { %v1896_v27 = vadd.f32 %v1877_v49, %v1782_v25  ;;  %v5473_v49 = vld [vmem:[#allocation4 + $0x430] sm:$0xff] }
 0x2f1   :  { %2248 = vmatpush.bf16.msrb.mxu3 %v5473_v49 }
 0x2f2   :  { %v1583_v62 = vpop.f32.mrf.mxu2 }
 0x2f3   :  { %v1660_v51 = vpop.f32.mrf.mxu3 }
 0x2f4   :  { %v1661_v58 = vadd.f32 %v1660_v51, %v1583_v62  ;;  %v1771_v50 = vpop.f32.mrf.mxu0  ;;  %v5481_v51 = vld [vmem:[#allocation4 + $0x470] sm:$0xff] }
 0x2f5   :  { %2409 = vmatpush.bf16.msra.mxu0 %v5481_v51 }
 0x2f6   :  { %v1783_v47 = vadd.f32 %v1766_v53, %v1661_v58  ;;  %v1882_v4 = vpop.f32.mrf.mxu1  ;;  %v5489_v53 = vld [vmem:[#allocation4 + $0x4b0] sm:$0xff] }
 0x2f7   :  { %2507 = vmatpush.bf16.msra.mxu1 %v5489_v53  ;;  %v5492_v53 = vld [vmem:[#allocation4 + $0x4c8] sm:$0xff] }
 0x2f8   :  { %v1897_v29 = vadd.f32 %v1880_v61, %v1783_v47  ;;  %v5480_v47 = vld [vmem:[#allocation4 + $0x468] sm:$0xff] }
 0x2f9   :  { %2410 = vmatpush.bf16.msra.mxu0 %v5480_v47 }
 0x2fa   :  { %v1585_v43 = vpop.f32.mrf.mxu2 }
 0x2fb   :  { %v1662_v63 = vpop.f32.mrf.mxu3 }
 0x2fc   :  { %v1663_v6 = vadd.f32 %v1662_v63, %v1585_v43  ;;  %v1773_v16 = vpop.f32.mrf.mxu0 }
 0x2fe   :  { %v1784_v52 = vadd.f32 %v1768_v2, %v1663_v6  ;;  %v5472_v2 = vld [vmem:[#allocation4 + $0x428] sm:$0xff] }
 0x2ff   :  { %v1885_v17 = vpop.f32.mrf.mxu1  ;;  %2249 = vmatpush.bf16.msrb.mxu3 %v5472_v2  ;;  %v5491_v2 = vld [vmem:[#allocation4 + $0x4c0] sm:$0xff] }
 0x300   :  { %v1898_v18 = vadd.f32 %v1882_v4, %v1784_v52 }
 0x303   :  { %v1588_v44 = vpop.f32.mrf.mxu2 }
 0x304   :  { %v1665_v5 = vpop.f32.mrf.mxu3 }
 0x305   :  { %v1666_v30 = vadd.f32 %v1665_v5, %v1588_v44 }
 0x307   :  { %v1785_v36 = vadd.f32 %v1771_v50, %v1666_v30  ;;  %v1887_v20 = vpop.f32.mrf.mxu1  ;;  %v5479_v50 = vld [vmem:[#allocation4 + $0x460] sm:$0xff] }
 0x308   :  { %2411 = vmatpush.bf16.msra.mxu0 %v5479_v50 }
 0x30b   :  { %v1590_v13 = vpop.f32.mrf.mxu2 }
 0x30c   :  { %v1667_v19 = vpop.f32.mrf.mxu3 }
 0x30d   :  { %v1668_v33 = vadd.f32 %v1667_v19, %v1590_v13  ;;  %v1899_v13 = vadd.f32 %v1885_v17, %v1785_v36  ;;  %v5495_v19 = vld [vmem:[#allocation4 + $0x4e0] sm:$0xff] }
 0x30f   :  { %v1786_v24 = vadd.f32 %v1773_v16, %v1668_v33  ;;  %v5486_v16 = vld [vmem:[#allocation4 + $0x498] sm:$0xff] }
 0x311   :  { %v1900_v58 = vadd.f32 %v1887_v20, %v1786_v24 }
 0x313   :  { %v6038_v48 = vpop.f32.mrf.mxu2 }
 0x314   :  { %v1670_v10 = vpop.f32.mrf.mxu3 }
 0x315   :  { %v1671_v61 = vadd.f32 %v1670_v10, %v6038_v48  ;;  %v5496_v48 = vld [vmem:[#allocation4 + $0x4e8] sm:$0xff] }
 0x316   :  { %2606 = vmatpush.bf16.msra.mxu2 %v5496_v48 }
 0x31a   :  { %2607 = vmatpush.bf16.msra.mxu2 %v5495_v19 }
 0x31b   :  { %v6040_v11 = vpop.f32.mrf.mxu2 }
 0x323   :  { %v1989_v54 = vpop.f32.mrf.mxu2 }
 0x324   :  { %v6044_v3 = vadd.f32 %v1989_v54, %v1895_v21  ;;  %v5488_v21 = vld [vmem:[#allocation4 + $0x4a8] sm:$0xff] }
 0x325   :  { %2508 = vmatpush.bf16.msra.mxu1 %v5488_v21 }
 0x326   :  { %v2037_v7 = vmul.f32 %v6044_v3, %v6044_v3 }
 0x32b   :  { %v1991_v1 = vpop.f32.mrf.mxu2 }
 0x32c   :  { %v6042_v35 = vadd.f32 %v1991_v1, %v1896_v27  ;;  %v1776_v1 = vpop.f32.mrf.mxu0 }
 0x32e   :  { %v2038_v59 = vmul.f32 %v6042_v35, %v6042_v35  ;;  %v2017_v46 = vadd.f32 %v6042_v35, %v6044_v3 }
 0x330   :  { %v2045_v9 = vadd.f32 %v2038_v59, %v2037_v7  ;;  %v1787_v59 = vadd.f32 %v1776_v1, %v1671_v61 }
 0x333   :  { %v1994_v40 = vpop.f32.mrf.mxu2 }
 0x334   :  { %v6052_v8 = vadd.f32 %v1994_v40, %v1897_v29  ;;  %v1778_v36 = vpop.f32.mrf.mxu0 }
 0x336   :  { %v2018_v12 = vadd.f32 %v2017_v46, %v6052_v8  ;;  %v2039_v57 = vmul.f32 %v6052_v8, %v6052_v8 }
 0x338   :  { %v2046_v14 = vadd.f32 %v2045_v9, %v2039_v57  ;;  %v1890_v9 = vpop.f32.mrf.mxu1  ;;  %v5471_v57 = vld [vmem:[#allocation4 + $0x420] sm:$0xff] }
 0x339   :  { %2250 = vmatpush.bf16.msrb.mxu3 %v5471_v57 }
 0x33b   :  { %v1996_v23 = vpop.f32.mrf.mxu2 }
 0x33c   :  { %v6057_v55 = vadd.f32 %v1996_v23, %v1898_v18 }
 0x33e   :  { %v2019_v26 = vadd.f32 %v2018_v12, %v6057_v55  ;;  %v2040_v28 = vmul.f32 %v6057_v55, %v6057_v55  ;;  %v1672_v12 = vpop.f32.mrf.mxu3 }
 0x33f   :  { %v1673_v23 = vadd.f32 %v1672_v12, %v6040_v11 }
 0x340   :  { %v2020_v15 = vrot.slane %v2019_v26, 4  ;;  %v2047_v32 = vadd.f32 %v2046_v14, %v2040_v28  ;;  %v5487_v14 = vld [vmem:[#allocation4 + $0x4a0] sm:$0xff]  ;;  %v1901_v28 = vadd.f32 %v1890_v9, %v1787_v59  ;;  %v1892_v20 = vpop.f32.mrf.mxu1 }
 0x341   :  { %2509 = vmatpush.bf16.msra.mxu1 %v5487_v14  ;;  %v6097_v14 = vld [vmem:[%s6350_s3 + $0x2] sm:$0x1] }
 0x342   :  { %v2021_v34 = vadd.f32 %v2020_v15, %v2019_v26  ;;  %v2048_v31 = vrot.slane %v2047_v32, 4  ;;  %v5470_v15 = vld [vmem:[#allocation4 + $0x418] sm:$0xff] }
 0x343   :  { %v1999_v37 = vpop.f32.mrf.mxu2  ;;  %2251 = vmatpush.bf16.msrb.mxu3 %v5470_v15 }
 0x344   :  { %v2022_v62 = vrot.slane %v2021_v34, 2  ;;  %v2049_v43 = vadd.f32 %v2048_v31, %v2047_v32  ;;  %v6063_v63 = vadd.f32 %v1999_v37, %v1899_v13  ;;  %v5478_v32 = vld [vmem:[#allocation4 + $0x458] sm:$0xff]  ;;  %v1788_v37 = vadd.f32 %v1778_v36, %v1673_v23  ;;  %v5484_v13 = vld [vmem:[#allocation4 + $0x488] sm:$0xff] }
 0x345   :  { %v5494_v31 = vld [vmem:[#allocation4 + $0x4d8] sm:$0xff]  ;;  %2412 = vmatpush.bf16.msra.mxu0 %v5478_v32  ;;  %2510 = vmatpush.bf16.msra.mxu1 %v5486_v16 }
 0x346   :  { %v2023_v44 = vadd.f32 %v2022_v62, %v2021_v34  ;;  %v2050_v39 = vrot.slane %v2049_v43, 2  ;;  %v2041_v29 = vmul.f32 %v6063_v63, %v6063_v63  ;;  %2608 = vmatpush.bf16.msra.mxu2 %v5494_v31  ;;  %v5485_v62 = vld [vmem:[#allocation4 + $0x490] sm:$0xff]  ;;  %v1902_v10 = vadd.f32 %v1892_v20, %v1788_v37 }
 0x347   :  { %2252 = vmatpush.bf16.msrb.mxu3 %v5469_v42 }
 0x348   :  { %v2024_v54 = vrot.slane %v2023_v44, 1  ;;  %v2051_v56 = vadd.f32 %v2050_v39, %v2049_v43  ;;  %v5476_v39 = vld [vmem:[#allocation4 + $0x448] sm:$0xff] }
 0x349   :  { %2413 = vmatpush.bf16.msra.mxu0 %v5477_v41  ;;  %2511 = vmatpush.bf16.msra.mxu1 %v5485_v62 }
 0x34a   :  { %v2025_v25 = vadd.f32 %v2024_v54, %v2023_v44  ;;  %v2052_v0 = vrot.slane %v2051_v56, 1  ;;  %2609 = vmatpush.bf16.msra.mxu2 %v5493_v45  ;;  %v5468_v44 = vld [vmem:[#allocation4 + $0x408] sm:$0xff] }
 0x34b   :  { %v2001_v27 = vpop.f32.mrf.mxu2  ;;  %2253 = vmatpush.bf16.msrb.mxu3 %v5468_v44  ;;  %v5645_v45 = vld [vmem:[#allocation3 + $0x28] sm:$0xff] }
 0x34c   :  { %v6065_v4 = vmul.f32 0.03125, %v2025_v25  ;;  %v2053_v5 = vadd.f32 %v2052_v0, %v2051_v56  ;;  %v6067_v6 = vadd.f32 %v2001_v27, %v1900_v58  ;;  %v5467_v25 = vld [vmem:[#allocation4 + $0x400] sm:$0xff] }
 0x34d   :  { %2414 = vmatpush.bf16.msra.mxu0 %v5476_v39  ;;  %2512 = vmatpush.bf16.msra.mxu1 %v5484_v13  ;;  %v5475_v0 = vld [vmem:[#allocation4 + $0x440] sm:$0xff] }
 0x34e   :  { %v2063_v40 = vmul.f32 0.03125, %v2053_v5  ;;  %v2065_v7 = vmul.f32 %v6065_v4, %v6065_v4  ;;  %v2026_v46 = vadd.f32 %v6067_v6, %v6063_v63  ;;  %v2042_v52 = vmul.f32 %v6067_v6, %v6067_v6  ;;  %2610 = vmatpush.bf16.msra.mxu2 %v5492_v53  ;;  %v5483_v58 = vld [vmem:[#allocation4 + $0x480] sm:$0xff] }
 0x34f   :  { %2254 = vmatpush.bf16.msrb.mxu3 %v5467_v25 }
 0x350   :  { %v2067_v17 = vsub.f32 %v2063_v40, %v2065_v7  ;;  %v2054_v18 = vadd.f32 %v2042_v52, %v2041_v29  ;;  %v6091_v40 = vld [vmem:[%s6349_s2 + $0x2] sm:$0x1] }
 0x351   :  { %2415 = vmatpush.bf16.msra.mxu0 %v5475_v0  ;;  %2513 = vmatpush.bf16.msra.mxu1 %v5483_v58 }
 0x352   :  { %v2069_v26 = vmax.f32 %v2067_v17, 0.0  ;;  %2611 = vmatpush.bf16.msra.mxu2 %v5491_v2 }
 0x353   :  { %v2004_v30 = vpop.f32.mrf.mxu2 }
 0x354   :  { %v2073_v33 = vadd.f32 1e-05, %v2069_v26  ;;  %v6078_v34 = vadd.f32 %v2004_v30, %v1901_v28 }
 0x356   :  { %5626 = vrsqrt.f32 %v2073_v33  ;;  %v2027_v38 = vadd.f32 %v2026_v46, %v6078_v34  ;;  %v2043_v11 = vmul.f32 %v6078_v34, %v6078_v34  ;;  %vm2081_vm15 = vweird.f32 %v2073_v33 }
 0x358   :  { %v2055_v43 = vadd.f32 %v2054_v18, %v2043_v11 }
 0x35b   :  { %v2006_v24 = vpop.f32.mrf.mxu2 }
 0x35c   :  { %v5627_v49 = vpop.eup %5626  ;;  %v6083_v51 = vadd.f32 %v2006_v24, %v1902_v10  ;;  %v5646_v10 = vld [vmem:[#allocation3 + $0x30] sm:$0xff] }
 0x35d   :  { %v2076_v54 = vmul.f32 %v5627_v49, %v2073_v33  ;;  %vm2082_vm14 = vweird.f32 %v5627_v49 }
 0x35e   :  { %v2028_v56 = vadd.f32 %v2027_v38, %v6083_v51  ;;  %v2044_v60 = vmul.f32 %v6083_v51, %v6083_v51  ;;  %vm2083_vm0 = vmor %vm2081_vm15, %vm2082_vm14 }
 0x35f   :  { %v2077_v61 = vmul.f32 %v5627_v49, %v2076_v54  ;;  %v5465_v54 = vld [vmem:[#allocation4 + $0x3f0] sm:$0xff] }
 0x360   :  { %v2029_v1 = vrot.slane %v2028_v56, 4  ;;  %v2056_v27 = vadd.f32 %v2055_v43, %v2044_v60 }
 0x361   :  { %v2078_v47 = vmul.f32 0.5, %v2077_v61  ;;  %v5463_v61 = vld [vmem:[#allocation4 + $0x3e0] sm:$0xff] }
 0x362   :  { %v2030_v21 = vadd.f32 %v2029_v1, %v2028_v56  ;;  %v2057_v5 = vrot.slane %v2056_v27, 4  ;;  %v5464_v56 = vld [vmem:[#allocation4 + $0x3e8] sm:$0xff] }
 0x363   :  { %v2079_v48 = vsub.f32 1.5, %v2078_v47 }
 0x364   :  { %v2031_v59 = vrot.slane %v2030_v21, 2  ;;  %v2058_v29 = vadd.f32 %v2057_v5, %v2056_v27 }
 0x365   :  { %v2080_v7 = vmul.f32 %v5627_v49, %v2079_v48 }
 0x366   :  { %v2032_v46 = vadd.f32 %v2031_v59, %v2030_v21  ;;  %v2059_v52 = vrot.slane %v2058_v29, 2 }
 0x367   :  { %v2084_v9 = vsel %vm2083_vm0, %v5627_v49, %v2080_v7 }
 0x368   :  { %v2095_v12 = vmul.f32 %v2084_v9, %v6091_v40  ;;  %v2033_v57 = vrot.slane %v2032_v46, 1  ;;  %v2060_v50 = vadd.f32 %v2059_v52, %v2058_v29 }
 0x36a   :  { %v2097_v17 = vmul.f32 %v2095_v12, %v6065_v4  ;;  %v2101_v18 = vperm.slane %v2095_v12, 0  ;;  %v2034_v19 = vadd.f32 %v2033_v57, %v2032_v46  ;;  %v2061_v23 = vrot.slane %v2060_v50, 1  ;;  %v5462_v57 = vld [vmem:[#allocation4 + $0x3d8] sm:$0xff] }
 0x36c   :  { %v2099_v26 = vsub.f32 %v6097_v14, %v2097_v17  ;;  %v2103_v28 = vmul.f32 %v2101_v18, %v6044_v3  ;;  %v2105_v30 = vmul.f32 %v2101_v18, %v6052_v8  ;;  %v6103_v15 = vmul.f32 0.03125, %v2034_v19  ;;  %v5643_v3 = vld [vmem:[#allocation3 + $0x8] sm:$0xff]  ;;  %v5644_v8 = vld [vmem:[#allocation3 + $0x10] sm:$0xff] }
 0x36d   :  { %v2062_v32 = vadd.f32 %v2061_v23, %v2060_v50  ;;  %v2104_v16 = vmul.f32 %v2101_v18, %v6042_v35  ;;  %v2106_v33 = vmul.f32 %v2101_v18, %v6057_v55  ;;  %v5466_v55 = vld [vmem:[#allocation4 + $0x3f8] sm:$0xff]  ;;  %v5461_v17 = vld [vmem:[#allocation4 + $0x3d0] sm:$0xff] }
 0x36e   :  { %v2111_v31 = vperm.slane %v2099_v26, 0  ;;  %v2066_v4 = vmul.f32 %v6103_v15, %v6103_v15  ;;  %2314 = vmatpush.bf16.msra.mxu3 %v5466_v55  ;;  %v5460_v26 = vld [vmem:[#allocation4 + $0x3c8] sm:$0xff] }
 0x36f   :  { %v2064_v36 = vmul.f32 0.03125, %v2062_v32 }
 0x370   :  { %v2113_v37 = vadd.f32 %v2111_v31, %v2103_v28  ;;  %v2114_v38 = vadd.f32 %v2111_v31, %v2104_v16  ;;  %v2115_v11 = vadd.f32 %v2111_v31, %v2105_v30  ;;  %v2116_v42 = vadd.f32 %v2111_v31, %v2106_v33 }
 0x371   :  { %v2068_v41 = vsub.f32 %v2064_v36, %v2066_v4  ;;  %v5459_v36 = vld [vmem:[#allocation4 + $0x3c0] sm:$0xff] }
 0x372   :  { %v2121_v62 = vadd.f32 %v5643_v3, %v2113_v37  ;;  %v2122_v43 = vadd.f32 %v5644_v8, %v2114_v38  ;;  %v2123_v20 = vadd.f32 %v5645_v45, %v2115_v11  ;;  %v2124_v35 = vadd.f32 %v5646_v10, %v2116_v42  ;;  %2315 = vmatpush.bf16.msra.mxu3 %v5465_v54  ;;  %v5648_v3 = vld [vmem:[#allocation3 + $0x50] sm:$0xff] }
 0x373   :  { %v2070_v24 = vmax.f32 %v2068_v41, 0.0  ;;  %v5650_v8 = vld [vmem:[#allocation3 + $0x70] sm:$0xff] }
 0x374   :  { %v2129_v44 = vmax.f32 %v2121_v62, 0.0  ;;  %v2130_v39 = vmax.f32 %v2122_v43, 0.0  ;;  %v2131_v13 = vmax.f32 %v2123_v20, 0.0  ;;  %v2132_v49 = vmax.f32 %v2124_v35, 0.0  ;;  %v5649_v62 = vld [vmem:[#allocation3 + $0x68] sm:$0xff]  ;;  %v5506_v43 = vld [vmem:[#allocation4 + $0x678] sm:$0xff] }
 0x375   :  { %v2074_v53 = vadd.f32 1e-05, %v2070_v24  ;;  %v5504_v35 = vld [vmem:[#allocation4 + $0x668] sm:$0xff]  ;;  %v5503_v24 = vld [vmem:[#allocation4 + $0x660] sm:$0xff] }
 0x376   :  { %2137 = vst [vmem:[#allocation3 + $0x8] sm:$0xff] %v2129_v44  ;;  %2316 = vmatpush.bf16.msra.mxu3 %v5464_v56 }
 0x377   :  { %2138 = vst [vmem:[#allocation3 + $0x10] sm:$0xff] %v2130_v39  ;;  %5628 = vrsqrt.f32 %v2074_v53  ;;  %vm2091_vm2 = vweird.f32 %v2074_v53 }
 0x378   :  { %2139 = vst [vmem:[#allocation3 + $0x28] sm:$0xff] %v2131_v13 }
 0x379   :  { %2140 = vst [vmem:[#allocation3 + $0x30] sm:$0xff] %v2132_v49 }
 0x37a   :  { %2317 = vmatpush.bf16.msra.mxu3 %v5463_v61 }
 0x37d   :  { %v5629_v60 = vpop.eup %5628 }
 0x37e   :  { %v2086_v25 = vmul.f32 %v5629_v60, %v2074_v53  ;;  %v2173_v0 = vld [vmem:[#allocation3 + $0x7] ss:$2 sm:$0xff]  ;;  %v2334_v58 = vld [vmem:[#allocation3 + $0x8] ss:$2 sm:$0xff]  ;;  %vm2092_vm1 = vweird.f32 %v5629_v60  ;;  %2318 = vmatpush.bf16.msra.mxu3 %v5462_v57 }
 0x37f   :  { %v2432_v1 = vld [vmem:[#allocation3 + $0x9] ss:$2 sm:$0xff]  ;;  %v2530_v27 = vld [vmem:[#allocation3 + $0xa] ss:$2 sm:$0xff]  ;;  %vm2093_vm3 = vmor %vm2091_vm2, %vm2092_vm1 }
 0x380   :  { %v6109_v2 = vld [vmem:[#allocation3 + $0x6] ss:$2 sm:$0xff]  ;;  %v2087_v47 = vmul.f32 %v5629_v60, %v2086_v25  ;;  %v2175_v21 = vld [vmem:[#allocation3 + $0x27] ss:$2 sm:$0xff] }
 0x381   :  { %v2336_v5 = vld [vmem:[#allocation3 + $0x28] ss:$2 sm:$0xff]  ;;  %v2434_v48 = vld [vmem:[#allocation3 + $0x29] ss:$2 sm:$0xff]  ;;  %v2180_v59 = vpack.c.bf16 %v2175_v21, %v2173_v0  ;;  %3446 = vst [vmem:[#allocation3 + $0x10] sm:$0x3] %v6021_v22 }
 0x382   :  { %v6111_v29 = vpack.c.bf16 %v2336_v5, %v2334_v58  ;;  %v2439_v7 = vpack.c.bf16 %v2434_v48, %v2432_v1  ;;  %v2532_v46 = vld [vmem:[#allocation3 + $0x2a] ss:$2 sm:$0xff]  ;;  %v2088_v9 = vmul.f32 0.5, %v2087_v47  ;;  %2319 = vmatpush.bf16.msra.mxu3 %v5461_v17  ;;  %v5499_v5 = vld [vmem:[#allocation4 + $0x640] sm:$0xff] }
 0x383   :  { %v6113_v52 = vld [vmem:[#allocation3 + $0x26] ss:$2 sm:$0xff]  ;;  %v2537_v12 = vpack.c.bf16 %v2532_v46, %v2530_v27  ;;  %2255 = vmatmul.bf16.vlgmr.msrb.gmra.mxu3 %v2180_v59  ;;  %v5502_v27 = vld [vmem:[#allocation4 + $0x658] sm:$0xff] }
 0x384   :  { %3448 = vst [vmem:[#allocation3 + $0x30] sm:$0x3] %v6021_v22  ;;  %2416 = vmatmul.bf16.vlgmr.msra.gmra.mxu0 %v6111_v29  ;;  %v2089_v50 = vsub.f32 1.5, %v2088_v9  ;;  %2514 = vmatmul.bf16.vlgmr.msra.gmra.mxu1 %v2439_v7  ;;  %v5501_v47 = vld [vmem:[#allocation4 + $0x650] sm:$0xff]  ;;  %v5500_v21 = vld [vmem:[#allocation4 + $0x648] sm:$0xff]  ;;  %v2153_v48 = vpack.c.bf16 %v6113_v52, %v6109_v2 }
 0x385   :  { %2612 = vmatmul.bf16.vlgmr.msra.gmra.mxu2 %v2537_v12 }
 0x386   :  { %v2090_v18 = vmul.f32 %v5629_v60, %v2089_v50  ;;  %2320 = vmatpush.bf16.msra.mxu3 %v5460_v26 }
 0x388   :  { %v2094_v19 = vsel %vm2093_vm3, %v5629_v60, %v2090_v18 }
 0x389   :  { %v2096_v23 = vmul.f32 %v2094_v19, %v6091_v40 }
 0x38a   :  { %2321 = vmatpush.bf16.msra.mxu3 %v5459_v36 }
 0x38b   :  { %v2098_v28 = vmul.f32 %v2096_v23, %v6103_v15  ;;  %v2102_v30 = vperm.slane %v2096_v23, 0  ;;  %v5647_v15 = vld [vmem:[#allocation3 + $0x48] sm:$0xff] }
 0x38d   :  { %v2100_v32 = vsub.f32 %v6097_v14, %v2098_v28  ;;  %v2107_v16 = vmul.f32 %v2102_v30, %v6063_v63  ;;  %v2108_v33 = vmul.f32 %v2102_v30, %v6067_v6  ;;  %v2109_v31 = vmul.f32 %v2102_v30, %v6078_v34  ;;  %v5530_v28 = vld [vmem:[#allocation4 + $0x5b8] sm:$0xff] }
 0x38e   :  { %v2110_v4 = vmul.f32 %v2102_v30, %v6083_v51  ;;  %2780 = vmatpush.bf16.msrb.mxu3 %v5506_v43  ;;  %v5505_v51 = vld [vmem:[#allocation4 + $0x670] sm:$0xff]  ;;  %3142 = vmatpush.bf16.msrb.mxu2 %v5530_v28  ;;  %v5534_v28 = vld [vmem:[#allocation4 + $0x5d8] sm:$0xff] }
 0x38f   :  { %v2112_v37 = vperm.slane %v2100_v32, 0 }
 0x391   :  { %v2117_v38 = vadd.f32 %v2112_v37, %v2107_v16  ;;  %v2118_v40 = vadd.f32 %v2112_v37, %v2108_v33  ;;  %v2119_v11 = vadd.f32 %v2112_v37, %v2109_v31  ;;  %v2120_v42 = vadd.f32 %v2112_v37, %v2110_v4  ;;  %v5529_v31 = vld [vmem:[#allocation4 + $0x5b0] sm:$0xff] }
 0x392   :  { %2781 = vmatpush.bf16.msrb.mxu3 %v5505_v51  ;;  %3143 = vmatpush.bf16.msrb.mxu2 %v5529_v31  ;;  %v5537_v51 = vld [vmem:[#allocation4 + $0x5f0] sm:$0xff] }
 0x393   :  { %v2125_v41 = vadd.f32 %v5647_v15, %v2117_v38  ;;  %v2126_v14 = vadd.f32 %v5648_v3, %v2118_v40  ;;  %v2127_v63 = vadd.f32 %v5649_v62, %v2119_v11  ;;  %v2128_v6 = vadd.f32 %v5650_v8, %v2120_v42  ;;  %v5522_v15 = vld [vmem:[#allocation4 + $0x578] sm:$0xff]  ;;  %v5528_v62 = vld [vmem:[#allocation4 + $0x5a8] sm:$0xff] }
 0x394   :  { %v5538_v3 = vld [vmem:[#allocation4 + $0x5f8] sm:$0xff]  ;;  %2985 = vmatpush.bf16.msrb.mxu0 %v5522_v15 }
 0x395   :  { %v2133_v34 = vmax.f32 %v2125_v41, 0.0  ;;  %v2134_v45 = vmax.f32 %v2126_v14, 0.0  ;;  %v2135_v20 = vmax.f32 %v2127_v63, 0.0  ;;  %v2136_v10 = vmax.f32 %v2128_v6, 0.0  ;;  %v5514_v41 = vld [vmem:[#allocation4 + $0x538] sm:$0xff] }
 0x396   :  { %2782 = vmatpush.bf16.msrb.mxu3 %v5504_v35  ;;  %3052 = vmatpush.bf16.msrb.mxu1 %v5514_v41  ;;  %v5527_v35 = vld [vmem:[#allocation4 + $0x5a0] sm:$0xff] }
 0x397   :  { %2141 = vst [vmem:[#allocation3 + $0x48] sm:$0xff] %v2133_v34  ;;  %3144 = vmatpush.bf16.msrb.mxu2 %v5528_v62 }
 0x398   :  { %2142 = vst [vmem:[#allocation3 + $0x50] sm:$0xff] %v2134_v45 }
 0x399   :  { %2143 = vst [vmem:[#allocation3 + $0x68] sm:$0xff] %v2135_v20  ;;  %v5521_v20 = vld [vmem:[#allocation4 + $0x570] sm:$0xff] }
 0x39a   :  { %2144 = vst [vmem:[#allocation3 + $0x70] sm:$0xff] %v2136_v10  ;;  %2783 = vmatpush.bf16.msrb.mxu3 %v5503_v24  ;;  %v5513_v10 = vld [vmem:[#allocation4 + $0x530] sm:$0xff]  ;;  %2986 = vmatpush.bf16.msrb.mxu0 %v5521_v20 }
 0x39b   :  { %3053 = vmatpush.bf16.msrb.mxu1 %v5513_v10  ;;  %3145 = vmatpush.bf16.msrb.mxu2 %v5527_v35  ;;  %v5515_v10 = vld [vmem:[#allocation4 + $0x540] sm:$0xff] }
 0x39c   :  { %v5531_v35 = vld [vmem:[#allocation4 + $0x5c0] sm:$0xff] }
 0x39e   :  { %2784 = vmatpush.bf16.msrb.mxu3 %v5502_v27 }
 0x39f   :  { %v2177_v55 = vld [vmem:[#allocation3 + $0x47] ss:$2 sm:$0xff]  ;;  %v2338_v44 = vld [vmem:[#allocation3 + $0x48] ss:$2 sm:$0xff] }
 0x3a0   :  { %v2436_v39 = vld [vmem:[#allocation3 + $0x49] ss:$2 sm:$0xff]  ;;  %v2534_v13 = vld [vmem:[#allocation3 + $0x4a] ss:$2 sm:$0xff] }
 0x3a1   :  { %v2150_v49 = vld [vmem:[#allocation3 + $0x46] ss:$2 sm:$0xff]  ;;  %v2179_v53 = vld [vmem:[#allocation3 + $0x67] ss:$2 sm:$0xff] }
 0x3a2   :  { %v2340_v54 = vld [vmem:[#allocation3 + $0x68] ss:$2 sm:$0xff]  ;;  %v2438_v56 = vld [vmem:[#allocation3 + $0x69] ss:$2 sm:$0xff]  ;;  %v2181_v60 = vpack.c.bf16 %v2179_v53, %v2177_v55  ;;  %3450 = vst [vmem:[#allocation3 + $0x50] sm:$0x3] %v6021_v22  ;;  %2785 = vmatpush.bf16.msrb.mxu3 %v5501_v47 }
 0x3a3   :  { %v2342_v61 = vpack.c.bf16 %v2340_v54, %v2338_v44  ;;  %v2440_v25 = vpack.c.bf16 %v2438_v56, %v2436_v39  ;;  %v2536_v0 = vld [vmem:[#allocation3 + $0x6a] ss:$2 sm:$0xff] }
 0x3a4   :  { %v2152_v58 = vld [vmem:[#allocation3 + $0x66] ss:$2 sm:$0xff]  ;;  %v2538_v1 = vpack.c.bf16 %v2536_v0, %v2534_v13  ;;  %2260 = vmatmul.bf16.gmra.mxu3 %v2181_v60 }
 0x3a5   :  { %3452 = vst [vmem:[#allocation3 + $0x70] sm:$0x3] %v6021_v22  ;;  %2421 = vmatmul.bf16.gmra.mxu0 %v2342_v61  ;;  %2519 = vmatmul.bf16.gmra.mxu1 %v2440_v25  ;;  %v2154_v59 = vpack.c.bf16 %v2152_v58, %v2150_v49  ;;  %v5520_v54 = vld [vmem:[#allocation4 + $0x568] sm:$0xff]  ;;  %v5526_v25 = vld [vmem:[#allocation4 + $0x598] sm:$0xff] }
 0x3a6   :  { %2617 = vmatmul.bf16.gmra.mxu2 %v2538_v1  ;;  %2786 = vmatpush.bf16.msrb.mxu3 %v5500_v21  ;;  %v5512_v56 = vld [vmem:[#allocation4 + $0x528] sm:$0xff] }
 0x3a7   :  { %v5536_v60 = vld [vmem:[#allocation4 + $0x5e8] sm:$0xff]  ;;  %2987 = vmatpush.bf16.msrb.mxu0 %v5520_v54  ;;  %3054 = vmatpush.bf16.msrb.mxu1 %v5512_v56  ;;  %v5546_v54 = vld [vmem:[#allocation4 + $0x638] sm:$0xff] }
 0x3a8   :  { %3146 = vmatpush.bf16.msrb.mxu2 %v5526_v25 }
 0x3aa   :  { %2787 = vmatpush.bf16.msrb.mxu3 %v5499_v5 }
 0x3b4   :  { %2322 = vmatmul.bf16.vlgmr.msra.gmra.mxu3 %v2153_v48 }
 0x3b5   :  { %3236 = vmatpush.bf16.msra.mxu3 %v5538_v3 }
 0x3b9   :  { %3237 = vmatpush.bf16.msra.mxu3 %v5537_v51  ;;  %v5507_v51 = vld [vmem:[#allocation4 + $0x500] sm:$0xff] }
 0x3bd   :  { %3238 = vmatpush.bf16.msra.mxu3 %v5536_v60 }
 0x3c4   :  { %2327 = vmatmul.bf16.gmra.mxu3 %v2154_v59  ;;  %v5519_v59 = vld [vmem:[#allocation4 + $0x560] sm:$0xff] }
 0x3c5   :  { %2988 = vmatpush.bf16.msrb.mxu0 %v5519_v59  ;;  %v2670_v59 = vld [vmem:[%s6350_s3 + $0x3] sm:$0x1] }
 0x3d4   :  { %2788 = vmatmul.bf16.vlgmr.msrb.gmra.mxu3 %v6111_v29 }
 0x3e4   :  { %2793 = vmatmul.bf16.gmra.mxu3 %v2342_v61 }
 0x401   :  { %v2417_v12 = vpop.f32.mrf.mxu0  ;;  %v2515_v57 = vpop.f32.mrf.mxu1 }
 0x406   :  { %v2256_v22 = vpop.f32.mrf.mxu3 }
 0x408   :  { %v2613_v18 = vpop.f32.mrf.mxu2 }
 0x409   :  { %v2419_v23 = vpop.f32.mrf.mxu0  ;;  %v2517_v30 = vpop.f32.mrf.mxu1 }
 0x40e   :  { %v2258_v7 = vpop.f32.mrf.mxu3 }
 0x410   :  { %v2615_v29 = vpop.f32.mrf.mxu2 }
 0x422   :  { %v2422_v4 = vpop.f32.mrf.mxu0  ;;  %v2520_v14 = vpop.f32.mrf.mxu1 }
 0x427   :  { %v2261_v46 = vpop.f32.mrf.mxu3 }
 0x429   :  { %v2618_v6 = vpop.f32.mrf.mxu2 }
 0x42a   :  { %v2424_v61 = vpop.f32.mrf.mxu0  ;;  %v2522_v27 = vpop.f32.mrf.mxu1 }
 0x42f   :  { %v2263_v9 = vpop.f32.mrf.mxu3 }
 0x437   :  { %v2323_v50 = vpop.f32.mrf.mxu3 }
 0x438   :  { %v2324_v17 = vadd.f32 %v2323_v50, %v2256_v22  ;;  %v5511_v22 = vld [vmem:[#allocation4 + $0x520] sm:$0xff] }
 0x439   :  { %3055 = vmatpush.bf16.msrb.mxu1 %v5511_v22 }
 0x43a   :  { %v2427_v19 = vadd.f32 %v2417_v12, %v2324_v17 }
 0x43c   :  { %v2525_v2 = vadd.f32 %v2515_v57, %v2427_v19 }
 0x43e   :  { %v6130_v16 = vadd.f32 %v2613_v18, %v2525_v2  ;;  %v5518_v2 = vld [vmem:[#allocation4 + $0x558] sm:$0xff] }
 0x43f   :  { %v2325_v26 = vpop.f32.mrf.mxu3  ;;  %2989 = vmatpush.bf16.msrb.mxu0 %v5518_v2  ;;  %v5542_v2 = vld [vmem:[#allocation4 + $0x618] sm:$0xff] }
 0x440   :  { %v2326_v52 = vadd.f32 %v2325_v26, %v2258_v7  ;;  %v2643_v38 = vmul.f32 %v6130_v16, %v6130_v16  ;;  %v5535_v7 = vld [vmem:[#allocation4 + $0x5e0] sm:$0xff] }
 0x441   :  { %3239 = vmatpush.bf16.msra.mxu3 %v5535_v7 }
 0x442   :  { %v2428_v32 = vadd.f32 %v2419_v23, %v2326_v52  ;;  %v5510_v52 = vld [vmem:[#allocation4 + $0x518] sm:$0xff] }
 0x443   :  { %3056 = vmatpush.bf16.msrb.mxu1 %v5510_v52 }
 0x444   :  { %v2526_v33 = vadd.f32 %v2517_v30, %v2428_v32  ;;  %v5524_v30 = vld [vmem:[#allocation4 + $0x588] sm:$0xff] }
 0x445   :  { %3240 = vmatpush.bf16.msra.mxu3 %v5534_v28 }
 0x446   :  { %v6132_v36 = vadd.f32 %v2615_v29, %v2526_v33 }
 0x447   :  { %v2328_v37 = vpop.f32.mrf.mxu3 }
 0x448   :  { %v2627_v40 = vadd.f32 %v6132_v36, %v6130_v16  ;;  %v2644_v11 = vmul.f32 %v6132_v36, %v6132_v36  ;;  %v2329_v42 = vadd.f32 %v2328_v37, %v2261_v46  ;;  %v2620_v46 = vpop.f32.mrf.mxu2 }
 0x44a   :  { %v2628_v63 = vrot.slane %v2627_v40, 4  ;;  %v2647_v8 = vadd.f32 %v2644_v11, %v2643_v38  ;;  %v2429_v43 = vadd.f32 %v2422_v4, %v2329_v42  ;;  %v5517_v38 = vld [vmem:[#allocation4 + $0x550] sm:$0xff]  ;;  %v5523_v42 = vld [vmem:[#allocation4 + $0x580] sm:$0xff] }
 0x44b   :  { %v5533_v11 = vld [vmem:[#allocation4 + $0x5d0] sm:$0xff]  ;;  %2990 = vmatpush.bf16.msrb.mxu0 %v5517_v38  ;;  %v5539_v38 = vld [vmem:[#allocation4 + $0x600] sm:$0xff] }
 0x44c   :  { %v2629_v34 = vadd.f32 %v2628_v63, %v2627_v40  ;;  %v2648_v45 = vrot.slane %v2647_v8, 4  ;;  %v2527_v44 = vadd.f32 %v2520_v14, %v2429_v43  ;;  %v5509_v40 = vld [vmem:[#allocation4 + $0x510] sm:$0xff]  ;;  %3241 = vmatpush.bf16.msra.mxu3 %v5533_v11  ;;  %v5516_v63 = vld [vmem:[#allocation4 + $0x548] sm:$0xff] }
 0x44d   :  { %3057 = vmatpush.bf16.msrb.mxu1 %v5509_v40 }
 0x44e   :  { %v2630_v24 = vrot.slane %v2629_v34, 2  ;;  %v2649_v55 = vadd.f32 %v2648_v45, %v2647_v8  ;;  %v6140_v47 = vadd.f32 %v2618_v6, %v2527_v44  ;;  %v5508_v8 = vld [vmem:[#allocation4 + $0x508] sm:$0xff] }
 0x44f   :  { %v2330_v39 = vpop.f32.mrf.mxu3  ;;  %v5532_v6 = vld [vmem:[#allocation4 + $0x5c8] sm:$0xff]  ;;  %2991 = vmatpush.bf16.msrb.mxu0 %v5516_v63 }
 0x450   :  { %v2631_v13 = vadd.f32 %v2630_v24, %v2629_v34  ;;  %v2650_v49 = vrot.slane %v2649_v55, 2  ;;  %v2331_v53 = vadd.f32 %v2330_v39, %v2263_v9  ;;  %v5525_v9 = vld [vmem:[#allocation4 + $0x590] sm:$0xff]  ;;  %v2645_v17 = vmul.f32 %v6140_v47, %v6140_v47  ;;  %3242 = vmatpush.bf16.msra.mxu3 %v5532_v6 }
 0x451   :  { %3147 = vmatpush.bf16.msrb.mxu2 %v5525_v9  ;;  %3058 = vmatpush.bf16.msrb.mxu1 %v5508_v8 }
 0x452   :  { %v2632_v0 = vrot.slane %v2631_v13, 1  ;;  %v2651_v58 = vadd.f32 %v2650_v49, %v2649_v55  ;;  %v2430_v1 = vadd.f32 %v2424_v61, %v2331_v53 }
 0x453   :  { %2992 = vmatpush.bf16.msrb.mxu0 %v5515_v10 }
 0x454   :  { %v2633_v21 = vadd.f32 %v2632_v0, %v2631_v13  ;;  %v2652_v5 = vrot.slane %v2651_v58, 1  ;;  %v2528_v48 = vadd.f32 %v2522_v27, %v2430_v1  ;;  %3243 = vmatpush.bf16.msra.mxu3 %v5531_v35  ;;  %v5545_v0 = vld [vmem:[#allocation4 + $0x630] sm:$0xff]  ;;  %v2669_v1 = vld [vmem:[%s6349_s2 + $0x3] sm:$0x1] }
 0x455   :  { %3148 = vmatpush.bf16.msrb.mxu2 %v5524_v30  ;;  %3059 = vmatpush.bf16.msrb.mxu1 %v5507_v51 }
 0x456   :  { %v6142_v12 = vmul.f32 0.0625, %v2633_v21  ;;  %v2653_v57 = vadd.f32 %v2652_v5, %v2651_v58  ;;  %v6144_v50 = vadd.f32 %v2620_v46, %v2528_v48  ;;  %v5544_v5 = vld [vmem:[#allocation4 + $0x628] sm:$0xff]  ;;  %v5543_v46 = vld [vmem:[#allocation4 + $0x620] sm:$0xff] }
 0x457   :  { %3330 = vmatpush.bf16.msra.mxu0 %v5546_v54 }
 0x458   :  { %v2661_v18 = vmul.f32 0.0625, %v2653_v57  ;;  %v2663_v19 = vmul.f32 %v6142_v12, %v6142_v12  ;;  %v2634_v23 = vadd.f32 %v6144_v50, %v6140_v47  ;;  %v2646_v26 = vmul.f32 %v6144_v50, %v6144_v50 }
 0x459   :  { %3149 = vmatpush.bf16.msrb.mxu2 %v5523_v42 }
 0x45a   :  { %v2665_v32 = vsub.f32 %v2661_v18, %v2663_v19  ;;  %v2635_v29 = vrot.slane %v2634_v23, 4  ;;  %v2654_v33 = vadd.f32 %v2646_v26, %v2645_v17 }
 0x45b   :  { %3331 = vmatpush.bf16.msra.mxu0 %v5545_v0 }
 0x45c   :  { %v2667_v31 = vmax.f32 %v2665_v32, 0.0  ;;  %v2636_v4 = vadd.f32 %v2635_v29, %v2634_v23  ;;  %v2655_v37 = vrot.slane %v2654_v33, 4 }
 0x45e   :  { %v2671_v15 = vadd.f32 1e-05, %v2667_v31  ;;  %v2637_v41 = vrot.slane %v2636_v4, 2  ;;  %v2656_v3 = vadd.f32 %v2655_v37, %v2654_v33  ;;  %v5541_v33 = vld [vmem:[#allocation4 + $0x610] sm:$0xff] }
 0x45f   :  { %3332 = vmatpush.bf16.msra.mxu0 %v5544_v5 }
 0x460   :  { %5630 = vrsqrt.f32 %v2671_v15  ;;  %v2638_v14 = vadd.f32 %v2637_v41, %v2636_v4  ;;  %v2657_v62 = vrot.slane %v2656_v3, 2  ;;  %vm2679_vm5 = vweird.f32 %v2671_v15 }
 0x462   :  { %v2639_v43 = vrot.slane %v2638_v14, 1  ;;  %v2658_v34 = vadd.f32 %v2657_v62, %v2656_v3 }
 0x463   :  { %3333 = vmatpush.bf16.msra.mxu0 %v5543_v46 }
 0x464   :  { %v2640_v45 = vadd.f32 %v2639_v43, %v2638_v14  ;;  %v2659_v20 = vrot.slane %v2658_v34, 1 }
 0x466   :  { %v5631_v24 = vpop.eup %5630  ;;  %v6154_v55 = vmul.f32 0.0625, %v2640_v45  ;;  %v2660_v44 = vadd.f32 %v2659_v20, %v2658_v34 }
 0x467   :  { %v2674_v39 = vmul.f32 %v5631_v24, %v2671_v15  ;;  %vm2680_vm4 = vweird.f32 %v5631_v24  ;;  %3334 = vmatpush.bf16.msra.mxu0 %v5542_v2 }
 0x468   :  { %v2662_v13 = vmul.f32 0.0625, %v2660_v44  ;;  %v2664_v49 = vmul.f32 %v6154_v55, %v6154_v55  ;;  %vm2681_vm6 = vmor %vm2679_vm5, %vm2680_vm4 }
 0x469   :  { %v2675_v53 = vmul.f32 %v5631_v24, %v2674_v39 }
 0x46a   :  { %v2666_v56 = vsub.f32 %v2662_v13, %v2664_v49 }
 0x46b   :  { %v2676_v60 = vmul.f32 0.5, %v2675_v53  ;;  %3335 = vmatpush.bf16.msra.mxu0 %v5541_v33 }
 0x46c   :  { %v2668_v61 = vmax.f32 %v2666_v56, 0.0 }
 0x46d   :  { %v2677_v25 = vsub.f32 1.5, %v2676_v60 }
 0x46e   :  { %v2672_v58 = vadd.f32 1e-05, %v2668_v61 }
 0x46f   :  { %v2678_v27 = vmul.f32 %v5631_v24, %v2677_v25 }
 0x470   :  { %5632 = vrsqrt.f32 %v2672_v58  ;;  %vm2689_vm8 = vweird.f32 %v2672_v58 }
 0x471   :  { %v2682_v21 = vsel %vm2681_vm6, %v5631_v24, %v2678_v27  ;;  %v6170_v27 = vpop.f32.mrf.mxu3  ;;  %vm3466_vm6 = vcmask 1040384  }
 0x472   :  { %v2693_v48 = vmul.f32 %v2682_v21, %v2669_v1 }
 0x474   :  { %v2695_v22 = vmul.f32 %v2693_v48, %v6142_v12  ;;  %v2699_v7 = vperm.slane %v2693_v48, 0 }
 0x476   :  { %v5633_v9 = vpop.eup %5632  ;;  %v2697_v57 = vsub.f32 %v2670_v59, %v2695_v22  ;;  %v2701_v18 = vmul.f32 %v2699_v7, %v6130_v16  ;;  %v2702_v19 = vmul.f32 %v2699_v7, %v6132_v36  ;;  %v5540_v36 = vld [vmem:[#allocation4 + $0x608] sm:$0xff] }
 0x477   :  { %v2684_v17 = vmul.f32 %v5633_v9, %v2672_v58  ;;  %vm2690_vm7 = vweird.f32 %v5633_v9  ;;  %3336 = vmatpush.bf16.msra.mxu0 %v5540_v36 }
 0x478   :  { %v2705_v23 = vperm.slane %v2697_v57, 0  ;;  %vm2691_vm9 = vmor %vm2689_vm8, %vm2690_vm7  ;;  %vm3468_vm7 = vcmask 1041408   ;;  %vm3470_vm8 = vcmask 1042432  }
 0x479   :  { %v2685_v26 = vmul.f32 %v5633_v9, %v2684_v17  ;;  %v6172_v21 = vpop.f32.mrf.mxu3 }
 0x47a   :  { %v2707_v52 = vadd.f32 %v2705_v23, %v2701_v18  ;;  %v2708_v28 = vadd.f32 %v2705_v23, %v2702_v19  ;;  %v2799_v5 = vadd.f32 %v6172_v21, %v6170_v27  ;;  %v2816_v48 = vmul.f32 %v6172_v21, %v6172_v21 }
 0x47b   :  { %v2686_v30 = vmul.f32 0.5, %v2685_v26  ;;  %3337 = vmatpush.bf16.msra.mxu0 %v5539_v38 }
 0x47c   :  { %v2711_v32 = vmax.f32 %v2707_v52, 0.0  ;;  %v2712_v29 = vmax.f32 %v2708_v28, 0.0  ;;  %v2800_v22 = vrot.slane %v2799_v5, 4 }
 0x47d   :  { %v2687_v12 = vsub.f32 1.5, %v2686_v30 }
 0x47e   :  { %2883 = vst [vmem:[#allocation2 + $0x8] sm:$0xff] %v2711_v32  ;;  %v3075_v31 = vpack.c.bf16 %v2712_v29, %v2711_v32  ;;  %v2801_v57 = vadd.f32 %v2800_v22, %v2799_v5 }
 0x47f   :  { %2885 = vst [vmem:[#allocation2 + $0x28] sm:$0xff] %v2712_v29  ;;  %v2688_v4 = vmul.f32 %v5633_v9, %v2687_v12 }
 0x480   :  { %3150 = vmatmul.bf16.vlgmr.msrb.gmra.mxu2 %v3075_v31  ;;  %v2802_v18 = vrot.slane %v2801_v57, 2 }
 0x481   :  { %v2692_v16 = vsel %vm2691_vm9, %v5633_v9, %v2688_v4  ;;  %v6180_v46 = vpop.f32.mrf.mxu3 }
 0x482   :  { %v2694_v37 = vmul.f32 %v2692_v16, %v2669_v1  ;;  %v2803_v2 = vadd.f32 %v2802_v18, %v2801_v57  ;;  %v2817_v12 = vmul.f32 %v6180_v46, %v6180_v46 }
 0x484   :  { %v2696_v40 = vmul.f32 %v2694_v37, %v6154_v55  ;;  %v2700_v11 = vperm.slane %v2694_v37, 0  ;;  %v2804_v32 = vrot.slane %v2803_v2, 1 }
 0x485   :  { %v2914_v42 = vld [vmem:[#allocation2 + $0x7] sm:$0xff] }
 0x486   :  { %v2891_v15 = vld [vmem:[#allocation2 + $0x6] sm:$0xff]  ;;  %v2698_v3 = vsub.f32 %v2670_v59, %v2696_v40  ;;  %v2703_v34 = vmul.f32 %v2700_v11, %v6140_v47  ;;  %v2704_v45 = vmul.f32 %v2700_v11, %v6144_v50  ;;  %v2815_v59 = vmul.f32 %v6170_v27, %v6170_v27 }
 0x487   :  { %v3165_v41 = vld [vmem:[#allocation2 + $0x9] sm:$0xff]  ;;  %v2805_v36 = vadd.f32 %v2804_v32, %v2803_v2 }
 0x488   :  { %v2915_v14 = vld [vmem:[#allocation2 + $0x27] sm:$0xff]  ;;  %v2706_v20 = vperm.slane %v2698_v3, 0  ;;  %v2819_v7 = vadd.f32 %v2816_v48, %v2815_v59 }
 0x489   :  { %v2892_v62 = vld [vmem:[#allocation2 + $0x26] sm:$0xff]  ;;  %v2918_v8 = vpack.c.bf16 %v2915_v14, %v2914_v42  ;;  %v6182_v26 = vpop.f32.mrf.mxu3 }
 0x48a   :  { %v3166_v63 = vld [vmem:[#allocation2 + $0x29] sm:$0xff]  ;;  %v2895_v6 = vpack.c.bf16 %v2892_v62, %v2891_v15  ;;  %v2709_v10 = vadd.f32 %v2706_v20, %v2703_v34  ;;  %v2710_v51 = vadd.f32 %v2706_v20, %v2704_v45  ;;  %v2820_v17 = vrot.slane %v2819_v7, 4 }
 0x48b   :  { %v3169_v43 = vpack.c.bf16 %v3166_v63, %v3165_v41  ;;  %2993 = vmatmul.bf16.vlgmr.msrb.gmra.mxu0 %v2918_v8  ;;  %v3259_v60 = vld [vmem:[#allocation2 + $0xa] sm:$0xff]  ;;  %v2806_v28 = vadd.f32 %v6182_v26, %v6180_v46  ;;  %v2818_v30 = vmul.f32 %v6182_v26, %v6182_v26  ;;  %v6190_v15 = vmul.f32 0.0625, %v2805_v36 }
 0x48c   :  { %3060 = vmatmul.bf16.vlgmr.msrb.gmra.mxu1 %v2895_v6  ;;  %v2713_v35 = vmax.f32 %v2709_v10, 0.0  ;;  %v2714_v24 = vmax.f32 %v2710_v51, 0.0  ;;  %v3260_v61 = vld [vmem:[#allocation2 + $0x2a] sm:$0xff]  ;;  %v2821_v19 = vadd.f32 %v2820_v17, %v2819_v7 }
 0x48d   :  { %3244 = vmatmul.bf16.vlgmr.msra.gmra.mxu3 %v3169_v43  ;;  %v3263_v25 = vpack.c.bf16 %v3260_v61, %v3259_v60  ;;  %v2807_v4 = vrot.slane %v2806_v28, 4  ;;  %v2826_v16 = vadd.f32 %v2818_v30, %v2817_v12  ;;  %v2835_v6 = vmul.f32 %v6190_v15, %v6190_v15 }
 0x48e   :  { %2887 = vst [vmem:[#allocation2 + $0x48] sm:$0xff] %v2713_v35  ;;  %v3076_v55 = vpack.c.bf16 %v2714_v24, %v2713_v35  ;;  %v2822_v52 = vrot.slane %v2821_v19, 2 }
 0x48f   :  { %2889 = vst [vmem:[#allocation2 + $0x68] sm:$0xff] %v2714_v24  ;;  %v2808_v38 = vadd.f32 %v2807_v4, %v2806_v28  ;;  %v2827_v40 = vrot.slane %v2826_v16, 4 }
 0x490   :  { %3155 = vmatmul.bf16.gmra.mxu2 %v3076_v55  ;;  %v2823_v29 = vadd.f32 %v2822_v52, %v2821_v19 }
 0x491   :  { %v2809_v14 = vrot.slane %v2808_v38, 2  ;;  %v2828_v62 = vadd.f32 %v2827_v40, %v2826_v16 }
 0x492   :  { %v2824_v37 = vrot.slane %v2823_v29, 1 }
 0x493   :  { %v2810_v43 = vadd.f32 %v2809_v14, %v2808_v38  ;;  %v2829_v34 = vrot.slane %v2828_v62, 2 }
 0x494   :  { %v2825_v41 = vadd.f32 %v2824_v37, %v2823_v29 }
 0x495   :  { %v2916_v44 = vld [vmem:[#allocation2 + $0x47] sm:$0xff]  ;;  %v2811_v24 = vrot.slane %v2810_v43, 1  ;;  %v2830_v55 = vadd.f32 %v2829_v34, %v2828_v62 }
 0x496   :  { %v2893_v39 = vld [vmem:[#allocation2 + $0x46] sm:$0xff]  ;;  %v2833_v8 = vmul.f32 0.0625, %v2825_v41  ;;  %v5570_v41 = vld [vmem:[#allocation7 + $0xb8] sm:$0xff] }
 0x497   :  { %v3167_v13 = vld [vmem:[#allocation2 + $0x49] sm:$0xff]  ;;  %3727 = vmatpush.bf16.msrb.mxu3 %v5570_v41 }
 0x498   :  { %v2917_v49 = vld [vmem:[#allocation2 + $0x67] sm:$0xff]  ;;  %v2837_v45 = vsub.f32 %v2833_v8, %v2835_v6  ;;  %v5578_v6 = vld [vmem:[#allocation7 + $0xf8] sm:$0xff] }
 0x499   :  { %v2894_v53 = vld [vmem:[#allocation2 + $0x66] sm:$0xff]  ;;  %v2919_v54 = vpack.c.bf16 %v2917_v49, %v2916_v44  ;;  %3823 = vmatpush.bf16.msrb.mxu0 %v5578_v6  ;;  %v5549_v6 = vld [vmem:[#allocation7 + $0x10] sm:$0xff] }
 0x49a   :  { %v3168_v47 = vld [vmem:[#allocation2 + $0x69] sm:$0xff]  ;;  %v2896_v50 = vpack.c.bf16 %v2894_v53, %v2893_v39  ;;  %v2839_v39 = vmax.f32 %v2837_v45, 0.0  ;;  %v2812_v53 = vadd.f32 %v2811_v24, %v2810_v43 }
 0x49b   :  { %v3170_v56 = vpack.c.bf16 %v3168_v47, %v3167_v13  ;;  %2998 = vmatmul.bf16.gmra.mxu0 %v2919_v54  ;;  %v3261_v0 = vld [vmem:[#allocation2 + $0x4a] sm:$0xff]  ;;  %v2831_v47 = vrot.slane %v2830_v55, 1 }
 0x49c   :  { %3065 = vmatmul.bf16.gmra.mxu1 %v2896_v50  ;;  %v3262_v58 = vld [vmem:[#allocation2 + $0x6a] sm:$0xff] }
 0x49d   :  { %3249 = vmatmul.bf16.gmra.mxu3 %v3170_v56  ;;  %v3264_v1 = vpack.c.bf16 %v3262_v58, %v3261_v0  ;;  %v6194_v56 = vadd.f32 1e-05, %v2839_v39  ;;  %v6198_v0 = vmul.f32 0.0625, %v2812_v53  ;;  %v2832_v58 = vadd.f32 %v2831_v47, %v2830_v55  ;;  %v5569_v24 = vld [vmem:[#allocation7 + $0xb0] sm:$0xff] }
 0x49e   :  { %3728 = vmatpush.bf16.msrb.mxu3 %v5569_v24 }
 0x49f   :  { %5634 = vrsqrt.f32 %v6194_v56  ;;  %v2836_v57 = vmul.f32 %v6198_v0, %v6198_v0  ;;  %vm2851_vm11 = vweird.f32 %v6194_v56 }
 0x4a5   :  { %v6211_v30 = vpop.eup %5634 }
 0x4a6   :  { %v2846_v37 = vmul.f32 %v6211_v30, %v6194_v56  ;;  %vm2852_vm10 = vweird.f32 %v6211_v30  ;;  %v6250_v56 = vld [vmem:[%s6349_s2 + $0x5] sm:$0x1] }
 0x4a7   :  { %vm6243_vm12 = vmor %vm2851_vm11, %vm2852_vm10 }
 0x4ab   :  { %3338 = vmatmul.bf16.vlgmr.msra.gmra.mxu0 %v3263_v25 }
 0x4bb   :  { %3343 = vmatmul.bf16.gmra.mxu0 %v3264_v1 }
 0x503   :  { %v3151_v11 = vpop.f32.mrf.mxu2 }
 0x508   :  { %v2994_v9 = vpop.f32.mrf.mxu0 }
 0x509   :  { %v3061_v33 = vpop.f32.mrf.mxu1 }
 0x50a   :  { %v3062_v20 = vadd.f32 %v3061_v33, %v2994_v9  ;;  %v2834_v9 = vmul.f32 0.0625, %v2832_v58  ;;  %v5560_v58 = vld [vmem:[#allocation7 + $0x68] sm:$0xff] }
 0x50b   :  { %v3153_v10 = vpop.f32.mrf.mxu2 }
 0x50c   :  { %v3161_v13 = vadd.f32 %v3151_v11, %v3062_v20  ;;  %v2838_v32 = vsub.f32 %v2834_v9, %v2836_v57  ;;  %v2847_v20 = vmul.f32 %v6211_v30, %v2846_v37  ;;  %v5576_v9 = vld [vmem:[#allocation7 + $0xe8] sm:$0xff]  ;;  %v5550_v37 = vld [vmem:[#allocation7 + $0x18] sm:$0xff] }
 0x50e   :  { %v2840_v14 = vmax.f32 %v2838_v32, 0.0 }
 0x510   :  { %v2996_v23 = vpop.f32.mrf.mxu0  ;;  %v3245_v42 = vpop.f32.mrf.mxu3  ;;  %v6218_v55 = vadd.f32 1e-05, %v2840_v14 }
 0x511   :  { %v3063_v63 = vpop.f32.mrf.mxu1  ;;  %v3255_v54 = vadd.f32 %v3245_v42, %v3161_v13  ;;  %v5554_v42 = vld [vmem:[#allocation7 + $0x38] sm:$0xff] }
 0x512   :  { %v3064_v44 = vadd.f32 %v3063_v63, %v2996_v23  ;;  %3632 = vmatpush.bf16.msra.mxu2 %v5554_v42  ;;  %5636 = vrsqrt.f32 %v6218_v55  ;;  %v5574_v42 = vld [vmem:[#allocation7 + $0xd8] sm:$0xff]  ;;  %vm2861_vm1 = vweird.f32 %v6218_v55 }
 0x513   :  { %v3156_v5 = vpop.f32.mrf.mxu2 }
 0x514   :  { %v3162_v50 = vadd.f32 %v3153_v10, %v3064_v44 }
 0x518   :  { %v2999_v31 = vpop.f32.mrf.mxu0  ;;  %v3247_v51 = vpop.f32.mrf.mxu3 }
 0x519   :  { %v3066_v49 = vpop.f32.mrf.mxu1  ;;  %v3256_v60 = vadd.f32 %v3247_v51, %v3162_v50  ;;  %v5561_v51 = vld [vmem:[#allocation7 + $0x70] sm:$0xff] }
 0x51a   :  { %v3067_v19 = vadd.f32 %v3066_v49, %v2999_v31  ;;  %v5562_v31 = vld [vmem:[#allocation7 + $0x78] sm:$0xff]  ;;  %v5577_v49 = vld [vmem:[#allocation7 + $0xf0] sm:$0xff] }
 0x51b   :  { %v3158_v40 = vpop.f32.mrf.mxu2  ;;  %3571 = vmatpush.bf16.msra.mxu1 %v5562_v31  ;;  %3824 = vmatpush.bf16.msrb.mxu0 %v5577_v49 }
 0x51c   :  { %v3163_v4 = vadd.f32 %v3156_v5, %v3067_v19  ;;  %v5552_v5 = vld [vmem:[#allocation7 + $0x28] sm:$0xff]  ;;  %v5559_v19 = vld [vmem:[#allocation7 + $0x60] sm:$0xff] }
 0x51f   :  { %3572 = vmatpush.bf16.msra.mxu1 %v5561_v51  ;;  %3825 = vmatpush.bf16.msrb.mxu0 %v5576_v9  ;;  %v5573_v51 = vld [vmem:[#allocation7 + $0xd0] sm:$0xff]  ;;  %v5555_v9 = vld [vmem:[#allocation7 + $0x40] sm:$0xff] }
 0x520   :  { %v3001_v3 = vpop.f32.mrf.mxu0  ;;  %v3250_v48 = vpop.f32.mrf.mxu3 }
 0x521   :  { %v3068_v23 = vpop.f32.mrf.mxu1  ;;  %v3257_v38 = vadd.f32 %v3250_v48, %v3163_v4  ;;  %v5568_v48 = vld [vmem:[#allocation7 + $0xa8] sm:$0xff] }
 0x522   :  { %v3069_v29 = vadd.f32 %v3068_v23, %v3001_v3  ;;  %3729 = vmatpush.bf16.msrb.mxu3 %v5568_v48  ;;  %v5551_v23 = vld [vmem:[#allocation7 + $0x20] sm:$0xff] }
 0x523   :  { %3573 = vmatpush.bf16.msra.mxu1 %v5560_v58  ;;  %v6267_v48 = vld [vmem:[%s6350_s3 + $0x5] sm:$0x1] }
 0x524   :  { %v3164_v62 = vadd.f32 %v3158_v40, %v3069_v29 }
 0x527   :  { %3574 = vmatpush.bf16.msra.mxu1 %v5559_v19  ;;  %v5571_v19 = vld [vmem:[#allocation7 + $0xc0] sm:$0xff] }
 0x528   :  { %v3339_v35 = vpop.f32.mrf.mxu0  ;;  %v3252_v11 = vpop.f32.mrf.mxu3 }
 0x529   :  { %v6196_v61 = vadd.f32 %v3339_v35, %v3255_v54  ;;  %v3258_v43 = vadd.f32 %v3252_v11, %v3164_v62  ;;  %v5553_v35 = vld [vmem:[#allocation7 + $0x30] sm:$0xff] }
 0x52a   :  { %3633 = vmatpush.bf16.msra.mxu2 %v5553_v35 }
 0x52b   :  { %v3369_v59 = vmul.f32 %v6196_v61, %v6196_v61 }
 0x52e   :  { %3634 = vmatpush.bf16.msra.mxu2 %v5552_v5 }
 0x530   :  { %v3341_v25 = vpop.f32.mrf.mxu0 }
 0x531   :  { %v6200_v1 = vadd.f32 %v3341_v25, %v3256_v60  ;;  %v2848_v25 = vmul.f32 0.5, %v2847_v20 }
 0x532   :  { %3635 = vmatpush.bf16.msra.mxu2 %v5551_v23  ;;  %v5586_v23 = vld [vmem:[#allocation7 + $0x138] sm:$0xff] }
 0x533   :  { %v3353_v22 = vadd.f32 %v6200_v1, %v6196_v61  ;;  %v3370_v7 = vmul.f32 %v6200_v1, %v6200_v1 }
 0x535   :  { %v3354_v17 = vrot.slane %v3353_v22, 4  ;;  %v3373_v18 = vadd.f32 %v3370_v7, %v3369_v59 }
 0x536   :  { %3636 = vmatpush.bf16.msra.mxu2 %v5550_v37  ;;  %v5593_v37 = vld [vmem:[#allocation7 + $0x170] sm:$0xff] }
 0x537   :  { %v3355_v2 = vadd.f32 %v3354_v17, %v3353_v22  ;;  %v3374_v52 = vrot.slane %v3373_v18, 4 }
 0x538   :  { %v3344_v28 = vpop.f32.mrf.mxu0 }
 0x539   :  { %v3356_v12 = vrot.slane %v3355_v2, 2  ;;  %v3375_v33 = vadd.f32 %v3374_v52, %v3373_v18  ;;  %v6215_v3 = vadd.f32 %v3344_v28, %v3257_v38  ;;  %v2849_v52 = vsub.f32 1.5, %v2848_v25  ;;  %v5566_v38 = vld [vmem:[#allocation7 + $0x98] sm:$0xff]  ;;  %v5572_v25 = vld [vmem:[#allocation7 + $0xc8] sm:$0xff] }
 0x53a   :  { %3637 = vmatpush.bf16.msra.mxu2 %v5549_v6 }
 0x53b   :  { %v3357_v16 = vadd.f32 %v3356_v12, %v3355_v2  ;;  %v3376_v36 = vrot.slane %v3375_v33, 2  ;;  %v3371_v53 = vmul.f32 %v6215_v3, %v6215_v3  ;;  %v5567_v2 = vld [vmem:[#allocation7 + $0xa0] sm:$0xff]  ;;  %v2850_v40 = vmul.f32 %v6211_v30, %v2849_v52 }
 0x53c   :  { %v5575_v12 = vld [vmem:[#allocation7 + $0xe0] sm:$0xff]  ;;  %3730 = vmatpush.bf16.msrb.mxu3 %v5567_v2  ;;  %v5594_v2 = vld [vmem:[#allocation7 + $0x178] sm:$0xff] }
 0x53d   :  { %v3358_v63 = vrot.slane %v3357_v16, 1  ;;  %v3377_v8 = vadd.f32 %v3376_v36, %v3375_v33  ;;  %v6235_v33 = vpop.eup %5636  ;;  %3826 = vmatpush.bf16.msrb.mxu0 %v5575_v12  ;;  %v5558_v36 = vld [vmem:[#allocation7 + $0x58] sm:$0xff] }
 0x53e   :  { %v2856_v41 = vmul.f32 %v6235_v33, %v6218_v55  ;;  %3575 = vmatpush.bf16.msra.mxu1 %v5558_v36  ;;  %v5610_v12 = vld [vmem:[#allocation7 + $0x1f8] sm:$0xff]  ;;  %v5585_v36 = vld [vmem:[#allocation7 + $0x130] sm:$0xff]  ;;  %vm2862_vm0 = vweird.f32 %v6235_v33 }
 0x53f   :  { %v3359_v34 = vadd.f32 %v3358_v63, %v3357_v16  ;;  %v3378_v45 = vrot.slane %v3377_v8, 1  ;;  %vm6293_vm2 = vmor %vm2861_vm1, %vm2862_vm0 }
 0x540   :  { %v3346_v10 = vpop.f32.mrf.mxu0  ;;  %3731 = vmatpush.bf16.msrb.mxu3 %v5566_v38  ;;  %v2857_v35 = vmul.f32 %v6235_v33, %v2856_v41 }
 0x541   :  { %v6220_v44 = vmul.f32 0.0625, %v3359_v34  ;;  %v3379_v39 = vadd.f32 %v3378_v45, %v3377_v8  ;;  %v6222_v13 = vadd.f32 %v3346_v10, %v3258_v43  ;;  %3827 = vmatpush.bf16.msrb.mxu0 %v5574_v42  ;;  %v5557_v8 = vld [vmem:[#allocation7 + $0x50] sm:$0xff]  ;;  %v2854_v45 = vsel %vm6243_vm12, %v6211_v30, %v2850_v40  ;;  %v6289_v42 = vld [vmem:[%s6350_s3 + $0x4] sm:$0x1] }
 0x542   :  { %v5565_v43 = vld [vmem:[#allocation7 + $0x90] sm:$0xff]  ;;  %3576 = vmatpush.bf16.msra.mxu1 %v5557_v8  ;;  %v2858_v58 = vmul.f32 0.5, %v2857_v35  ;;  %v5592_v8 = vld [vmem:[#allocation7 + $0x168] sm:$0xff] }
 0x543   :  { %v3387_v47 = vmul.f32 0.0625, %v3379_v39  ;;  %v3389_v54 = vmul.f32 %v6220_v44, %v6220_v44  ;;  %v3360_v50 = vadd.f32 %v6222_v13, %v6215_v3  ;;  %v3372_v60 = vmul.f32 %v6222_v13, %v6222_v13  ;;  %v5609_v40 = vld [vmem:[#allocation7 + $0x1f0] sm:$0xff] }
 0x544   :  { %3732 = vmatpush.bf16.msrb.mxu3 %v5565_v43  ;;  %v2859_v52 = vsub.f32 1.5, %v2858_v58 }
 0x545   :  { %v3391_v59 = vsub.f32 %v3387_v47, %v3389_v54  ;;  %v3361_v22 = vrot.slane %v3360_v50, 4  ;;  %v3380_v7 = vadd.f32 %v3372_v60, %v3371_v53  ;;  %3828 = vmatpush.bf16.msrb.mxu0 %v5573_v51  ;;  %v6262_v53 = vmul.f32 %v2854_v45, %v6250_v56  ;;  %v5556_v47 = vld [vmem:[#allocation7 + $0x48] sm:$0xff] }
 0x546   :  { %v5548_v54 = vld [vmem:[#allocation7 + $0x8] sm:$0xff]  ;;  %3577 = vmatpush.bf16.msra.mxu1 %v5556_v47 }
 0x547   :  { %v3393_v57 = vmax.f32 %v3391_v59, 0.0  ;;  %v3362_v17 = vadd.f32 %v3361_v22, %v3360_v50  ;;  %v3381_v18 = vrot.slane %v3380_v7, 4  ;;  %v5564_v50 = vld [vmem:[#allocation7 + $0x88] sm:$0xff]  ;;  %3638 = vmatpush.bf16.msra.mxu2 %v5548_v54  ;;  %v2867_v22 = vmul.f32 %v6262_v53, %v6190_v15  ;;  %v5602_v15 = vld [vmem:[#allocation7 + $0x1b8] sm:$0xff]  ;;  %v5583_v54 = vld [vmem:[#allocation7 + $0x120] sm:$0xff] }
 0x548   :  { %3733 = vmatpush.bf16.msrb.mxu3 %v5564_v50  ;;  %v5600_v45 = vld [vmem:[#allocation7 + $0x1a8] sm:$0xff] }
 0x549   :  { %v6233_v28 = vadd.f32 1e-05, %v3393_v57  ;;  %v3363_v32 = vrot.slane %v3362_v17, 2  ;;  %v3382_v29 = vadd.f32 %v3381_v18, %v3380_v7  ;;  %3829 = vmatpush.bf16.msrb.mxu0 %v5572_v25  ;;  %v5547_v57 = vld [vmem:[#allocation7] sm:$0xff] }
 0x54a   :  { %3578 = vmatpush.bf16.msra.mxu1 %v5555_v9  ;;  %v5607_v25 = vld [vmem:[#allocation7 + $0x1e0] sm:$0xff] }
 0x54b   :  { %5638 = vrsqrt.f32 %v6233_v28  ;;  %v3364_v4 = vadd.f32 %v3363_v32, %v3362_v17  ;;  %v3383_v16 = vrot.slane %v3382_v29, 2  ;;  %v5563_v17 = vld [vmem:[#allocation7 + $0x80] sm:$0xff]  ;;  %vm3405_vm14 = vweird.f32 %v6233_v28  ;;  %3639 = vmatpush.bf16.msra.mxu2 %v5547_v57  ;;  %v5582_v57 = vld [vmem:[#allocation7 + $0x118] sm:$0xff] }
 0x54c   :  { %v6276_v32 = vld [vmem:[%s6349_s2 + $0x4] sm:$0x1]  ;;  %3734 = vmatpush.bf16.msrb.mxu3 %v5563_v17  ;;  %v5590_v17 = vld [vmem:[#allocation7 + $0x158] sm:$0xff] }
 0x54d   :  { %v3365_v11 = vrot.slane %v3364_v4, 1  ;;  %v3384_v31 = vadd.f32 %v3383_v16, %v3382_v29  ;;  %3830 = vmatpush.bf16.msrb.mxu0 %v5571_v19  ;;  %v5598_v19 = vld [vmem:[#allocation7 + $0x198] sm:$0xff] }
 0x54e   :  { %3919 = vmatpush.bf16.msrb.mxu1 %v5586_v23 }
 0x54f   :  { %v3366_v62 = vadd.f32 %v3365_v11, %v3364_v4  ;;  %v3385_v63 = vrot.slane %v3384_v31, 1  ;;  %v2869_v4 = vsub.f32 %v6267_v48, %v2867_v22  ;;  %4015 = vmatpush.bf16.msrb.mxu2 %v5594_v2  ;;  %v2871_v11 = vperm.slane %v6262_v53, 0 }
 0x550   :  { %4111 = vmatpush.bf16.msra.mxu3 %v5602_v15  ;;  %v5589_v15 = vld [vmem:[#allocation7 + $0x150] sm:$0xff] }
 0x551   :  { %v5639_v34 = vpop.eup %5638  ;;  %v6255_v20 = vmul.f32 0.0625, %v3366_v62  ;;  %v3386_v10 = vadd.f32 %v3385_v63, %v3384_v31  ;;  %4207 = vmatpush.bf16.msra.mxu0 %v5610_v12  ;;  %v2860_v31 = vmul.f32 %v6235_v33, %v2859_v52  ;;  %v2877_v62 = vperm.slane %v2869_v4, 0  ;;  %v5584_v63 = vld [vmem:[#allocation7 + $0x128] sm:$0xff]  ;;  %v5606_v52 = vld [vmem:[#allocation7 + $0x1d8] sm:$0xff]  ;;  %v5597_v4 = vld [vmem:[#allocation7 + $0x190] sm:$0xff] }
 0x552   :  { %v3400_v24 = vmul.f32 %v5639_v34, %v6233_v28  ;;  %vm3406_vm13 = vweird.f32 %v5639_v34  ;;  %v5601_v28 = vld [vmem:[#allocation7 + $0x1b0] sm:$0xff]  ;;  %3920 = vmatpush.bf16.msrb.mxu1 %v5585_v36  ;;  %v2874_v51 = vmul.f32 %v2871_v11, %v6172_v21 }
 0x553   :  { %v3388_v39 = vmul.f32 0.0625, %v3386_v10  ;;  %v3390_v49 = vmul.f32 %v6255_v20, %v6255_v20  ;;  %vm3407_vm15 = vmor %vm3405_vm14, %vm3406_vm13  ;;  %4016 = vmatpush.bf16.msrb.mxu2 %v5593_v37  ;;  %v5608_v10 = vld [vmem:[#allocation7 + $0x1e8] sm:$0xff]  ;;  %v2864_v55 = vsel %vm6293_vm2, %v6235_v33, %v2860_v31  ;;  %v5599_v33 = vld [vmem:[#allocation7 + $0x1a0] sm:$0xff] }
 0x554   :  { %v3401_v30 = vmul.f32 %v5639_v34, %v3400_v24  ;;  %4112 = vmatpush.bf16.msra.mxu3 %v5601_v28  ;;  %v2866_v21 = vmul.f32 %v2864_v55, %v6250_v56  ;;  %v5596_v31 = vld [vmem:[#allocation7 + $0x188] sm:$0xff] }
 0x555   :  { %v3392_v60 = vsub.f32 %v3388_v39, %v3390_v49  ;;  %4208 = vmatpush.bf16.msra.mxu0 %v5609_v40 }
 0x556   :  { %v3402_v5 = vmul.f32 0.5, %v3401_v30  ;;  %v2880_v30 = vadd.f32 %v2877_v62, %v2874_v51  ;;  %3921 = vmatpush.bf16.msrb.mxu1 %v5584_v63 }
 0x557   :  { %v3394_v59 = vmax.f32 %v3392_v60, 0.0  ;;  %4017 = vmatpush.bf16.msrb.mxu2 %v5592_v8  ;;  %v5587_v8 = vld [vmem:[#allocation7 + $0x140] sm:$0xff] }
 0x558   :  { %v3403_v7 = vsub.f32 1.5, %v3402_v5  ;;  %4113 = vmatpush.bf16.msra.mxu3 %v5600_v45 }
 0x559   :  { %v6271_v18 = vadd.f32 1e-05, %v3394_v59  ;;  %4209 = vmatpush.bf16.msra.mxu0 %v5608_v10  ;;  %v2868_v59 = vmul.f32 %v2866_v21, %v6198_v0  ;;  %v2872_v0 = vperm.slane %v2866_v21, 0 }
 0x55a   :  { %v3404_v29 = vmul.f32 %v5639_v34, %v3403_v7  ;;  %3922 = vmatpush.bf16.msrb.mxu1 %v5583_v54 }
 0x55b   :  { %5640 = vrsqrt.f32 %v6271_v18  ;;  %vm3415_vm4 = vweird.f32 %v6271_v18  ;;  %v2870_v23 = vsub.f32 %v6267_v48, %v2868_v59  ;;  %v2875_v48 = vmul.f32 %v2872_v0, %v6180_v46  ;;  %v5579_v46 = vld [vmem:[#allocation7 + $0x100] sm:$0xff] }
 0x55c   :  { %v3408_v16 = vsel %vm3407_vm15, %v5639_v34, %v3404_v29  ;;  %4114 = vmatpush.bf16.msra.mxu3 %v5599_v33  ;;  %v5581_v29 = vld [vmem:[#allocation7 + $0x110] sm:$0xff]  ;;  %v2876_v28 = vmul.f32 %v2872_v0, %v6182_v26  ;;  %v5595_v26 = vld [vmem:[#allocation7 + $0x180] sm:$0xff] }
 0x55d   :  { %v3419_v38 = vmul.f32 %v3408_v16, %v6276_v32  ;;  %4210 = vmatpush.bf16.msra.mxu0 %v5607_v25  ;;  %v5605_v16 = vld [vmem:[#allocation7 + $0x1d0] sm:$0xff]  ;;  %v2878_v36 = vperm.slane %v2870_v23, 0 }
 0x55e   :  { %3923 = vmatpush.bf16.msrb.mxu1 %v5582_v57 }
 0x55f   :  { %v3421_v41 = vmul.f32 %v3419_v38, %v6220_v44  ;;  %v3425_v14 = vperm.slane %v3419_v38, 0  ;;  %v2873_v44 = vmul.f32 %v2871_v11, %v6170_v27  ;;  %v5591_v27 = vld [vmem:[#allocation7 + $0x160] sm:$0xff]  ;;  %v5588_v38 = vld [vmem:[#allocation7 + $0x148] sm:$0xff] }
 0x560   :  { %4018 = vmatpush.bf16.msrb.mxu2 %v5591_v27  ;;  %4115 = vmatpush.bf16.msra.mxu3 %v5598_v19 }
 0x561   :  { %v5641_v6 = vpop.eup %5640  ;;  %v3423_v34 = vsub.f32 %v6289_v42, %v3421_v41  ;;  %v3427_v24 = vmul.f32 %v3425_v14, %v6196_v61  ;;  %v3428_v39 = vmul.f32 %v3425_v14, %v6200_v1  ;;  %v2879_v53 = vadd.f32 %v2877_v62, %v2873_v44  ;;  %4211 = vmatpush.bf16.msra.mxu0 %v5606_v52  ;;  %v5604_v41 = vld [vmem:[#allocation7 + $0x1c8] sm:$0xff] }
 0x562   :  { %v3410_v35 = vmul.f32 %v5641_v6, %v6271_v18  ;;  %vm3416_vm3 = vweird.f32 %v5641_v6  ;;  %3924 = vmatpush.bf16.msrb.mxu1 %v5581_v29  ;;  %v2881_v14 = vadd.f32 %v2878_v36, %v2875_v48  ;;  %v2882_v62 = vadd.f32 %v2878_v36, %v2876_v28 }
 0x563   :  { %v3431_v49 = vperm.slane %v3423_v34, 0  ;;  %vm3417_vm5 = vmor %vm3415_vm4, %vm3416_vm3 }
 0x564   :  { %v3411_v47 = vmul.f32 %v5641_v6, %v3410_v35  ;;  %4019 = vmatpush.bf16.msrb.mxu2 %v5590_v17  ;;  %4116 = vmatpush.bf16.msra.mxu3 %v5597_v4 }
 0x565   :  { %v3433_v50 = vadd.f32 %v3431_v49, %v3427_v24  ;;  %v3434_v60 = vadd.f32 %v3431_v49, %v3428_v39  ;;  %4212 = vmatpush.bf16.msra.mxu0 %v5605_v16 }
 0x566   :  { %v3412_v58 = vmul.f32 0.5, %v3411_v47 }
 0x567   :  { %v3437_v61 = vadd.f32 %v3433_v50, %v2879_v53  ;;  %v3438_v5 = vadd.f32 %v3434_v60, %v2880_v30 }
 0x568   :  { %v3413_v1 = vsub.f32 1.5, %v3412_v58  ;;  %4020 = vmatpush.bf16.msrb.mxu2 %v5589_v15  ;;  %4117 = vmatpush.bf16.msra.mxu3 %v5596_v31 }
 0x569   :  { %v3441_v22 = vmax.f32 %v3437_v61, 0.0  ;;  %v3442_v7 = vmax.f32 %v3438_v5, 0.0  ;;  %4213 = vmatpush.bf16.msra.mxu0 %v5604_v41 }
 0x56a   :  { %v3414_v56 = vmul.f32 %v5641_v6, %v3413_v1 }
 0x56b   :  { %3445 = vst [vmem:[#allocation3 + $0x8] sm:$0xff] %v3441_v22 }
 0x56c   :  { %3447 = vst [vmem:[#allocation3 + $0x28] sm:$0xff] %v3442_v7  ;;  %v3418_v9 = vsel %vm3417_vm5, %v5641_v6, %v3414_v56  ;;  %4021 = vmatpush.bf16.msrb.mxu2 %v5588_v38  ;;  %4118 = vmatpush.bf16.msra.mxu3 %v5595_v26 }
 0x56d   :  { %v3420_v2 = vmul.f32 %v3418_v9, %v6276_v32  ;;  %v5580_v32 = vld [vmem:[#allocation7 + $0x108] sm:$0xff] }
 0x56e   :  { %3925 = vmatpush.bf16.msrb.mxu1 %v5580_v32 }
 0x56f   :  { %v3422_v12 = vmul.f32 %v3420_v2, %v6255_v20  ;;  %v3426_v18 = vperm.slane %v3420_v2, 0 }
 0x570   :  { %4022 = vmatpush.bf16.msrb.mxu2 %v5587_v8 }
 0x571   :  { %v3424_v37 = vsub.f32 %v6289_v42, %v3422_v12  ;;  %v3429_v40 = vmul.f32 %v3426_v18, %v6215_v3  ;;  %v3430_v20 = vmul.f32 %v3426_v18, %v6222_v13  ;;  %v5603_v3 = vld [vmem:[#allocation7 + $0x1c0] sm:$0xff] }
 0x572   :  { %3926 = vmatpush.bf16.msrb.mxu1 %v5579_v46  ;;  %4214 = vmatpush.bf16.msra.mxu0 %v5603_v3  ;;  %v3489_v24 = vld [vmem:[#allocation3 + $0x9] sm:$0x1]  ;;  %v3453_v49 = vld [vmem:[#allocation3 + $0x8] sm:$0x1]  ;;  %v3645_v53 = vld [vmem:[#allocation3 + $0xa] sm:$0x1] }
 0x573   :  { %v3432_v11 = vperm.slane %v3424_v37, 0  ;;  %v3490_v45 = vld [vmem:[#allocation3 + $0x29] sm:$0x1]  ;;  %v3454_v10 = vld [vmem:[#allocation3 + $0x28] sm:$0x1] }
 0x574   :  { %v3646_v44 = vld [vmem:[#allocation3 + $0x2a] sm:$0x1]  ;;  %v3742_v51 = vld [vmem:[#allocation3 + $0x2b] sm:$0x1]  ;;  %v3494_v55 = vrot.slane %v3490_v45, 7  ;;  %v3458_v35 = vrot.slane %v3454_v10, 7 }
 0x575   :  { %v3435_v42 = vadd.f32 %v3432_v11, %v3429_v40  ;;  %v3436_v63 = vadd.f32 %v3432_v11, %v3430_v20  ;;  %v3650_v39 = vrot.slane %v3646_v44, 7  ;;  %v3746_v30 = vrot.slane %v3742_v51, 7  ;;  %v3741_v21 = vld [vmem:[#allocation3 + $0xb] sm:$0x1]  ;;  %v3838_v37 = vld [vmem:[#allocation3 + $0x2c] sm:$0x1] }
 0x576   :  { %v3502_v33 = vsel %vm3466_vm6, %v3489_v24, %v3494_v55  ;;  %v3467_v61 = vsel %vm3466_vm6, %v3453_v49, %v3458_v35  ;;  %v3934_v32 = vld [vmem:[#allocation3 + $0x2d] sm:$0x1]  ;;  %v4030_v38 = vld [vmem:[#allocation3 + $0x2e] sm:$0x1]  ;;  %v3842_v11 = vrot.slane %v3838_v37, 7 }
 0x577   :  { %v3439_v6 = vadd.f32 %v3435_v42, %v2881_v14  ;;  %v3440_v43 = vadd.f32 %v3436_v63, %v2882_v62  ;;  %v3658_v7 = vsel %vm3466_vm6, %v3645_v53, %v3650_v39  ;;  %v3754_v23 = vsel %vm3466_vm6, %v3741_v21, %v3746_v30  ;;  %v4126_v42 = vld [vmem:[#allocation3 + $0x2f] sm:$0x1]  ;;  %v4029_v45 = vld [vmem:[#allocation3 + $0xe] sm:$0x1] }
 0x578   :  { %v3938_v14 = vrot.slane %v3934_v32, 7  ;;  %v4034_v62 = vrot.slane %v4030_v38, 7  ;;  %v4130_v10 = vrot.slane %v4126_v42, 7 }
 0x579   :  { %v3443_v13 = vmax.f32 %v3439_v6, 0.0  ;;  %v3444_v34 = vmax.f32 %v3440_v43, 0.0  ;;  %v3837_v43 = vld [vmem:[#allocation3 + $0xc] sm:$0x1] }
 0x57a   :  { %v4042_v30 = vsel %vm3466_vm6, %v4029_v45, %v4034_v62 }
 0x57b   :  { %3449 = vst [vmem:[#allocation3 + $0x48] sm:$0xff] %v3443_v13  ;;  %v3850_v13 = vsel %vm3466_vm6, %v3837_v43, %v3842_v11 }
 0x57c   :  { %3451 = vst [vmem:[#allocation3 + $0x68] sm:$0xff] %v3444_v34  ;;  %v3933_v34 = vld [vmem:[#allocation3 + $0xd] sm:$0x1] }
 0x57d   :  { %v3946_v55 = vsel %vm3466_vm6, %v3933_v34, %v3938_v14 }
 0x582   :  { %v3491_v47 = vld [vmem:[#allocation3 + $0x49] sm:$0x1]  ;;  %v3455_v54 = vld [vmem:[#allocation3 + $0x48] sm:$0x1]  ;;  %v3647_v27 = vld [vmem:[#allocation3 + $0x4a] sm:$0x1] }
 0x583   :  { %v3492_v50 = vld [vmem:[#allocation3 + $0x69] sm:$0x1]  ;;  %v3497_v60 = vrot.slane %v3491_v47, 6  ;;  %v3456_v25 = vld [vmem:[#allocation3 + $0x68] sm:$0x1]  ;;  %v3461_v58 = vrot.slane %v3455_v54, 6 }
 0x584   :  { %v3500_v5 = vrot.slane %v3492_v50, 5  ;;  %v3464_v1 = vrot.slane %v3456_v25, 5  ;;  %v3648_v59 = vld [vmem:[#allocation3 + $0x6a] sm:$0x1]  ;;  %v3653_v22 = vrot.slane %v3647_v27, 6 }
 0x585   :  { %v3503_v56 = vsel %vm3468_vm7, %v3502_v33, %v3497_v60  ;;  %v3469_v9 = vsel %vm3468_vm7, %v3467_v61, %v3461_v58  ;;  %v3656_v57 = vrot.slane %v3648_v59, 5  ;;  %v3743_v17 = vld [vmem:[#allocation3 + $0x4b] sm:$0x1]  ;;  %v3839_v40 = vld [vmem:[#allocation3 + $0x4c] sm:$0x1] }
 0x586   :  { %v3744_v19 = vld [vmem:[#allocation3 + $0x6b] sm:$0x1]  ;;  %v3504_v2 = vsel %vm3470_vm8, %v3503_v56, %v3500_v5  ;;  %v3471_v52 = vsel %vm3470_vm8, %v3469_v9, %v3464_v1  ;;  %v3659_v0 = vsel %vm3468_vm7, %v3658_v7, %v3653_v22  ;;  %v3749_v29 = vrot.slane %v3743_v17, 6  ;;  %v3935_v20 = vld [vmem:[#allocation3 + $0x4d] sm:$0x1] }
 0x587   :  { %v3505_v15 = vpack.c.bf16 %v3504_v2, %v3504_v2  ;;  %v3472_v12 = vpack.c.bf16 %v3471_v52, %v3471_v52  ;;  %v3660_v18 = vsel %vm3470_vm8, %v3659_v0, %v3656_v57  ;;  %v3752_v4 = vrot.slane %v3744_v19, 5  ;;  %v4031_v31 = vld [vmem:[#allocation3 + $0x4e] sm:$0x1]  ;;  %v3840_v41 = vld [vmem:[#allocation3 + $0x6c] sm:$0x1] }
 0x588   :  { %v3661_v16 = vpack.c.bf16 %v3660_v18, %v3660_v18  ;;  %v3755_v36 = vsel %vm3468_vm7, %v3754_v23, %v3749_v29  ;;  %v3845_v63 = vrot.slane %v3839_v40, 6  ;;  %v3936_v46 = vld [vmem:[#allocation3 + $0x6d] sm:$0x1]  ;;  %v3941_v8 = vrot.slane %v3935_v20, 6  ;;  %v4127_v6 = vld [vmem:[#allocation3 + $0x4f] sm:$0x1] }
 0x589   :  { %3579 = vmatmul.bf16.vlgmr.msra.gmra.mxu1 %v3505_v15  ;;  %3640 = vmatmul.bf16.vlgmr.msra.gmra.mxu2 %v3472_v12  ;;  %v3756_v48 = vsel %vm3470_vm8, %v3755_v36, %v3752_v4  ;;  %v4032_v26 = vld [vmem:[#allocation3 + $0x6e] sm:$0x1]  ;;  %v4037_v3 = vrot.slane %v4031_v31, 6  ;;  %v3848_v44 = vrot.slane %v3840_v41, 5  ;;  %v3944_v51 = vrot.slane %v3936_v46, 5 }
 0x58a   :  { %3735 = vmatmul.bf16.vlgmr.msrb.gmra.mxu3 %v3661_v16  ;;  %v3757_v28 = vpack.c.bf16 %v3756_v48, %v3756_v48  ;;  %v4128_v35 = vld [vmem:[#allocation3 + $0x6f] sm:$0x1]  ;;  %v4133_v24 = vrot.slane %v4127_v6, 6  ;;  %v3851_v39 = vsel %vm3468_vm7, %v3850_v13, %v3845_v63  ;;  %v3947_v49 = vsel %vm3468_vm7, %v3946_v55, %v3941_v8  ;;  %v5617_v48 = vld [vmem:[%s6352_s5] ss:$0 sm:$0xff] }
 0x58b   :  { %v4040_v53 = vrot.slane %v4032_v26, 5  ;;  %v4043_v47 = vsel %vm3468_vm7, %v4042_v30, %v4037_v3  ;;  %v4125_v54 = vld [vmem:[#allocation3 + $0xf] sm:$0x1]  ;;  %v4136_v27 = vrot.slane %v4128_v35, 5  ;;  %v3852_v50 = vsel %vm3470_vm8, %v3851_v39, %v3848_v44 }
 0x58c   :  { %3831 = vmatmul.bf16.vlgmr.msrb.gmra.mxu0 %v3757_v28  ;;  %v4138_v21 = vsel %vm3466_vm6, %v4125_v54, %v4130_v10  ;;  %v3948_v60 = vsel %vm3470_vm8, %v3947_v49, %v3944_v51  ;;  %v3853_v58 = vpack.c.bf16 %v3852_v50, %v3852_v50 }
 0x58d   :  { %v4139_v33 = vsel %vm3468_vm7, %v4138_v21, %v4133_v24  ;;  %v4044_v25 = vsel %vm3470_vm8, %v4043_v47, %v4040_v53  ;;  %v3949_v61 = vpack.c.bf16 %v3948_v60, %v3948_v60 }
 0x58e   :  { %v4140_v5 = vsel %vm3470_vm8, %v4139_v33, %v4136_v27  ;;  %v4045_v1 = vpack.c.bf16 %v4044_v25, %v4044_v25 }
 0x58f   :  { %v4141_v59 = vpack.c.bf16 %v4140_v5, %v4140_v5 }
 0x599   :  { %3927 = vmatmul.bf16.vlgmr.msrb.gmra.mxu1 %v3853_v58  ;;  %4023 = vmatmul.bf16.vlgmr.msrb.gmra.mxu2 %v3949_v61 }
 0x59a   :  { %4119 = vmatmul.bf16.vlgmr.msra.gmra.mxu3 %v4045_v1 }
 0x59c   :  { %4215 = vmatmul.bf16.vlgmr.msra.gmra.mxu0 %v4141_v59 }
 0x606   :  { %v3580_v22 = vpop.f32.mrf.mxu1 }
 0x609   :  { %v3832_v7 = vpop.f32.mrf.mxu0 }
 0x60c   :  { %v3641_v56 = vpop.f32.mrf.mxu2 }
 0x60d   :  { %v3736_v9 = vpop.f32.mrf.mxu3  ;;  %v3642_v17 = vadd.f32 %v3641_v56, %v3580_v22 }
 0x60e   :  { %v3582_v57 = vpop.f32.mrf.mxu1 }
 0x60f   :  { %v3740_v2 = vadd.f32 %v3736_v9, %v3642_v17 }
 0x611   :  { %v3834_v19 = vpop.f32.mrf.mxu0  ;;  %v3836_v29 = vadd.f32 %v3832_v7, %v3740_v2 }
 0x614   :  { %v3643_v23 = vpop.f32.mrf.mxu2 }
 0x615   :  { %v3738_v52 = vpop.f32.mrf.mxu3 }
 0x616   :  { %v3928_v0 = vpop.f32.mrf.mxu1 }
 0x617   :  { %v3932_v12 = vadd.f32 %v3928_v0, %v3836_v29 }
 0x619   :  { %v4216_v15 = vpop.f32.mrf.mxu0 }
 0x61c   :  { %v4024_v18 = vpop.f32.mrf.mxu2 }
 0x61d   :  { %v4028_v4 = vadd.f32 %v4024_v18, %v3932_v12  ;;  %v4120_v16 = vpop.f32.mrf.mxu3 }
 0x61e   :  { %v3930_v36 = vpop.f32.mrf.mxu1 }
 0x61f   :  { %v4124_v37 = vadd.f32 %v4120_v16, %v4028_v4 }
 0x621   :  { %v4220_v32 = vadd.f32 %v4216_v15, %v4124_v37  ;;  %v4218_v38 = vpop.f32.mrf.mxu0 }
 0x623   :  { %v4225_v28 = vadd.f32 %v5617_v48, %v4220_v32 }
 0x624   :  { %v4026_v40 = vpop.f32.mrf.mxu2 }
 0x625   :  { %4226 = vst [vmem:[#allocation9] sm:$0xf] %v4225_v28  ;;  %v4122_v20 = vpop.f32.mrf.mxu3 }
 0x626   :  { %4237 = dma.vmem_to_hbm [thread:$0]  %s4233_s21, 64, %s4235_s23, [#allocation6]  }
 0x627   :  { %5739 = dma.done.wait [#allocation6], 64  }
 0x628   :  { %5740 = vsyncadd [#allocation6], 4294967232 }
 0x629   :  { %4242 = vsyncpa [#allocation5], 1 }
 0x62a   :  { %4243 = vsyncpa [#allocation8], 1 }
 0x62b   :  { %4244 = vsyncpa [#allocation6], 1 }

</bundles_post_ra>
